<compile_context>
chip_gen: v7x
topology: tpu7x:2x2x1
jax: 0.10.0
libtpu: 0.0.40
codegen_flags: <defaults>
</compile_context>

<pallas_src>
import functools
import math

import jax
import jax.numpy as jnp
from jax.experimental import pallas as pl
from jax.experimental.pallas import tpu as pltpu


def _round_up(x, m):
    return (x + m - 1) // m * m


# ----------------------------- Pallas kernels ------------------------------


def _mm_bias_relu_kernel(x_ref, w_ref, b_ref, o_ref):
    """One M-tile of relu(x @ w + b); bf16 inputs, f32 accumulate, bf16 out."""
    y = jnp.dot(x_ref[...], w_ref[...], preferred_element_type=jnp.float32)
    y = jnp.maximum(y + b_ref[...], 0.0)
    o_ref[...] = y.astype(o_ref.dtype)


def _conv3x3_taps(xv, w9_ref, m_out, wp):
    """3x3 'same' conv in flattened zero-padded layout.

    xv: (Hp*Wp, Cin) zero-padded flattened image (bf16).
    w9_ref: (9, Cin, Cout) weights.  Output rows p = h*wp + w (w < W valid)."""
    cout = w9_ref.shape[-1]
    acc = jnp.zeros((m_out, cout), jnp.float32)
    for i in range(3):
        for j in range(3):
            off = i * wp + j
            acc = acc + jnp.dot(xv[off:off + m_out, :], w9_ref[3 * i + j],
                                preferred_element_type=jnp.float32)
    return acc


def _write_padded_flat(o_ref, y, pad, m_out):
    """Write y (already masked) back in canonical zero-padded flat layout."""
    c = o_ref.shape[-1]
    hpwp = o_ref.shape[1]
    o_ref[0, 0:pad, :] = jnp.zeros((pad, c), o_ref.dtype)
    o_ref[0, pad:pad + m_out, :] = y.astype(o_ref.dtype)
    o_ref[0, pad + m_out:hpwp, :] = jnp.zeros((hpwp - pad - m_out, c), o_ref.dtype)


def _conv3_flat_kernel(x_ref, w9_ref, b_ref, m_ref, o_ref, *, H, W):
    """conv_3: 3x3 s1 p1 + bias, no activation.  One batch element per step."""
    wp = W + 2
    m_out = (H - 1) * wp + W
    pad = wp + 1
    xv = x_ref[0]                                    # (Hp*Wp, Cin) bf16
    acc = _conv3x3_taps(xv, w9_ref, m_out, wp)       # (m_out, Cout) f32
    y = (acc + b_ref[...]) * m_ref[...]              # bias, zero the junk columns
    _write_padded_flat(o_ref, y, pad, m_out)


def _res_block_flat_kernel(x_ref, w3_ref, w1_ref, m_ref, o_ref, *, H, W, last_relu):
    """Residual block: x + Conv1x1(ReLU(Conv3x3(ReLU(x)))) [+ final stack ReLU]."""
    wp = W + 2
    m_out = (H - 1) * wp + W
    pad = wp + 1
    xv = x_ref[0]                                    # (Hp*Wp, C) bf16 (zero-padded)
    xr = jnp.maximum(xv, 0).astype(jnp.bfloat16)     # pre-ReLU once per element
    acc = _conv3x3_taps(xr, w3_ref, m_out, wp)       # 3x3 conv, bias=False
    t = jnp.maximum(acc, 0.0).astype(jnp.bfloat16)   # stays in VMEM/regs
    y = jnp.dot(t, w1_ref[...], preferred_element_type=jnp.float32)   # 1x1 conv
    y = y + xv[pad:pad + m_out, :].astype(jnp.float32)                # residual add
    if last_relu:
        y = jnp.maximum(y, 0.0)                      # ResidualStack's final ReLU
    y = y * m_ref[...]                               # zero junk cols -> next layer's pad
    _write_padded_flat(o_ref, y, pad, m_out)


# ----------------------------- pallas_call wrappers -------------------------


def pallas_matmul_bias_relu(x, w, b, *, block_m=512):
    """relu(x @ w + b), tiled over M; weights/bias stay VMEM-resident."""
    m, k = x.shape
    n = w.shape[1]
    tm = min(block_m, _round_up(m, 8))
    mp = _round_up(m, tm)
    if mp != m:
        x = jnp.pad(x, ((0, mp - m), (0, 0)))
    out = pl.pallas_call(
        _mm_bias_relu_kernel,
        out_shape=jax.ShapeDtypeStruct((mp, n), jnp.bfloat16),
        grid_spec=pltpu.PrefetchScalarGridSpec(
            num_scalar_prefetch=0,
            grid=(mp // tm,),
            in_specs=[
                pl.BlockSpec((tm, k), lambda i: (i, 0)),   # activation tile
                pl.BlockSpec((k, n), lambda i: (0, 0)),    # weight (resident)
                pl.BlockSpec((1, n), lambda i: (0, 0)),    # bias   (resident)
            ],
            out_specs=pl.BlockSpec((tm, n), lambda i: (i, 0)),
        ),
        compiler_params=pltpu.CompilerParams(dimension_semantics=("parallel",)),
        cost_estimate=pl.CostEstimate(
            flops=2 * mp * k * n, transcendentals=0,
            bytes_accessed=2 * (mp * k + k * n + mp * n)),
    )(x, w, b)
    return out if mp == m else out[:m]


def pallas_conv3_flat(xf, w9, b, mask, *, H, W):
    n, hpwp, cin = xf.shape
    cout = w9.shape[-1]
    m_out = mask.shape[0]
    kern = functools.partial(_conv3_flat_kernel, H=H, W=W)
    return pl.pallas_call(
        kern,
        out_shape=jax.ShapeDtypeStruct((n, hpwp, cout), jnp.bfloat16),
        grid_spec=pltpu.PrefetchScalarGridSpec(
            num_scalar_prefetch=0,
            grid=(n,),
            in_specs=[
                pl.BlockSpec((1, hpwp, cin), lambda i: (i, 0, 0)),
                pl.BlockSpec((9, cin, cout), lambda i: (0, 0, 0)),
                pl.BlockSpec((1, cout), lambda i: (0, 0)),
                pl.BlockSpec((m_out, 1), lambda i: (0, 0)),
            ],
            out_specs=pl.BlockSpec((1, hpwp, cout), lambda i: (i, 0, 0)),
        ),
        compiler_params=pltpu.CompilerParams(dimension_semantics=("parallel",)),
        cost_estimate=pl.CostEstimate(
            flops=2 * n * m_out * cin * cout * 9, transcendentals=0,
            bytes_accessed=2 * n * hpwp * (cin + cout) + 2 * 9 * cin * cout),
    )(xf, w9, b, mask)


def pallas_res_block_flat(xf, w3, w1, mask, *, H, W, last_relu):
    n, hpwp, c = xf.shape
    cr = w3.shape[-1]
    m_out = mask.shape[0]
    kern = functools.partial(_res_block_flat_kernel, H=H, W=W, last_relu=last_relu)
    return pl.pallas_call(
        kern,
        out_shape=jax.ShapeDtypeStruct((n, hpwp, c), jnp.bfloat16),
        grid_spec=pltpu.PrefetchScalarGridSpec(
            num_scalar_prefetch=0,
            grid=(n,),
            in_specs=[
                pl.BlockSpec((1, hpwp, c), lambda i: (i, 0, 0)),
                pl.BlockSpec((9, c, cr), lambda i: (0, 0, 0)),
                pl.BlockSpec((cr, c), lambda i: (0, 0)),
                pl.BlockSpec((m_out, 1), lambda i: (0, 0)),
            ],
            out_specs=pl.BlockSpec((1, hpwp, c), lambda i: (i, 0, 0)),
        ),
        compiler_params=pltpu.CompilerParams(dimension_semantics=("parallel",)),
        cost_estimate=pl.CostEstimate(
            flops=2 * n * m_out * (9 * c * cr + cr * c), transcendentals=0,
            bytes_accessed=4 * n * hpwp * c + 2 * (9 * c * cr + cr * c)),
    )(xf, w3, w1, mask)


# ------------------------------- JAX glue ----------------------------------


def im2col(x, k, stride, pad):
    """x: (N,H,W,C) NHWC -> patches (N*Ho*Wo, k*k*C), flatten order (kh, kw, cin)."""
    N, H, W, C = x.shape
    xp = jnp.pad(x, ((0, 0), (pad, pad), (pad, pad), (0, 0)))
    Ho = (H + 2 * pad - k) // stride + 1
    Wo = (W + 2 * pad - k) // stride + 1
    cols = []
    for i in range(k):
        for j in range(k):
            cols.append(xp[:, i:i + stride * Ho:stride, j:j + stride * Wo:stride, :])
    patches = jnp.stack(cols, axis=3)                     # (N, Ho, Wo, k*k, C)
    return patches.reshape(N * Ho * Wo, k * k * C), (N, Ho, Wo)


def init_encoder_params(key, in_channels, num_hiddens, num_residual_layers,
                        num_residual_hiddens):
    # channels padded to multiples of 128 -> lane-dense stores / full MXU columns
    c1 = _round_up(num_hiddens // 2, 128)
    c2 = _round_up(num_hiddens, 128)
    cr = _round_up(num_residual_hiddens, 128)

    keys = jax.random.split(key, 6 + 2 * num_residual_layers)
    it = iter(keys)

    def conv_w(k_, ksz, cin, cout, cin_p, cout_p):
        fan_in = ksz * ksz * cin
        w = jax.random.normal(k_, (ksz, ksz, cin, cout), jnp.float32) / math.sqrt(fan_in)
        # zero-pad channels; padded lanes are provably 0 through the whole net
        return jnp.pad(w, ((0, 0), (0, 0), (0, cin_p - cin), (0, cout_p - cout)))

    def bias(k_, cout, cout_p):
        b = jax.random.normal(k_, (1, cout), jnp.float32) * 0.01
        return jnp.pad(b, ((0, 0), (0, cout_p - cout)))   # padded lanes = 0 (required)

    params = {
        "w1": conv_w(next(it), 4, in_channels, num_hiddens // 2, in_channels, c1
                     ).reshape(4 * 4 * in_channels, c1).astype(jnp.bfloat16),
        "b1": bias(next(it), num_hiddens // 2, c1),
        "w2": conv_w(next(it), 4, num_hiddens // 2, num_hiddens, c1, c2
                     ).reshape(4 * 4 * c1, c2).astype(jnp.bfloat16),
        "b2": bias(next(it), num_hiddens, c2),
        "w3": conv_w(next(it), 3, num_hiddens, num_hiddens, c2, c2
                     ).reshape(3 * 3, c2, c2).astype(jnp.bfloat16),
        "b3": bias(next(it), num_hiddens, c2),
        "res": [],
    }
    for _ in range(num_residual_layers):   # bias=False convs -> no bias params at all
        params["res"].append({
            "w3": conv_w(next(it), 3, num_hiddens, num_residual_hiddens, c2, cr
                         ).reshape(3 * 3, c2, cr).astype(jnp.bfloat16),
            "w1": conv_w(next(it), 1, num_residual_hiddens, num_hiddens, cr, c2
                         ).reshape(cr, c2).astype(jnp.bfloat16),
        })
    return params


def encoder_forward(x_nchw, params, *, num_hiddens, num_residual_layers):
    assert num_residual_layers >= 1
    x = jnp.transpose(x_nchw, (0, 2, 3, 1)).astype(jnp.bfloat16)   # NCHW -> NHWC

    # conv_1: 4x4, stride 2, pad 1, ReLU (fused into the gridded matmul)
    p, (n, h, w) = im2col(x, 4, 2, 1)
    x = pallas_matmul_bias_relu(p, params["w1"], params["b1"]).reshape(n, h, w, -1)

    # conv_2: 4x4, stride 2, pad 1, ReLU
    p, (n, h, w) = im2col(x, 4, 2, 1)
    x = pallas_matmul_bias_relu(p, params["w2"], params["b2"]).reshape(n, h, w, -1)

    # switch to flattened zero-padded layout (N, (h+2)*(w+2), C); from here on every
    # layer reads and writes this layout once, with no XLA-side data movement.
    hp, wp = h + 2, w + 2
    xf = jnp.pad(x, ((0, 0), (1, 1), (1, 1), (0, 0))).reshape(n, hp * wp, -1)
    m_out = (h - 1) * wp + w
    mask = ((jnp.arange(m_out) % wp) < w).astype(jnp.float32).reshape(m_out, 1)

    # conv_3: 3x3, stride 1, pad 1, no activation (im2col fused in-kernel)
    xf = pallas_conv3_flat(xf, params["w3"], params["b3"], mask, H=h, W=w)

    # Residual stack: x = x + Conv1x1(ReLU(Conv3x3(ReLU(x)))); final ReLU fused
    # into the last layer's kernel.  One pallas_call per layer.
    for li in range(num_residual_layers):
        layer = params["res"][li]
        xf = pallas_res_block_flat(xf, layer["w3"], layer["w1"], mask, H=h, W=w,
                                   last_relu=(li == num_residual_layers - 1))

    # drop the spatial padding and the padded channels, back to NCHW f32
    y = xf.reshape(n, hp, wp, -1)[:, 1:h + 1, 1:w + 1, :num_hiddens]
    return jnp.transpose(y, (0, 3, 1, 2)).astype(jnp.float32)


# --------------------------------- main -------------------------------------


if __name__ == "__main__":
    key = jax.random.PRNGKey(0)
    k_in, k_p = jax.random.split(key)

    batch, in_channels, hsize = 2, 4, 16
    num_hiddens, num_residual_layers, num_residual_hiddens = 32, 2, 8

    x = jax.random.normal(k_in, (batch, in_channels, hsize, hsize), jnp.float32)
    params = init_encoder_params(k_p, in_channels, num_hiddens,
                                 num_residual_layers, num_residual_hiddens)

    fwd = jax.jit(functools.partial(encoder_forward,
                                    num_hiddens=num_hiddens,
                                    num_residual_layers=num_residual_layers))
    out = fwd(x, params)
    jax.block_until_ready(out)

    assert out.shape == (batch, num_hiddens, hsize // 4, hsize // 4), out.shape
    assert out.dtype == jnp.float32
    print("KERNEL_OK")
</pallas_src>

<mosaic_0001>
module attributes {stable_mosaic.version = 11 : i64} {
  func.func @_mm_bias_relu_kernel(%arg0: i32, %arg1: memref<128x64xbf16, #tpu.memory_space<vmem>>, %arg2: memref<64x128xbf16, #tpu.memory_space<vmem>>, %arg3: memref<1x128xf32, #tpu.memory_space<vmem>>, %arg4: memref<128x128xbf16, #tpu.memory_space<vmem>>) attributes {dimension_semantics = [#tpu.dimension_semantics<parallel>], iteration_bounds = array<i64: 1>, scalar_prefetch = 0 : i64, scratch_operands = 0 : i64, tpu.core_type = #tpu.core_type<tc>, window_params = [{transform_indices = @transform_0, window_bounds = array<i64: 128, 64>}, {pipeline_mode = #tpu.pipeline_mode<synchronous>, transform_indices = @transform_1, window_bounds = array<i64: 64, 128>}, {pipeline_mode = #tpu.pipeline_mode<synchronous>, transform_indices = @transform_2, window_bounds = array<i64: 1, 128>}, {transform_indices = @transform_3, window_bounds = array<i64: 128, 128>}]} {
    %c0 = arith.constant 0 : index
    %c0_0 = arith.constant 0 : index
    %0 = vector.load %arg1[%c0, %c0_0] : memref<128x64xbf16, #tpu.memory_space<vmem>>, vector<128x64xbf16>
    %c0_1 = arith.constant 0 : index
    %c0_2 = arith.constant 0 : index
    %1 = vector.load %arg2[%c0_1, %c0_2] : memref<64x128xbf16, #tpu.memory_space<vmem>>, vector<64x128xbf16>
    %cst = arith.constant dense<0.000000e+00> : vector<128x128xf32>
    %2 = tpu.matmul %0, %1, %cst {dimension_numbers = #tpu.dot_dimension_numbers<[1], [0], [0], [1], [0, 0, 1, 1], [], []>} : vector<128x64xbf16>, vector<64x128xbf16>, vector<128x128xf32> -> vector<128x128xf32>
    %c0_3 = arith.constant 0 : index
    %c0_4 = arith.constant 0 : index
    %3 = vector.load %arg3[%c0_3, %c0_4] : memref<1x128xf32, #tpu.memory_space<vmem>>, vector<1x128xf32>
    %4 = vector.broadcast %3 : vector<1x128xf32> to vector<128x128xf32>
    %5 = arith.addf %2, %4 : vector<128x128xf32>
    %cst_5 = arith.constant 0.000000e+00 : f32
    %6 = vector.broadcast %cst_5 : f32 to vector<128x128xf32>
    %7 = arith.maximumf %5, %6 : vector<128x128xf32>
    %8 = arith.truncf %7 : vector<128x128xf32> to vector<128x128xbf16>
    %c0_6 = arith.constant 0 : index
    %c0_7 = arith.constant 0 : index
    %9 = vector.load %arg4[%c0_6, %c0_7] : memref<128x128xbf16, #tpu.memory_space<vmem>>, vector<128x128xbf16>
    tpu.vector_store %arg4[%c0_6, %c0_7], %8 {strides = array<i32>} : memref<128x128xbf16, #tpu.memory_space<vmem>>, vector<128x128xbf16>,
    return
  }
  func.func @transform_0(%arg0: i32) -> (i32, i32) {
    %c0_i32 = arith.constant 0 : i32
    %c0_i32_0 = arith.constant 0 : i32
    return %arg0, %c0_i32 : i32, i32
  }
  func.func @transform_1(%arg0: i32) -> (i32, i32) {
    %c0_i32 = arith.constant 0 : i32
    %c0_i32_0 = arith.constant 0 : i32
    %c0_i32_1 = arith.constant 0 : i32
    return %c0_i32, %c0_i32_0 : i32, i32
  }
  func.func @transform_2(%arg0: i32) -> (i32, i32) {
    %c0_i32 = arith.constant 0 : i32
    %c0_i32_0 = arith.constant 0 : i32
    %c0_i32_1 = arith.constant 0 : i32
    return %c0_i32, %c0_i32_0 : i32, i32
  }
  func.func @transform_3(%arg0: i32) -> (i32, i32) {
    %c0_i32 = arith.constant 0 : i32
    %c0_i32_0 = arith.constant 0 : i32
    return %arg0, %c0_i32 : i32, i32
  }
}

module attributes {stable_mosaic.version = 11 : i64} {
  func.func @_conv3_flat_kernel(%arg0: i32, %arg1: memref<1x36x128xbf16, #tpu.memory_space<vmem>>, %arg2: memref<9x128x128xbf16, #tpu.memory_space<vmem>>, %arg3: memref<1x128xf32, #tpu.memory_space<vmem>>, %arg4: memref<22x1xf32, #tpu.memory_space<vmem>>, %arg5: memref<1x36x128xbf16, #tpu.memory_space<vmem>>) attributes {dimension_semantics = [#tpu.dimension_semantics<parallel>], iteration_bounds = array<i64: 2>, scalar_prefetch = 0 : i64, scratch_operands = 0 : i64, tpu.core_type = #tpu.core_type<tc>, window_params = [{transform_indices = @transform_0, window_bounds = array<i64: 1, 36, 128>}, {pipeline_mode = #tpu.pipeline_mode<synchronous>, transform_indices = @transform_1, window_bounds = array<i64: 9, 128, 128>}, {pipeline_mode = #tpu.pipeline_mode<synchronous>, transform_indices = @transform_2, window_bounds = array<i64: 1, 128>}, {pipeline_mode = #tpu.pipeline_mode<synchronous>, transform_indices = @transform_3, window_bounds = array<i64: 22, 1>}, {transform_indices = @transform_4, window_bounds = array<i64: 1, 36, 128>}]} {
    %c0 = arith.constant 0 : index
    %c0_0 = arith.constant 0 : index
    %c0_1 = arith.constant 0 : index
    %0 = vector.load %arg1[%c0, %c0_0, %c0_1] : memref<1x36x128xbf16, #tpu.memory_space<vmem>>, vector<1x36x128xbf16>
    %1 = vector.shape_cast %0 : vector<1x36x128xbf16> to vector<36x128xbf16>
    %cst = arith.constant 0.000000e+00 : f32
    %2 = vector.broadcast %cst : f32 to vector<22x128xf32>
    %3 = vector.extract_strided_slice %1 {offsets = [0, 0], sizes = [22, 128], strides = [1, 1]} : vector<36x128xbf16> to vector<22x128xbf16>
    %c0_2 = arith.constant 0 : index
    %c0_3 = arith.constant 0 : index
    %c0_4 = arith.constant 0 : index
    %4 = vector.load %arg2[%c0_2, %c0_3, %c0_4] : memref<9x128x128xbf16, #tpu.memory_space<vmem>>, vector<1x128x128xbf16>
    %5 = vector.shape_cast %4 : vector<1x128x128xbf16> to vector<128x128xbf16>
    %cst_5 = arith.constant dense<0.000000e+00> : vector<22x128xf32>
    %6 = tpu.matmul %3, %5, %cst_5 {dimension_numbers = #tpu.dot_dimension_numbers<[1], [0], [0], [1], [0, 0, 1, 1], [], []>} : vector<22x128xbf16>, vector<128x128xbf16>, vector<22x128xf32> -> vector<22x128xf32>
    %7 = arith.addf %2, %6 : vector<22x128xf32>
    %8 = vector.extract_strided_slice %1 {offsets = [1, 0], sizes = [22, 128], strides = [1, 1]} : vector<36x128xbf16> to vector<22x128xbf16>
    %c1 = arith.constant 1 : index
    %c0_6 = arith.constant 0 : index
    %c0_7 = arith.constant 0 : index
    %9 = vector.load %arg2[%c1, %c0_6, %c0_7] : memref<9x128x128xbf16, #tpu.memory_space<vmem>>, vector<1x128x128xbf16>
    %10 = vector.shape_cast %9 : vector<1x128x128xbf16> to vector<128x128xbf16>
    %cst_8 = arith.constant dense<0.000000e+00> : vector<22x128xf32>
    %11 = tpu.matmul %8, %10, %cst_8 {dimension_numbers = #tpu.dot_dimension_numbers<[1], [0], [0], [1], [0, 0, 1, 1], [], []>} : vector<22x128xbf16>, vector<128x128xbf16>, vector<22x128xf32> -> vector<22x128xf32>
    %12 = arith.addf %7, %11 : vector<22x128xf32>
    %13 = vector.extract_strided_slice %1 {offsets = [2, 0], sizes = [22, 128], strides = [1, 1]} : vector<36x128xbf16> to vector<22x128xbf16>
    %c2 = arith.constant 2 : index
    %c0_9 = arith.constant 0 : index
    %c0_10 = arith.constant 0 : index
    %14 = vector.load %arg2[%c2, %c0_9, %c0_10] : memref<9x128x128xbf16, #tpu.memory_space<vmem>>, vector<1x128x128xbf16>
    %15 = vector.shape_cast %14 : vector<1x128x128xbf16> to vector<128x128xbf16>
    %cst_11 = arith.constant dense<0.000000e+00> : vector<22x128xf32>
    %16 = tpu.matmul %13, %15, %cst_11 {dimension_numbers = #tpu.dot_dimension_numbers<[1], [0], [0], [1], [0, 0, 1, 1], [], []>} : vector<22x128xbf16>, vector<128x128xbf16>, vector<22x128xf32> -> vector<22x128xf32>
    %17 = arith.addf %12, %16 : vector<22x128xf32>
    %18 = vector.extract_strided_slice %1 {offsets = [6, 0], sizes = [22, 128], strides = [1, 1]} : vector<36x128xbf16> to vector<22x128xbf16>
    %c3 = arith.constant 3 : index
    %c0_12 = arith.constant 0 : index
    %c0_13 = arith.constant 0 : index
    %19 = vector.load %arg2[%c3, %c0_12, %c0_13] : memref<9x128x128xbf16, #tpu.memory_space<vmem>>, vector<1x128x128xbf16>
    %20 = vector.shape_cast %19 : vector<1x128x128xbf16> to vector<128x128xbf16>
    %cst_14 = arith.constant dense<0.000000e+00> : vector<22x128xf32>
    %21 = tpu.matmul %18, %20, %cst_14 {dimension_numbers = #tpu.dot_dimension_numbers<[1], [0], [0], [1], [0, 0, 1, 1], [], []>} : vector<22x128xbf16>, vector<128x128xbf16>, vector<22x128xf32> -> vector<22x128xf32>
    %22 = arith.addf %17, %21 : vector<22x128xf32>
    %23 = vector.extract_strided_slice %1 {offsets = [7, 0], sizes = [22, 128], strides = [1, 1]} : vector<36x128xbf16> to vector<22x128xbf16>
    %c4 = arith.constant 4 : index
    %c0_15 = arith.constant 0 : index
    %c0_16 = arith.constant 0 : index
    %24 = vector.load %arg2[%c4, %c0_15, %c0_16] : memref<9x128x128xbf16, #tpu.memory_space<vmem>>, vector<1x128x128xbf16>
    %25 = vector.shape_cast %24 : vector<1x128x128xbf16> to vector<128x128xbf16>
    %cst_17 = arith.constant dense<0.000000e+00> : vector<22x128xf32>
    %26 = tpu.matmul %23, %25, %cst_17 {dimension_numbers = #tpu.dot_dimension_numbers<[1], [0], [0], [1], [0, 0, 1, 1], [], []>} : vector<22x128xbf16>, vector<128x128xbf16>, vector<22x128xf32> -> vector<22x128xf32>
    %27 = arith.addf %22, %26 : vector<22x128xf32>
    %28 = vector.extract_strided_slice %1 {offsets = [8, 0], sizes = [22, 128], strides = [1, 1]} : vector<36x128xbf16> to vector<22x128xbf16>
    %c5 = arith.constant 5 : index
    %c0_18 = arith.constant 0 : index
    %c0_19 = arith.constant 0 : index
    %29 = vector.load %arg2[%c5, %c0_18, %c0_19] : memref<9x128x128xbf16, #tpu.memory_space<vmem>>, vector<1x128x128xbf16>
    %30 = vector.shape_cast %29 : vector<1x128x128xbf16> to vector<128x128xbf16>
    %cst_20 = arith.constant dense<0.000000e+00> : vector<22x128xf32>
    %31 = tpu.matmul %28, %30, %cst_20 {dimension_numbers = #tpu.dot_dimension_numbers<[1], [0], [0], [1], [0, 0, 1, 1], [], []>} : vector<22x128xbf16>, vector<128x128xbf16>, vector<22x128xf32> -> vector<22x128xf32>
    %32 = arith.addf %27, %31 : vector<22x128xf32>
    %33 = vector.extract_strided_slice %1 {offsets = [12, 0], sizes = [22, 128], strides = [1, 1]} : vector<36x128xbf16> to vector<22x128xbf16>
    %c6 = arith.constant 6 : index
    %c0_21 = arith.constant 0 : index
    %c0_22 = arith.constant 0 : index
    %34 = vector.load %arg2[%c6, %c0_21, %c0_22] : memref<9x128x128xbf16, #tpu.memory_space<vmem>>, vector<1x128x128xbf16>
    %35 = vector.shape_cast %34 : vector<1x128x128xbf16> to vector<128x128xbf16>
    %cst_23 = arith.constant dense<0.000000e+00> : vector<22x128xf32>
    %36 = tpu.matmul %33, %35, %cst_23 {dimension_numbers = #tpu.dot_dimension_numbers<[1], [0], [0], [1], [0, 0, 1, 1], [], []>} : vector<22x128xbf16>, vector<128x128xbf16>, vector<22x128xf32> -> vector<22x128xf32>
    %37 = arith.addf %32, %36 : vector<22x128xf32>
    %38 = vector.extract_strided_slice %1 {offsets = [13, 0], sizes = [22, 128], strides = [1, 1]} : vector<36x128xbf16> to vector<22x128xbf16>
    %c7 = arith.constant 7 : index
    %c0_24 = arith.constant 0 : index
    %c0_25 = arith.constant 0 : index
    %39 = vector.load %arg2[%c7, %c0_24, %c0_25] : memref<9x128x128xbf16, #tpu.memory_space<vmem>>, vector<1x128x128xbf16>
    %40 = vector.shape_cast %39 : vector<1x128x128xbf16> to vector<128x128xbf16>
    %cst_26 = arith.constant dense<0.000000e+00> : vector<22x128xf32>
    %41 = tpu.matmul %38, %40, %cst_26 {dimension_numbers = #tpu.dot_dimension_numbers<[1], [0], [0], [1], [0, 0, 1, 1], [], []>} : vector<22x128xbf16>, vector<128x128xbf16>, vector<22x128xf32> -> vector<22x128xf32>
    %42 = arith.addf %37, %41 : vector<22x128xf32>
    %43 = vector.extract_strided_slice %1 {offsets = [14, 0], sizes = [22, 128], strides = [1, 1]} : vector<36x128xbf16> to vector<22x128xbf16>
    %c8 = arith.constant 8 : index
    %c0_27 = arith.constant 0 : index
    %c0_28 = arith.constant 0 : index
    %44 = vector.load %arg2[%c8, %c0_27, %c0_28] : memref<9x128x128xbf16, #tpu.memory_space<vmem>>, vector<1x128x128xbf16>
    %45 = vector.shape_cast %44 : vector<1x128x128xbf16> to vector<128x128xbf16>
    %cst_29 = arith.constant dense<0.000000e+00> : vector<22x128xf32>
    %46 = tpu.matmul %43, %45, %cst_29 {dimension_numbers = #tpu.dot_dimension_numbers<[1], [0], [0], [1], [0, 0, 1, 1], [], []>} : vector<22x128xbf16>, vector<128x128xbf16>, vector<22x128xf32> -> vector<22x128xf32>
    %47 = arith.addf %42, %46 : vector<22x128xf32>
    %c0_30 = arith.constant 0 : index
    %c0_31 = arith.constant 0 : index
    %48 = vector.load %arg3[%c0_30, %c0_31] : memref<1x128xf32, #tpu.memory_space<vmem>>, vector<1x128xf32>
    %49 = vector.broadcast %48 : vector<1x128xf32> to vector<22x128xf32>
    %50 = arith.addf %47, %49 : vector<22x128xf32>
    %c0_32 = arith.constant 0 : index
    %c0_33 = arith.constant 0 : index
    %51 = vector.load %arg4[%c0_32, %c0_33] : memref<22x1xf32, #tpu.memory_space<vmem>>, vector<22x1xf32>
    %52 = vector.broadcast %51 : vector<22x1xf32> to vector<22x128xf32>
    %53 = arith.mulf %50, %52 : vector<22x128xf32>
    %cst_34 = arith.constant 0.000000e+00 : bf16
    %54 = vector.broadcast %cst_34 : bf16 to vector<7x128xbf16>
    %c0_35 = arith.constant 0 : index
    %c0_36 = arith.constant 0 : index
    %c0_37 = arith.constant 0 : index
    %55 = vector.load %arg5[%c0_35, %c0_36, %c0_37] : memref<1x36x128xbf16, #tpu.memory_space<vmem>>, vector<1x7x128xbf16>
    %56 = vector.shape_cast %55 : vector<1x7x128xbf16> to vector<7x128xbf16>
    %57 = vector.shape_cast %54 : vector<7x128xbf16> to vector<1x7x128xbf16>
    tpu.vector_store %arg5[%c0_35, %c0_36, %c0_37], %57 {strides = array<i32>} : memref<1x36x128xbf16, #tpu.memory_space<vmem>>, vector<1x7x128xbf16>,
    %58 = arith.truncf %53 : vector<22x128xf32> to vector<22x128xbf16>
    %c0_38 = arith.constant 0 : index
    %c7_39 = arith.constant 7 : index
    %c0_40 = arith.constant 0 : index
    %59 = vector.load %arg5[%c0_38, %c7_39, %c0_40] : memref<1x36x128xbf16, #tpu.memory_space<vmem>>, vector<1x22x128xbf16>
    %60 = vector.shape_cast %59 : vector<1x22x128xbf16> to vector<22x128xbf16>
    %61 = vector.shape_cast %58 : vector<22x128xbf16> to vector<1x22x128xbf16>
    tpu.vector_store %arg5[%c0_38, %c7_39, %c0_40], %61 {strides = array<i32>} : memref<1x36x128xbf16, #tpu.memory_space<vmem>>, vector<1x22x128xbf16>,
    %cst_41 = arith.constant 0.000000e+00 : bf16
    %62 = vector.broadcast %cst_41 : bf16 to vector<7x128xbf16>
    %c0_42 = arith.constant 0 : index
    %c29 = arith.constant 29 : index
    %c0_43 = arith.constant 0 : index
    %63 = vector.load %arg5[%c0_42, %c29, %c0_43] : memref<1x36x128xbf16, #tpu.memory_space<vmem>>, vector<1x7x128xbf16>
    %64 = vector.shape_cast %63 : vector<1x7x128xbf16> to vector<7x128xbf16>
    %65 = vector.shape_cast %62 : vector<7x128xbf16> to vector<1x7x128xbf16>
    tpu.vector_store %arg5[%c0_42, %c29, %c0_43], %65 {strides = array<i32>} : memref<1x36x128xbf16, #tpu.memory_space<vmem>>, vector<1x7x128xbf16>,
    return
  }
  func.func @transform_0(%arg0: i32) -> (i32, i32, i32) {
    %c0_i32 = arith.constant 0 : i32
    %c0_i32_0 = arith.constant 0 : i32
    %c0_i32_1 = arith.constant 0 : i32
    return %arg0, %c0_i32, %c0_i32_0 : i32, i32, i32
  }
  func.func @transform_1(%arg0: i32) -> (i32, i32, i32) {
    %c0_i32 = arith.constant 0 : i32
    %c0_i32_0 = arith.constant 0 : i32
    %c0_i32_1 = arith.constant 0 : i32
    %c0_i32_2 = arith.constant 0 : i32
    return %c0_i32, %c0_i32_0, %c0_i32_1 : i32, i32, i32
  }
  func.func @transform_2(%arg0: i32) -> (i32, i32) {
    %c0_i32 = arith.constant 0 : i32
    %c0_i32_0 = arith.constant 0 : i32
    %c0_i32_1 = arith.constant 0 : i32
    return %c0_i32, %c0_i32_0 : i32, i32
  }
  func.func @transform_3(%arg0: i32) -> (i32, i32) {
    %c0_i32 = arith.constant 0 : i32
    %c0_i32_0 = arith.constant 0 : i32
    %c0_i32_1 = arith.constant 0 : i32
    return %c0_i32, %c0_i32_0 : i32, i32
  }
  func.func @transform_4(%arg0: i32) -> (i32, i32, i32) {
    %c0_i32 = arith.constant 0 : i32
    %c0_i32_0 = arith.constant 0 : i32
    %c0_i32_1 = arith.constant 0 : i32
    return %arg0, %c0_i32, %c0_i32_0 : i32, i32, i32
  }
}

module attributes {stable_mosaic.version = 11 : i64} {
  func.func @_mm_bias_relu_kernel(%arg0: i32, %arg1: memref<32x2048xbf16, #tpu.memory_space<vmem>>, %arg2: memref<2048x128xbf16, #tpu.memory_space<vmem>>, %arg3: memref<1x128xf32, #tpu.memory_space<vmem>>, %arg4: memref<32x128xbf16, #tpu.memory_space<vmem>>) attributes {dimension_semantics = [#tpu.dimension_semantics<parallel>], iteration_bounds = array<i64: 1>, scalar_prefetch = 0 : i64, scratch_operands = 0 : i64, tpu.core_type = #tpu.core_type<tc>, window_params = [{transform_indices = @transform_0, window_bounds = array<i64: 32, 2048>}, {pipeline_mode = #tpu.pipeline_mode<synchronous>, transform_indices = @transform_1, window_bounds = array<i64: 2048, 128>}, {pipeline_mode = #tpu.pipeline_mode<synchronous>, transform_indices = @transform_2, window_bounds = array<i64: 1, 128>}, {transform_indices = @transform_3, window_bounds = array<i64: 32, 128>}]} {
    %c0 = arith.constant 0 : index
    %c0_0 = arith.constant 0 : index
    %0 = vector.load %arg1[%c0, %c0_0] : memref<32x2048xbf16, #tpu.memory_space<vmem>>, vector<32x2048xbf16>
    %c0_1 = arith.constant 0 : index
    %c0_2 = arith.constant 0 : index
    %1 = vector.load %arg2[%c0_1, %c0_2] : memref<2048x128xbf16, #tpu.memory_space<vmem>>, vector<2048x128xbf16>
    %cst = arith.constant dense<0.000000e+00> : vector<32x128xf32>
    %2 = tpu.matmul %0, %1, %cst {dimension_numbers = #tpu.dot_dimension_numbers<[1], [0], [0], [1], [0, 0, 1, 1], [], []>} : vector<32x2048xbf16>, vector<2048x128xbf16>, vector<32x128xf32> -> vector<32x128xf32>
    %c0_3 = arith.constant 0 : index
    %c0_4 = arith.constant 0 : index
    %3 = vector.load %arg3[%c0_3, %c0_4] : memref<1x128xf32, #tpu.memory_space<vmem>>, vector<1x128xf32>
    %4 = vector.broadcast %3 : vector<1x128xf32> to vector<32x128xf32>
    %5 = arith.addf %2, %4 : vector<32x128xf32>
    %cst_5 = arith.constant 0.000000e+00 : f32
    %6 = vector.broadcast %cst_5 : f32 to vector<32x128xf32>
    %7 = arith.maximumf %5, %6 : vector<32x128xf32>
    %8 = arith.truncf %7 : vector<32x128xf32> to vector<32x128xbf16>
    %c0_6 = arith.constant 0 : index
    %c0_7 = arith.constant 0 : index
    %9 = vector.load %arg4[%c0_6, %c0_7] : memref<32x128xbf16, #tpu.memory_space<vmem>>, vector<32x128xbf16>
    tpu.vector_store %arg4[%c0_6, %c0_7], %8 {strides = array<i32>} : memref<32x128xbf16, #tpu.memory_space<vmem>>, vector<32x128xbf16>,
    return
  }
  func.func @transform_0(%arg0: i32) -> (i32, i32) {
    %c0_i32 = arith.constant 0 : i32
    %c0_i32_0 = arith.constant 0 : i32
    return %arg0, %c0_i32 : i32, i32
  }
  func.func @transform_1(%arg0: i32) -> (i32, i32) {
    %c0_i32 = arith.constant 0 : i32
    %c0_i32_0 = arith.constant 0 : i32
    %c0_i32_1 = arith.constant 0 : i32
    return %c0_i32, %c0_i32_0 : i32, i32
  }
  func.func @transform_2(%arg0: i32) -> (i32, i32) {
    %c0_i32 = arith.constant 0 : i32
    %c0_i32_0 = arith.constant 0 : i32
    %c0_i32_1 = arith.constant 0 : i32
    return %c0_i32, %c0_i32_0 : i32, i32
  }
  func.func @transform_3(%arg0: i32) -> (i32, i32) {
    %c0_i32 = arith.constant 0 : i32
    %c0_i32_0 = arith.constant 0 : i32
    return %arg0, %c0_i32 : i32, i32
  }
}

module attributes {stable_mosaic.version = 11 : i64} {
  func.func @_res_block_flat_kernel(%arg0: i32, %arg1: memref<1x36x128xbf16, #tpu.memory_space<vmem>>, %arg2: memref<9x128x128xbf16, #tpu.memory_space<vmem>>, %arg3: memref<128x128xbf16, #tpu.memory_space<vmem>>, %arg4: memref<22x1xf32, #tpu.memory_space<vmem>>, %arg5: memref<1x36x128xbf16, #tpu.memory_space<vmem>>) attributes {dimension_semantics = [#tpu.dimension_semantics<parallel>], iteration_bounds = array<i64: 2>, scalar_prefetch = 0 : i64, scratch_operands = 0 : i64, tpu.core_type = #tpu.core_type<tc>, window_params = [{transform_indices = @transform_0, window_bounds = array<i64: 1, 36, 128>}, {pipeline_mode = #tpu.pipeline_mode<synchronous>, transform_indices = @transform_1, window_bounds = array<i64: 9, 128, 128>}, {pipeline_mode = #tpu.pipeline_mode<synchronous>, transform_indices = @transform_2, window_bounds = array<i64: 128, 128>}, {pipeline_mode = #tpu.pipeline_mode<synchronous>, transform_indices = @transform_3, window_bounds = array<i64: 22, 1>}, {transform_indices = @transform_4, window_bounds = array<i64: 1, 36, 128>}]} {
    %c0 = arith.constant 0 : index
    %c0_0 = arith.constant 0 : index
    %c0_1 = arith.constant 0 : index
    %0 = vector.load %arg1[%c0, %c0_0, %c0_1] : memref<1x36x128xbf16, #tpu.memory_space<vmem>>, vector<1x36x128xbf16>
    %1 = vector.shape_cast %0 : vector<1x36x128xbf16> to vector<36x128xbf16>
    %cst = arith.constant 0.000000e+00 : bf16
    %2 = vector.broadcast %cst : bf16 to vector<36x128xbf16>
    %3 = arith.maximumf %1, %2 : vector<36x128xbf16>
    %cst_2 = arith.constant 0.000000e+00 : f32
    %4 = vector.broadcast %cst_2 : f32 to vector<22x128xf32>
    %5 = vector.extract_strided_slice %3 {offsets = [0, 0], sizes = [22, 128], strides = [1, 1]} : vector<36x128xbf16> to vector<22x128xbf16>
    %c0_3 = arith.constant 0 : index
    %c0_4 = arith.constant 0 : index
    %c0_5 = arith.constant 0 : index
    %6 = vector.load %arg2[%c0_3, %c0_4, %c0_5] : memref<9x128x128xbf16, #tpu.memory_space<vmem>>, vector<1x128x128xbf16>
    %7 = vector.shape_cast %6 : vector<1x128x128xbf16> to vector<128x128xbf16>
    %cst_6 = arith.constant dense<0.000000e+00> : vector<22x128xf32>
    %8 = tpu.matmul %5, %7, %cst_6 {dimension_numbers = #tpu.dot_dimension_numbers<[1], [0], [0], [1], [0, 0, 1, 1], [], []>} : vector<22x128xbf16>, vector<128x128xbf16>, vector<22x128xf32> -> vector<22x128xf32>
    %9 = arith.addf %4, %8 : vector<22x128xf32>
    %10 = vector.extract_strided_slice %3 {offsets = [1, 0], sizes = [22, 128], strides = [1, 1]} : vector<36x128xbf16> to vector<22x128xbf16>
    %c1 = arith.constant 1 : index
    %c0_7 = arith.constant 0 : index
    %c0_8 = arith.constant 0 : index
    %11 = vector.load %arg2[%c1, %c0_7, %c0_8] : memref<9x128x128xbf16, #tpu.memory_space<vmem>>, vector<1x128x128xbf16>
    %12 = vector.shape_cast %11 : vector<1x128x128xbf16> to vector<128x128xbf16>
    %cst_9 = arith.constant dense<0.000000e+00> : vector<22x128xf32>
    %13 = tpu.matmul %10, %12, %cst_9 {dimension_numbers = #tpu.dot_dimension_numbers<[1], [0], [0], [1], [0, 0, 1, 1], [], []>} : vector<22x128xbf16>, vector<128x128xbf16>, vector<22x128xf32> -> vector<22x128xf32>
    %14 = arith.addf %9, %13 : vector<22x128xf32>
    %15 = vector.extract_strided_slice %3 {offsets = [2, 0], sizes = [22, 128], strides = [1, 1]} : vector<36x128xbf16> to vector<22x128xbf16>
    %c2 = arith.constant 2 : index
    %c0_10 = arith.constant 0 : index
    %c0_11 = arith.constant 0 : index
    %16 = vector.load %arg2[%c2, %c0_10, %c0_11] : memref<9x128x128xbf16, #tpu.memory_space<vmem>>, vector<1x128x128xbf16>
    %17 = vector.shape_cast %16 : vector<1x128x128xbf16> to vector<128x128xbf16>
    %cst_12 = arith.constant dense<0.000000e+00> : vector<22x128xf32>
    %18 = tpu.matmul %15, %17, %cst_12 {dimension_numbers = #tpu.dot_dimension_numbers<[1], [0], [0], [1], [0, 0, 1, 1], [], []>} : vector<22x128xbf16>, vector<128x128xbf16>, vector<22x128xf32> -> vector<22x128xf32>
    %19 = arith.addf %14, %18 : vector<22x128xf32>
    %20 = vector.extract_strided_slice %3 {offsets = [6, 0], sizes = [22, 128], strides = [1, 1]} : vector<36x128xbf16> to vector<22x128xbf16>
    %c3 = arith.constant 3 : index
    %c0_13 = arith.constant 0 : index
    %c0_14 = arith.constant 0 : index
    %21 = vector.load %arg2[%c3, %c0_13, %c0_14] : memref<9x128x128xbf16, #tpu.memory_space<vmem>>, vector<1x128x128xbf16>
    %22 = vector.shape_cast %21 : vector<1x128x128xbf16> to vector<128x128xbf16>
    %cst_15 = arith.constant dense<0.000000e+00> : vector<22x128xf32>
    %23 = tpu.matmul %20, %22, %cst_15 {dimension_numbers = #tpu.dot_dimension_numbers<[1], [0], [0], [1], [0, 0, 1, 1], [], []>} : vector<22x128xbf16>, vector<128x128xbf16>, vector<22x128xf32> -> vector<22x128xf32>
    %24 = arith.addf %19, %23 : vector<22x128xf32>
    %25 = vector.extract_strided_slice %3 {offsets = [7, 0], sizes = [22, 128], strides = [1, 1]} : vector<36x128xbf16> to vector<22x128xbf16>
    %c4 = arith.constant 4 : index
    %c0_16 = arith.constant 0 : index
    %c0_17 = arith.constant 0 : index
    %26 = vector.load %arg2[%c4, %c0_16, %c0_17] : memref<9x128x128xbf16, #tpu.memory_space<vmem>>, vector<1x128x128xbf16>
    %27 = vector.shape_cast %26 : vector<1x128x128xbf16> to vector<128x128xbf16>
    %cst_18 = arith.constant dense<0.000000e+00> : vector<22x128xf32>
    %28 = tpu.matmul %25, %27, %cst_18 {dimension_numbers = #tpu.dot_dimension_numbers<[1], [0], [0], [1], [0, 0, 1, 1], [], []>} : vector<22x128xbf16>, vector<128x128xbf16>, vector<22x128xf32> -> vector<22x128xf32>
    %29 = arith.addf %24, %28 : vector<22x128xf32>
    %30 = vector.extract_strided_slice %3 {offsets = [8, 0], sizes = [22, 128], strides = [1, 1]} : vector<36x128xbf16> to vector<22x128xbf16>
    %c5 = arith.constant 5 : index
    %c0_19 = arith.constant 0 : index
    %c0_20 = arith.constant 0 : index
    %31 = vector.load %arg2[%c5, %c0_19, %c0_20] : memref<9x128x128xbf16, #tpu.memory_space<vmem>>, vector<1x128x128xbf16>
    %32 = vector.shape_cast %31 : vector<1x128x128xbf16> to vector<128x128xbf16>
    %cst_21 = arith.constant dense<0.000000e+00> : vector<22x128xf32>
    %33 = tpu.matmul %30, %32, %cst_21 {dimension_numbers = #tpu.dot_dimension_numbers<[1], [0], [0], [1], [0, 0, 1, 1], [], []>} : vector<22x128xbf16>, vector<128x128xbf16>, vector<22x128xf32> -> vector<22x128xf32>
    %34 = arith.addf %29, %33 : vector<22x128xf32>
    %35 = vector.extract_strided_slice %3 {offsets = [12, 0], sizes = [22, 128], strides = [1, 1]} : vector<36x128xbf16> to vector<22x128xbf16>
    %c6 = arith.constant 6 : index
    %c0_22 = arith.constant 0 : index
    %c0_23 = arith.constant 0 : index
    %36 = vector.load %arg2[%c6, %c0_22, %c0_23] : memref<9x128x128xbf16, #tpu.memory_space<vmem>>, vector<1x128x128xbf16>
    %37 = vector.shape_cast %36 : vector<1x128x128xbf16> to vector<128x128xbf16>
    %cst_24 = arith.constant dense<0.000000e+00> : vector<22x128xf32>
    %38 = tpu.matmul %35, %37, %cst_24 {dimension_numbers = #tpu.dot_dimension_numbers<[1], [0], [0], [1], [0, 0, 1, 1], [], []>} : vector<22x128xbf16>, vector<128x128xbf16>, vector<22x128xf32> -> vector<22x128xf32>
    %39 = arith.addf %34, %38 : vector<22x128xf32>
    %40 = vector.extract_strided_slice %3 {offsets = [13, 0], sizes = [22, 128], strides = [1, 1]} : vector<36x128xbf16> to vector<22x128xbf16>
    %c7 = arith.constant 7 : index
    %c0_25 = arith.constant 0 : index
    %c0_26 = arith.constant 0 : index
    %41 = vector.load %arg2[%c7, %c0_25, %c0_26] : memref<9x128x128xbf16, #tpu.memory_space<vmem>>, vector<1x128x128xbf16>
    %42 = vector.shape_cast %41 : vector<1x128x128xbf16> to vector<128x128xbf16>
    %cst_27 = arith.constant dense<0.000000e+00> : vector<22x128xf32>
    %43 = tpu.matmul %40, %42, %cst_27 {dimension_numbers = #tpu.dot_dimension_numbers<[1], [0], [0], [1], [0, 0, 1, 1], [], []>} : vector<22x128xbf16>, vector<128x128xbf16>, vector<22x128xf32> -> vector<22x128xf32>
    %44 = arith.addf %39, %43 : vector<22x128xf32>
    %45 = vector.extract_strided_slice %3 {offsets = [14, 0], sizes = [22, 128], strides = [1, 1]} : vector<36x128xbf16> to vector<22x128xbf16>
    %c8 = arith.constant 8 : index
    %c0_28 = arith.constant 0 : index
    %c0_29 = arith.constant 0 : index
    %46 = vector.load %arg2[%c8, %c0_28, %c0_29] : memref<9x128x128xbf16, #tpu.memory_space<vmem>>, vector<1x128x128xbf16>
    %47 = vector.shape_cast %46 : vector<1x128x128xbf16> to vector<128x128xbf16>
    %cst_30 = arith.constant dense<0.000000e+00> : vector<22x128xf32>
    %48 = tpu.matmul %45, %47, %cst_30 {dimension_numbers = #tpu.dot_dimension_numbers<[1], [0], [0], [1], [0, 0, 1, 1], [], []>} : vector<22x128xbf16>, vector<128x128xbf16>, vector<22x128xf32> -> vector<22x128xf32>
    %49 = arith.addf %44, %48 : vector<22x128xf32>
    %cst_31 = arith.constant 0.000000e+00 : f32
    %50 = vector.broadcast %cst_31 : f32 to vector<22x128xf32>
    %51 = arith.maximumf %49, %50 : vector<22x128xf32>
    %52 = arith.truncf %51 : vector<22x128xf32> to vector<22x128xbf16>
    %c0_32 = arith.constant 0 : index
    %c0_33 = arith.constant 0 : index
    %53 = vector.load %arg3[%c0_32, %c0_33] : memref<128x128xbf16, #tpu.memory_space<vmem>>, vector<128x128xbf16>
    %cst_34 = arith.constant dense<0.000000e+00> : vector<22x128xf32>
    %54 = tpu.matmul %52, %53, %cst_34 {dimension_numbers = #tpu.dot_dimension_numbers<[1], [0], [0], [1], [0, 0, 1, 1], [], []>} : vector<22x128xbf16>, vector<128x128xbf16>, vector<22x128xf32> -> vector<22x128xf32>
    %55 = vector.extract_strided_slice %1 {offsets = [7, 0], sizes = [22, 128], strides = [1, 1]} : vector<36x128xbf16> to vector<22x128xbf16>
    %56 = arith.extf %55 : vector<22x128xbf16> to vector<22x128xf32>
    %57 = arith.addf %54, %56 : vector<22x128xf32>
    %cst_35 = arith.constant 0.000000e+00 : f32
    %58 = vector.broadcast %cst_35 : f32 to vector<22x128xf32>
    %59 = arith.maximumf %57, %58 : vector<22x128xf32>
    %c0_36 = arith.constant 0 : index
    %c0_37 = arith.constant 0 : index
    %60 = vector.load %arg4[%c0_36, %c0_37] : memref<22x1xf32, #tpu.memory_space<vmem>>, vector<22x1xf32>
    %61 = vector.broadcast %60 : vector<22x1xf32> to vector<22x128xf32>
    %62 = arith.mulf %59, %61 : vector<22x128xf32>
    %cst_38 = arith.constant 0.000000e+00 : bf16
    %63 = vector.broadcast %cst_38 : bf16 to vector<7x128xbf16>
    %c0_39 = arith.constant 0 : index
    %c0_40 = arith.constant 0 : index
    %c0_41 = arith.constant 0 : index
    %64 = vector.load %arg5[%c0_39, %c0_40, %c0_41] : memref<1x36x128xbf16, #tpu.memory_space<vmem>>, vector<1x7x128xbf16>
    %65 = vector.shape_cast %64 : vector<1x7x128xbf16> to vector<7x128xbf16>
    %66 = vector.shape_cast %63 : vector<7x128xbf16> to vector<1x7x128xbf16>
    tpu.vector_store %arg5[%c0_39, %c0_40, %c0_41], %66 {strides = array<i32>} : memref<1x36x128xbf16, #tpu.memory_space<vmem>>, vector<1x7x128xbf16>,
    %67 = arith.truncf %62 : vector<22x128xf32> to vector<22x128xbf16>
    %c0_42 = arith.constant 0 : index
    %c7_43 = arith.constant 7 : index
    %c0_44 = arith.constant 0 : index
    %68 = vector.load %arg5[%c0_42, %c7_43, %c0_44] : memref<1x36x128xbf16, #tpu.memory_space<vmem>>, vector<1x22x128xbf16>
    %69 = vector.shape_cast %68 : vector<1x22x128xbf16> to vector<22x128xbf16>
    %70 = vector.shape_cast %67 : vector<22x128xbf16> to vector<1x22x128xbf16>
    tpu.vector_store %arg5[%c0_42, %c7_43, %c0_44], %70 {strides = array<i32>} : memref<1x36x128xbf16, #tpu.memory_space<vmem>>, vector<1x22x128xbf16>,
    %cst_45 = arith.constant 0.000000e+00 : bf16
    %71 = vector.broadcast %cst_45 : bf16 to vector<7x128xbf16>
    %c0_46 = arith.constant 0 : index
    %c29 = arith.constant 29 : index
    %c0_47 = arith.constant 0 : index
    %72 = vector.load %arg5[%c0_46, %c29, %c0_47] : memref<1x36x128xbf16, #tpu.memory_space<vmem>>, vector<1x7x128xbf16>
    %73 = vector.shape_cast %72 : vector<1x7x128xbf16> to vector<7x128xbf16>
    %74 = vector.shape_cast %71 : vector<7x128xbf16> to vector<1x7x128xbf16>
    tpu.vector_store %arg5[%c0_46, %c29, %c0_47], %74 {strides = array<i32>} : memref<1x36x128xbf16, #tpu.memory_space<vmem>>, vector<1x7x128xbf16>,
    return
  }
  func.func @transform_0(%arg0: i32) -> (i32, i32, i32) {
    %c0_i32 = arith.constant 0 : i32
    %c0_i32_0 = arith.constant 0 : i32
    %c0_i32_1 = arith.constant 0 : i32
    return %arg0, %c0_i32, %c0_i32_0 : i32, i32, i32
  }
  func.func @transform_1(%arg0: i32) -> (i32, i32, i32) {
    %c0_i32 = arith.constant 0 : i32
    %c0_i32_0 = arith.constant 0 : i32
    %c0_i32_1 = arith.constant 0 : i32
    %c0_i32_2 = arith.constant 0 : i32
    return %c0_i32, %c0_i32_0, %c0_i32_1 : i32, i32, i32
  }
  func.func @transform_2(%arg0: i32) -> (i32, i32) {
    %c0_i32 = arith.constant 0 : i32
    %c0_i32_0 = arith.constant 0 : i32
    %c0_i32_1 = arith.constant 0 : i32
    return %c0_i32, %c0_i32_0 : i32, i32
  }
  func.func @transform_3(%arg0: i32) -> (i32, i32) {
    %c0_i32 = arith.constant 0 : i32
    %c0_i32_0 = arith.constant 0 : i32
    %c0_i32_1 = arith.constant 0 : i32
    return %c0_i32, %c0_i32_0 : i32, i32
  }
  func.func @transform_4(%arg0: i32) -> (i32, i32, i32) {
    %c0_i32 = arith.constant 0 : i32
    %c0_i32_0 = arith.constant 0 : i32
    %c0_i32_1 = arith.constant 0 : i32
    return %arg0, %c0_i32, %c0_i32_0 : i32, i32, i32
  }
}

module attributes {stable_mosaic.version = 11 : i64} {
  func.func @_res_block_flat_kernel(%arg0: i32, %arg1: memref<1x36x128xbf16, #tpu.memory_space<vmem>>, %arg2: memref<9x128x128xbf16, #tpu.memory_space<vmem>>, %arg3: memref<128x128xbf16, #tpu.memory_space<vmem>>, %arg4: memref<22x1xf32, #tpu.memory_space<vmem>>, %arg5: memref<1x36x128xbf16, #tpu.memory_space<vmem>>) attributes {dimension_semantics = [#tpu.dimension_semantics<parallel>], iteration_bounds = array<i64: 2>, scalar_prefetch = 0 : i64, scratch_operands = 0 : i64, tpu.core_type = #tpu.core_type<tc>, window_params = [{transform_indices = @transform_0, window_bounds = array<i64: 1, 36, 128>}, {pipeline_mode = #tpu.pipeline_mode<synchronous>, transform_indices = @transform_1, window_bounds = array<i64: 9, 128, 128>}, {pipeline_mode = #tpu.pipeline_mode<synchronous>, transform_indices = @transform_2, window_bounds = array<i64: 128, 128>}, {pipeline_mode = #tpu.pipeline_mode<synchronous>, transform_indices = @transform_3, window_bounds = array<i64: 22, 1>}, {transform_indices = @transform_4, window_bounds = array<i64: 1, 36, 128>}]} {
    %c0 = arith.constant 0 : index
    %c0_0 = arith.constant 0 : index
    %c0_1 = arith.constant 0 : index
    %0 = vector.load %arg1[%c0, %c0_0, %c0_1] : memref<1x36x128xbf16, #tpu.memory_space<vmem>>, vector<1x36x128xbf16>
    %1 = vector.shape_cast %0 : vector<1x36x128xbf16> to vector<36x128xbf16>
    %cst = arith.constant 0.000000e+00 : bf16
    %2 = vector.broadcast %cst : bf16 to vector<36x128xbf16>
    %3 = arith.maximumf %1, %2 : vector<36x128xbf16>
    %cst_2 = arith.constant 0.000000e+00 : f32
    %4 = vector.broadcast %cst_2 : f32 to vector<22x128xf32>
    %5 = vector.extract_strided_slice %3 {offsets = [0, 0], sizes = [22, 128], strides = [1, 1]} : vector<36x128xbf16> to vector<22x128xbf16>
    %c0_3 = arith.constant 0 : index
    %c0_4 = arith.constant 0 : index
    %c0_5 = arith.constant 0 : index
    %6 = vector.load %arg2[%c0_3, %c0_4, %c0_5] : memref<9x128x128xbf16, #tpu.memory_space<vmem>>, vector<1x128x128xbf16>
    %7 = vector.shape_cast %6 : vector<1x128x128xbf16> to vector<128x128xbf16>
    %cst_6 = arith.constant dense<0.000000e+00> : vector<22x128xf32>
    %8 = tpu.matmul %5, %7, %cst_6 {dimension_numbers = #tpu.dot_dimension_numbers<[1], [0], [0], [1], [0, 0, 1, 1], [], []>} : vector<22x128xbf16>, vector<128x128xbf16>, vector<22x128xf32> -> vector<22x128xf32>
    %9 = arith.addf %4, %8 : vector<22x128xf32>
    %10 = vector.extract_strided_slice %3 {offsets = [1, 0], sizes = [22, 128], strides = [1, 1]} : vector<36x128xbf16> to vector<22x128xbf16>
    %c1 = arith.constant 1 : index
    %c0_7 = arith.constant 0 : index
    %c0_8 = arith.constant 0 : index
    %11 = vector.load %arg2[%c1, %c0_7, %c0_8] : memref<9x128x128xbf16, #tpu.memory_space<vmem>>, vector<1x128x128xbf16>
    %12 = vector.shape_cast %11 : vector<1x128x128xbf16> to vector<128x128xbf16>
    %cst_9 = arith.constant dense<0.000000e+00> : vector<22x128xf32>
    %13 = tpu.matmul %10, %12, %cst_9 {dimension_numbers = #tpu.dot_dimension_numbers<[1], [0], [0], [1], [0, 0, 1, 1], [], []>} : vector<22x128xbf16>, vector<128x128xbf16>, vector<22x128xf32> -> vector<22x128xf32>
    %14 = arith.addf %9, %13 : vector<22x128xf32>
    %15 = vector.extract_strided_slice %3 {offsets = [2, 0], sizes = [22, 128], strides = [1, 1]} : vector<36x128xbf16> to vector<22x128xbf16>
    %c2 = arith.constant 2 : index
    %c0_10 = arith.constant 0 : index
    %c0_11 = arith.constant 0 : index
    %16 = vector.load %arg2[%c2, %c0_10, %c0_11] : memref<9x128x128xbf16, #tpu.memory_space<vmem>>, vector<1x128x128xbf16>
    %17 = vector.shape_cast %16 : vector<1x128x128xbf16> to vector<128x128xbf16>
    %cst_12 = arith.constant dense<0.000000e+00> : vector<22x128xf32>
    %18 = tpu.matmul %15, %17, %cst_12 {dimension_numbers = #tpu.dot_dimension_numbers<[1], [0], [0], [1], [0, 0, 1, 1], [], []>} : vector<22x128xbf16>, vector<128x128xbf16>, vector<22x128xf32> -> vector<22x128xf32>
    %19 = arith.addf %14, %18 : vector<22x128xf32>
    %20 = vector.extract_strided_slice %3 {offsets = [6, 0], sizes = [22, 128], strides = [1, 1]} : vector<36x128xbf16> to vector<22x128xbf16>
    %c3 = arith.constant 3 : index
    %c0_13 = arith.constant 0 : index
    %c0_14 = arith.constant 0 : index
    %21 = vector.load %arg2[%c3, %c0_13, %c0_14] : memref<9x128x128xbf16, #tpu.memory_space<vmem>>, vector<1x128x128xbf16>
    %22 = vector.shape_cast %21 : vector<1x128x128xbf16> to vector<128x128xbf16>
    %cst_15 = arith.constant dense<0.000000e+00> : vector<22x128xf32>
    %23 = tpu.matmul %20, %22, %cst_15 {dimension_numbers = #tpu.dot_dimension_numbers<[1], [0], [0], [1], [0, 0, 1, 1], [], []>} : vector<22x128xbf16>, vector<128x128xbf16>, vector<22x128xf32> -> vector<22x128xf32>
    %24 = arith.addf %19, %23 : vector<22x128xf32>
    %25 = vector.extract_strided_slice %3 {offsets = [7, 0], sizes = [22, 128], strides = [1, 1]} : vector<36x128xbf16> to vector<22x128xbf16>
    %c4 = arith.constant 4 : index
    %c0_16 = arith.constant 0 : index
    %c0_17 = arith.constant 0 : index
    %26 = vector.load %arg2[%c4, %c0_16, %c0_17] : memref<9x128x128xbf16, #tpu.memory_space<vmem>>, vector<1x128x128xbf16>
    %27 = vector.shape_cast %26 : vector<1x128x128xbf16> to vector<128x128xbf16>
    %cst_18 = arith.constant dense<0.000000e+00> : vector<22x128xf32>
    %28 = tpu.matmul %25, %27, %cst_18 {dimension_numbers = #tpu.dot_dimension_numbers<[1], [0], [0], [1], [0, 0, 1, 1], [], []>} : vector<22x128xbf16>, vector<128x128xbf16>, vector<22x128xf32> -> vector<22x128xf32>
    %29 = arith.addf %24, %28 : vector<22x128xf32>
    %30 = vector.extract_strided_slice %3 {offsets = [8, 0], sizes = [22, 128], strides = [1, 1]} : vector<36x128xbf16> to vector<22x128xbf16>
    %c5 = arith.constant 5 : index
    %c0_19 = arith.constant 0 : index
    %c0_20 = arith.constant 0 : index
    %31 = vector.load %arg2[%c5, %c0_19, %c0_20] : memref<9x128x128xbf16, #tpu.memory_space<vmem>>, vector<1x128x128xbf16>
    %32 = vector.shape_cast %31 : vector<1x128x128xbf16> to vector<128x128xbf16>
    %cst_21 = arith.constant dense<0.000000e+00> : vector<22x128xf32>
    %33 = tpu.matmul %30, %32, %cst_21 {dimension_numbers = #tpu.dot_dimension_numbers<[1], [0], [0], [1], [0, 0, 1, 1], [], []>} : vector<22x128xbf16>, vector<128x128xbf16>, vector<22x128xf32> -> vector<22x128xf32>
    %34 = arith.addf %29, %33 : vector<22x128xf32>
    %35 = vector.extract_strided_slice %3 {offsets = [12, 0], sizes = [22, 128], strides = [1, 1]} : vector<36x128xbf16> to vector<22x128xbf16>
    %c6 = arith.constant 6 : index
    %c0_22 = arith.constant 0 : index
    %c0_23 = arith.constant 0 : index
    %36 = vector.load %arg2[%c6, %c0_22, %c0_23] : memref<9x128x128xbf16, #tpu.memory_space<vmem>>, vector<1x128x128xbf16>
    %37 = vector.shape_cast %36 : vector<1x128x128xbf16> to vector<128x128xbf16>
    %cst_24 = arith.constant dense<0.000000e+00> : vector<22x128xf32>
    %38 = tpu.matmul %35, %37, %cst_24 {dimension_numbers = #tpu.dot_dimension_numbers<[1], [0], [0], [1], [0, 0, 1, 1], [], []>} : vector<22x128xbf16>, vector<128x128xbf16>, vector<22x128xf32> -> vector<22x128xf32>
    %39 = arith.addf %34, %38 : vector<22x128xf32>
    %40 = vector.extract_strided_slice %3 {offsets = [13, 0], sizes = [22, 128], strides = [1, 1]} : vector<36x128xbf16> to vector<22x128xbf16>
    %c7 = arith.constant 7 : index
    %c0_25 = arith.constant 0 : index
    %c0_26 = arith.constant 0 : index
    %41 = vector.load %arg2[%c7, %c0_25, %c0_26] : memref<9x128x128xbf16, #tpu.memory_space<vmem>>, vector<1x128x128xbf16>
    %42 = vector.shape_cast %41 : vector<1x128x128xbf16> to vector<128x128xbf16>
    %cst_27 = arith.constant dense<0.000000e+00> : vector<22x128xf32>
    %43 = tpu.matmul %40, %42, %cst_27 {dimension_numbers = #tpu.dot_dimension_numbers<[1], [0], [0], [1], [0, 0, 1, 1], [], []>} : vector<22x128xbf16>, vector<128x128xbf16>, vector<22x128xf32> -> vector<22x128xf32>
    %44 = arith.addf %39, %43 : vector<22x128xf32>
    %45 = vector.extract_strided_slice %3 {offsets = [14, 0], sizes = [22, 128], strides = [1, 1]} : vector<36x128xbf16> to vector<22x128xbf16>
    %c8 = arith.constant 8 : index
    %c0_28 = arith.constant 0 : index
    %c0_29 = arith.constant 0 : index
    %46 = vector.load %arg2[%c8, %c0_28, %c0_29] : memref<9x128x128xbf16, #tpu.memory_space<vmem>>, vector<1x128x128xbf16>
    %47 = vector.shape_cast %46 : vector<1x128x128xbf16> to vector<128x128xbf16>
    %cst_30 = arith.constant dense<0.000000e+00> : vector<22x128xf32>
    %48 = tpu.matmul %45, %47, %cst_30 {dimension_numbers = #tpu.dot_dimension_numbers<[1], [0], [0], [1], [0, 0, 1, 1], [], []>} : vector<22x128xbf16>, vector<128x128xbf16>, vector<22x128xf32> -> vector<22x128xf32>
    %49 = arith.addf %44, %48 : vector<22x128xf32>
    %cst_31 = arith.constant 0.000000e+00 : f32
    %50 = vector.broadcast %cst_31 : f32 to vector<22x128xf32>
    %51 = arith.maximumf %49, %50 : vector<22x128xf32>
    %52 = arith.truncf %51 : vector<22x128xf32> to vector<22x128xbf16>
    %c0_32 = arith.constant 0 : index
    %c0_33 = arith.constant 0 : index
    %53 = vector.load %arg3[%c0_32, %c0_33] : memref<128x128xbf16, #tpu.memory_space<vmem>>, vector<128x128xbf16>
    %cst_34 = arith.constant dense<0.000000e+00> : vector<22x128xf32>
    %54 = tpu.matmul %52, %53, %cst_34 {dimension_numbers = #tpu.dot_dimension_numbers<[1], [0], [0], [1], [0, 0, 1, 1], [], []>} : vector<22x128xbf16>, vector<128x128xbf16>, vector<22x128xf32> -> vector<22x128xf32>
    %55 = vector.extract_strided_slice %1 {offsets = [7, 0], sizes = [22, 128], strides = [1, 1]} : vector<36x128xbf16> to vector<22x128xbf16>
    %56 = arith.extf %55 : vector<22x128xbf16> to vector<22x128xf32>
    %57 = arith.addf %54, %56 : vector<22x128xf32>
    %c0_35 = arith.constant 0 : index
    %c0_36 = arith.constant 0 : index
    %58 = vector.load %arg4[%c0_35, %c0_36] : memref<22x1xf32, #tpu.memory_space<vmem>>, vector<22x1xf32>
    %59 = vector.broadcast %58 : vector<22x1xf32> to vector<22x128xf32>
    %60 = arith.mulf %57, %59 : vector<22x128xf32>
    %cst_37 = arith.constant 0.000000e+00 : bf16
    %61 = vector.broadcast %cst_37 : bf16 to vector<7x128xbf16>
    %c0_38 = arith.constant 0 : index
    %c0_39 = arith.constant 0 : index
    %c0_40 = arith.constant 0 : index
    %62 = vector.load %arg5[%c0_38, %c0_39, %c0_40] : memref<1x36x128xbf16, #tpu.memory_space<vmem>>, vector<1x7x128xbf16>
    %63 = vector.shape_cast %62 : vector<1x7x128xbf16> to vector<7x128xbf16>
    %64 = vector.shape_cast %61 : vector<7x128xbf16> to vector<1x7x128xbf16>
    tpu.vector_store %arg5[%c0_38, %c0_39, %c0_40], %64 {strides = array<i32>} : memref<1x36x128xbf16, #tpu.memory_space<vmem>>, vector<1x7x128xbf16>,
    %65 = arith.truncf %60 : vector<22x128xf32> to vector<22x128xbf16>
    %c0_41 = arith.constant 0 : index
    %c7_42 = arith.constant 7 : index
    %c0_43 = arith.constant 0 : index
    %66 = vector.load %arg5[%c0_41, %c7_42, %c0_43] : memref<1x36x128xbf16, #tpu.memory_space<vmem>>, vector<1x22x128xbf16>
    %67 = vector.shape_cast %66 : vector<1x22x128xbf16> to vector<22x128xbf16>
    %68 = vector.shape_cast %65 : vector<22x128xbf16> to vector<1x22x128xbf16>
    tpu.vector_store %arg5[%c0_41, %c7_42, %c0_43], %68 {strides = array<i32>} : memref<1x36x128xbf16, #tpu.memory_space<vmem>>, vector<1x22x128xbf16>,
    %cst_44 = arith.constant 0.000000e+00 : bf16
    %69 = vector.broadcast %cst_44 : bf16 to vector<7x128xbf16>
    %c0_45 = arith.constant 0 : index
    %c29 = arith.constant 29 : index
    %c0_46 = arith.constant 0 : index
    %70 = vector.load %arg5[%c0_45, %c29, %c0_46] : memref<1x36x128xbf16, #tpu.memory_space<vmem>>, vector<1x7x128xbf16>
    %71 = vector.shape_cast %70 : vector<1x7x128xbf16> to vector<7x128xbf16>
    %72 = vector.shape_cast %69 : vector<7x128xbf16> to vector<1x7x128xbf16>
    tpu.vector_store %arg5[%c0_45, %c29, %c0_46], %72 {strides = array<i32>} : memref<1x36x128xbf16, #tpu.memory_space<vmem>>, vector<1x7x128xbf16>,
    return
  }
  func.func @transform_0(%arg0: i32) -> (i32, i32, i32) {
    %c0_i32 = arith.constant 0 : i32
    %c0_i32_0 = arith.constant 0 : i32
    %c0_i32_1 = arith.constant 0 : i32
    return %arg0, %c0_i32, %c0_i32_0 : i32, i32, i32
  }
  func.func @transform_1(%arg0: i32) -> (i32, i32, i32) {
    %c0_i32 = arith.constant 0 : i32
    %c0_i32_0 = arith.constant 0 : i32
    %c0_i32_1 = arith.constant 0 : i32
    %c0_i32_2 = arith.constant 0 : i32
    return %c0_i32, %c0_i32_0, %c0_i32_1 : i32, i32, i32
  }
  func.func @transform_2(%arg0: i32) -> (i32, i32) {
    %c0_i32 = arith.constant 0 : i32
    %c0_i32_0 = arith.constant 0 : i32
    %c0_i32_1 = arith.constant 0 : i32
    return %c0_i32, %c0_i32_0 : i32, i32
  }
  func.func @transform_3(%arg0: i32) -> (i32, i32) {
    %c0_i32 = arith.constant 0 : i32
    %c0_i32_0 = arith.constant 0 : i32
    %c0_i32_1 = arith.constant 0 : i32
    return %c0_i32, %c0_i32_0 : i32, i32
  }
  func.func @transform_4(%arg0: i32) -> (i32, i32, i32) {
    %c0_i32 = arith.constant 0 : i32
    %c0_i32_0 = arith.constant 0 : i32
    %c0_i32_1 = arith.constant 0 : i32
    return %arg0, %c0_i32, %c0_i32_0 : i32, i32, i32
  }
}

</mosaic_0001>

<bundles_post_ra>
// kernel: encoder_forward.5
= control target key start
LH: loop header
LB: loop body
LE: loop exit
PB: predicated region body
PF: predicated region fallthrough
CT: control target
= control target key end

     0   :  { %vm110_vm0 = vcmask 523264   ;;  %s579_s1 = inlined_call_operand.vmem [shape: bf16[64,128], index: 1, kind: input, shape index: {}]   ;;  %s580_s0 = inlined_call_operand.vmem [shape: bf16[128,64], index: 0, kind: input, shape index: {}]   ;;  %s581_s2 = inlined_call_operand.vmem [shape: f32[1,128], index: 2, kind: input, shape index: {}]   ;;  %s582_s3 = inlined_call_operand.vmem [shape: bf16[128,128], index: 3, kind: output, shape index: {}]  }
   0x1   :  { %v476_v0 = vld [vmem:[%s579_s1] sm:$0xff]   ;;  %v477_v1 = vld [vmem:[%s579_s1 + $0x8] sm:$0xff]   ;;  %v478_v2 = vld [vmem:[%s579_s1 + $0x10] sm:$0xff]  }
   0x2   :  { %444 = vmatprep.subr.bf16.mxu0 %v476_v0  ;;  %468 = vmatprep.subr.bf16.mxu1 %v476_v0  ;;  %v480_v3 = vld [vmem:[%s580_s0] sm:$0xff]   ;;  %v479_v5 = vld [vmem:[%s579_s1 + $0x18] sm:$0xff]   ;;  %v482_v6 = vld [vmem:[%s580_s0 + $0x8] sm:$0xff]  }
   0x3   :  { %445 = vmatpush3.bf16.msra.mxu0 %v476_v0  ;;  %472 = vmatpush3.bf16.msra.mxu1 %v476_v0  ;;  %v481_v4 = vld [vmem:[%s580_s0 + $0x20] sm:$0xff]   ;;  %v483_v7 = vld [vmem:[%s580_s0 + $0x28] sm:$0xff]   ;;  %v484_v8 = vld [vmem:[%s580_s0 + $0x10] sm:$0xff]  }
   0x4   :  { %446 = vmatprep.subr.bf16.mxu0 %v477_v1  ;;  %469 = vmatprep.subr.bf16.mxu1 %v477_v1  ;;  %v485_v9 = vld [vmem:[%s580_s0 + $0x30] sm:$0xff]   ;;  %v486_v10 = vld [vmem:[%s580_s0 + $0x18] sm:$0xff]   ;;  %v332_v12 = vld [vmem:[%s581_s2] ss:$0 sm:$0xff] }
   0x5   :  { %452 = vmatprep.mubr.msk.bf16.mxu0 %vm110_vm0, %v480_v3  ;;  %460 = vmatprep.mubr.msk.bf16.mxu1 %vm110_vm0, %v481_v4  ;;  %v487_v11 = vld [vmem:[%s580_s0 + $0x38] sm:$0xff]  }
   0x7   :  { %447 = vmatpush3.bf16.msra.mxu0 %v477_v1  ;;  %473 = vmatpush3.bf16.msra.mxu1 %v477_v1 }
   0x8   :  { %448 = vmatprep.subr.bf16.mxu0 %v478_v2  ;;  %470 = vmatprep.subr.bf16.mxu1 %v478_v2 }
   0xb   :  { %449 = vmatpush3.bf16.msra.mxu0 %v478_v2  ;;  %474 = vmatpush3.bf16.msra.mxu1 %v478_v2 }
   0xc   :  { %450 = vmatprep.subr.bf16.mxu0 %v479_v5  ;;  %471 = vmatprep.subr.bf16.mxu1 %v479_v5 }
   0xf   :  { %451 = vmatpush3.bf16.msra.mxu0 %v479_v5  ;;  %475 = vmatpush3.bf16.msra.mxu1 %v479_v5 }
  0x12   :  { %453 = vmatmul.mubr.msk.bf16.vlgmr.msra.gmra.mrb[0].mxu0 %vm110_vm0, %v482_v6  ;;  %461 = vmatmul.mubr.msk.bf16.vlgmr.msra.gmra.mrb[0].mxu1 %vm110_vm0, %v483_v7 }
  0x13   :  { %456 = vmatprep.mubr.msk.bf16.mxu0 %vm110_vm0, %v484_v8  ;;  %464 = vmatprep.mubr.msk.bf16.mxu1 %vm110_vm0, %v485_v9 }
  0x1a   :  { %457 = vmatmul.mubr.msk.bf16.gmra.mrb[4].mxu0 %vm110_vm0, %v486_v10  ;;  %465 = vmatmul.mubr.msk.bf16.gmra.mrb[4].mxu1 %vm110_vm0, %v487_v11 }
  0xe5   :  { %v454_v13 = vpop.f32.mrb[0].mxu0  ;;  %v462_v14 = vpop.f32.mrb[0].mxu1 }
  0xe6   :  { %v178_v15 = vadd.f32 %v454_v13, %v332_v12  ;;  %v210_v16 = vadd.f32 %v462_v14, %v332_v12  ;;  %v169_v17 = vpop.f32.mrb[1].mxu0  ;;  %v201_v18 = vpop.f32.mrb[1].mxu1 }
  0xe7   :  { %v170_v19 = vadd.f32 %v332_v12, %v169_v17  ;;  %v202_v20 = vadd.f32 %v332_v12, %v201_v18  ;;  %v455_v21 = vpop.f32.mrb[2].mxu0  ;;  %v463_v22 = vpop.f32.mrb[2].mxu1 }
  0xe8   :  { %v181_v23 = vadd.f32 %v455_v21, %v332_v12  ;;  %v213_v24 = vadd.f32 %v463_v22, %v332_v12  ;;  %v172_v25 = vpop.f32.mrb[3].mxu0  ;;  %v204_v26 = vpop.f32.mrb[3].mxu1  ;;  %v234_v29 = vmax.f32 %v178_v15, 0.0  ;;  %v242_v30 = vmax.f32 %v210_v16, 0.0 }
  0xe9   :  { %v173_v27 = vadd.f32 %v332_v12, %v172_v25  ;;  %v205_v28 = vadd.f32 %v332_v12, %v204_v26  ;;  %v232_v33 = vmax.f32 %v170_v19, 0.0  ;;  %v240_v34 = vmax.f32 %v202_v20, 0.0 }
  0xea   :  { %v235_v31 = vmax.f32 %v181_v23, 0.0  ;;  %v243_v32 = vmax.f32 %v213_v24, 0.0 }
  0xeb   :  { %v233_v35 = vmax.f32 %v173_v27, 0.0  ;;  %v241_v36 = vmax.f32 %v205_v28, 0.0 }
  0xec   :  { %v393_v37 = vpack.c.bf16 %v235_v31, %v234_v29  ;;  %v413_v38 = vpack.c.bf16 %v243_v32, %v242_v30 }
  0xed   :  { %v388_v39 = vpack.c.bf16 %v233_v35, %v232_v33  ;;  %v408_v40 = vpack.c.bf16 %v241_v36, %v240_v34  ;;  %v458_v41 = vpop.f32.mrb[4].mxu0  ;;  %v466_v42 = vpop.f32.mrb[4].mxu1 }
  0xee   :  { %425 = vst [vmem:[%s582_s3 + $0x8] sm:$0xff] %v393_v37   ;;  %429 = vst [vmem:[%s582_s3 + $0x28] sm:$0xff] %v413_v38   ;;  %v194_v43 = vadd.f32 %v458_v41, %v332_v12  ;;  %v226_v44 = vadd.f32 %v466_v42, %v332_v12  ;;  %v185_v45 = vpop.f32.mrb[5].mxu0  ;;  %v217_v46 = vpop.f32.mrb[5].mxu1 }
  0xef   :  { %389 = vst [vmem:[%s582_s3] sm:$0xff] %v388_v39   ;;  %428 = vst [vmem:[%s582_s3 + $0x20] sm:$0xff] %v408_v40   ;;  %v186_v47 = vadd.f32 %v332_v12, %v185_v45  ;;  %v218_v48 = vadd.f32 %v332_v12, %v217_v46  ;;  %v459_v49 = vpop.f32.mrb[6].mxu0  ;;  %v467_v50 = vpop.f32.mrb[6].mxu1 }
  0xf0   :  { %v197_v51 = vadd.f32 %v459_v49, %v332_v12  ;;  %v229_v52 = vadd.f32 %v467_v50, %v332_v12  ;;  %v188_v53 = vpop.f32.mrb[7].mxu0  ;;  %v220_v54 = vpop.f32.mrb[7].mxu1  ;;  %v238_v57 = vmax.f32 %v194_v43, 0.0  ;;  %v246_v58 = vmax.f32 %v226_v44, 0.0 }
  0xf1   :  { %v189_v55 = vadd.f32 %v332_v12, %v188_v53  ;;  %v221_v56 = vadd.f32 %v332_v12, %v220_v54  ;;  %v236_v61 = vmax.f32 %v186_v47, 0.0  ;;  %v244_v62 = vmax.f32 %v218_v48, 0.0 }
  0xf2   :  { %v239_v59 = vmax.f32 %v197_v51, 0.0  ;;  %v247_v60 = vmax.f32 %v229_v52, 0.0 }
  0xf3   :  { %v237_v63 = vmax.f32 %v189_v55, 0.0  ;;  %v245_v0 = vmax.f32 %v221_v56, 0.0 }
  0xf4   :  { %v403_v1 = vpack.c.bf16 %v239_v59, %v238_v57  ;;  %v423_v2 = vpack.c.bf16 %v247_v60, %v246_v58 }
  0xf5   :  { %v398_v3 = vpack.c.bf16 %v237_v63, %v236_v61  ;;  %v418_v4 = vpack.c.bf16 %v245_v0, %v244_v62 }
  0xf6   :  { %427 = vst [vmem:[%s582_s3 + $0x18] sm:$0xff] %v403_v1   ;;  %431 = vst [vmem:[%s582_s3 + $0x38] sm:$0xff] %v423_v2  }
  0xf7   :  { %426 = vst [vmem:[%s582_s3 + $0x10] sm:$0xff] %v398_v3   ;;  %430 = vst [vmem:[%s582_s3 + $0x30] sm:$0xff] %v418_v4  }

// kernel: encoder_forward.7
= control target key start
LH: loop header
LB: loop body
LE: loop exit
PB: predicated region body
PF: predicated region fallthrough
CT: control target
= control target key end

     0   :  { %s2111_s15 = smov 0   ;;  %s2466_s0 = inlined_call_operand.vmem [shape: bf16[2,36,128], index: 0, kind: input, shape index: {}]   ;;  %s2467_s1 = inlined_call_operand.vmem [shape: bf16[9,128,128], index: 1, kind: input, shape index: {}]   ;;  %s2468_s2 = inlined_call_operand.vmem [shape: f32[1,128], index: 2, kind: input, shape index: {}]   ;;  %s2469_s3 = inlined_call_operand.vmem [shape: f32[22,1], index: 3, kind: input, shape index: {}]   ;;  %s2470_s4 = inlined_call_operand.vmem [shape: bf16[2,36,128], index: 4, kind: output, shape index: {}]  }
   0x1 LB: > { %s1495_s16 = sadd.s32 4294967295, %s2083_s15   ;;  %p1499_p0 = scmp.ge.s32.totalorder %s2083_s15, 1  ;;  %s2083_s15 = sphi %s2111_s15, %s14_s15  }
   0x2   : > { %p162_p1 = scmp.lt.s32.totalorder %s2083_s15, 3 }
   0x4   : > { %p163_p2 = pnand %p1499_p0, %p162_p1 }
   0x5   : > { %v1999_v0 = vld [vmem:[%s2467_s1 + $0x40] sm:$0xff] (!%p163_p2)   ;;  %p188_p3 = scmp.lt.s32.totalorder (!%p163_p2), %s1495_s16, 1  ;;  %v2001_v2 = vld [vmem:[%s2467_s1 + $0x48] sm:$0xff] (!%p163_p2)   ;;  %v2003_v4 = vld [vmem:[%s2467_s1 + $0x50] sm:$0xff] (!%p163_p2)   ;;  %vm245_vm0 = vsmask.f32 (!%p163_p2), 7424 }
   0x6   : > { %166 = sbr.rel (%p163_p2) target bundleno = 405 (0x195), region = 36  ;;  %v2000_v1 = vld [vmem:[%s2467_s1] sm:$0xff] (!%p163_p2)   ;;  %1807 = vmatprep.subr.bf16.mxu0 (!%p163_p2), %v1999_v0  ;;  %v2002_v3 = vld [vmem:[%s2467_s1 + $0x8] sm:$0xff] (!%p163_p2)   ;;  %v2004_v5 = vld [vmem:[%s2467_s1 + $0x10] sm:$0xff] (!%p163_p2)   ;;  %vm474_vm1 = vcmask (!%p163_p2), 1046528   ;;  %v2085_v40 = vmov (!%p163_p2), 0  }
   0x7   : > { %1827 = vmatprep.subr.bf16.mxu1 (!%p163_p2), %v2000_v1  ;;  %1808 = vmatpush3.bf16.msra.mxu0 (!%p163_p2), %v1999_v0  ;;  %v2005_v6 = vld [vmem:[%s2467_s1 + $0x58] sm:$0xff] (!%p163_p2)   ;;  %v2007_v8 = vld [vmem:[%s2467_s1 + $0x60] sm:$0xff] (!%p163_p2)   ;;  %v2009_v10 = vld [vmem:[%s2467_s1 + $0x68] sm:$0xff] (!%p163_p2)   ;;  %vm599_vm2 = vcmask (!%p163_p2), 1044480   ;;  %vm721_vm3 = vsmask.f32 (!%p163_p2), 4352 }
   0x8   : > { %1828 = vmatpush3.bf16.msra.mxu1 (!%p163_p2), %v2000_v1  ;;  %1809 = vmatprep.subr.bf16.mxu0 (!%p163_p2), %v2001_v2  ;;  %v2006_v7 = vld [vmem:[%s2467_s1 + $0x18] sm:$0xff] (!%p163_p2)   ;;  %v2008_v9 = vld [vmem:[%s2467_s1 + $0x20] sm:$0xff] (!%p163_p2)   ;;  %v2010_v14 = vld [vmem:[%s2467_s1 + $0x28] sm:$0xff] (!%p163_p2)   ;;  %vm975_vm4 = vcmask (!%p163_p2), 1045504   ;;  %vm1097_vm5 = vsmask.f32 (!%p163_p2), 5376 }
   0x9   : > { %1829 = vmatprep.subr.bf16.mxu1 (!%p163_p2), %v2002_v3  ;;  %v2011_v17 = vld [vmem:[%s2467_s1 + $0x70] sm:$0xff] (!%p163_p2)   ;;  %v2013_v25 = vld [vmem:[%s2467_s1 + $0x78] sm:$0xff] (!%p163_p2)   ;;  %v2017_v29 = vld [vmem:[%s2467_s1 + $0x80] sm:$0xff] (!%p163_p2)   ;;  %1997 = vset.pattern.permute.xlu0 (!%p163_p2), %v2085_v40  ;;  %vm1368_vm6 = vcmask (!%p163_p2), 1043456   ;;  %vm1369_vm7 = vsmask.f32 (!%p163_p2), 3328 }
   0xa   : > { %v2012_v18 = vld [vmem:[%s2467_s1 + $0x30] sm:$0xff] (!%p163_p2)   ;;  %v2014_v26 = vld [vmem:[%s2467_s1 + $0x38] sm:$0xff] (!%p163_p2)   ;;  %v2018_v30 = vld [vmem:[%s2467_s1 + $0xc0] sm:$0xff] (!%p163_p2)   ;;  %1998 = vset.pattern.permute.xlu1 (!%p163_p2), %v2085_v40  ;;  %vm1419_vm9 = vcmask (!%p163_p2), 1043459   ;;  %vm1420_vm10 = vsmask.f32 (!%p163_p2), 7950 }
   0xb   : > { %1810 = vmatpush3.bf16.msra.mxu0 (!%p163_p2), %v2001_v2  ;;  %v2019_v34 = vld [vmem:[%s2467_s1 + $0x88] sm:$0xff] (!%p163_p2)   ;;  %v2021_v41 = vld [vmem:[%s2467_s1 + $0x90] sm:$0xff] (!%p163_p2)   ;;  %v2023_v45 = vld [vmem:[%s2467_s1 + $0x98] sm:$0xff] (!%p163_p2)   ;;  %vm1427_vm11 = vcmask (!%p163_p2), 1042432   ;;  %vm1428_vm12 = vsmask.f32 (!%p163_p2), 2304 }
   0xc   : > { %1830 = vmatpush3.bf16.msra.mxu1 (!%p163_p2), %v2002_v3  ;;  %1811 = vmatprep.subr.bf16.mxu0 (!%p163_p2), %v2003_v4  ;;  %v2020_v35 = vld [vmem:[%s2467_s1 + $0xc8] sm:$0xff] (!%p163_p2)   ;;  %v2022_v42 = vld [vmem:[%s2467_s1 + $0xd0] sm:$0xff] (!%p163_p2)   ;;  %v2024_v46 = vld [vmem:[%s2467_s1 + $0xd8] sm:$0xff] (!%p163_p2)   ;;  %vm1384_vm14 = vsmask.f32 (!%p163_p2), 7440 }
   0xd   : > { %s2472_s16 = smov (!%p188_p3, %s1495_s16), 1  ;;  %1831 = vmatprep.subr.bf16.mxu1 %v2004_v5  ;;  %v2025_v47 = vld [vmem:[%s2467_s1 + $0xa0] sm:$0xff]   ;;  %v2027_v49 = vld [vmem:[%s2467_s1 + $0xa8] sm:$0xff]   ;;  %v2029_v51 = vld [vmem:[%s2467_s1 + $0xb0] sm:$0xff]  }
   0xe   : > { %s1987_s7 = smul.u32 20, %s2472_s16  ;;  %v2026_v48 = vld [vmem:[%s2467_s1 + $0xe0] sm:$0xff]   ;;  %v2028_v50 = vld [vmem:[%s2467_s1 + $0xe8] sm:$0xff]   ;;  %v2030_v52 = vld [vmem:[%s2467_s1 + $0xf0] sm:$0xff]  }
   0xf   : > { %1812 = vmatpush3.bf16.msra.mxu0 %v2003_v4  ;;  %v2031_v55 = vld [vmem:[%s2467_s1 + $0xb8] sm:$0xff]   ;;  %v2033_v61 = vld [vmem:[%s2467_s1 + $0x100] sm:$0xff]   ;;  %v2036_v1 = vld [vmem:[%s2467_s1 + $0x108] sm:$0xff]  }
  0x10   : > { %1832 = vmatpush3.bf16.msra.mxu1 %v2004_v5  ;;  %1813 = vmatprep.subr.bf16.mxu0 %v2005_v6  ;;  %s2157_s14 = scalar_lea.vmem %s2466_s0, %s1987_s7  ;;  %s2219_s17 = scalar_lea.vmem %s2470_s4, %s1987_s7  ;;  %v2032_v57 = vld [vmem:[%s2467_s1 + $0xf8] sm:$0xff]   ;;  %v2035_v62 = vld [vmem:[%s2467_s1 + $0x140] sm:$0xff]   ;;  %v2037_v2 = vld [vmem:[%s2467_s1 + $0x148] sm:$0xff]  }
  0x11   : > { %1833 = vmatprep.subr.bf16.mxu1 %v2006_v7  ;;  %v199_v11 = vld [vmem:[%s2157_s14] sm:$0xf]  ;;  %v2164_v12 = vld [vmem:[%s2157_s14 + $0x4] sm:$0xf]  ;;  %v2167_v13 = vld [vmem:[%s2157_s14 + $0x8] sm:$0xf] }
  0x12   : > { %v2173_v15 = vcombine.low %v199_v11, %v2164_v12  ;;  %v2177_v16 = vcombine.low %v2167_v13, %v2167_v13  ;;  %v2224_v37 = vld [vmem:[%s2157_s14 + $0xc] sm:$0xf]  ;;  %1439 = vst [vmem:[%s2219_s17 + $0x10] sm:$0x3] %v2085_v40  ;;  %v2293_v3 = vcombine.low %v2164_v12, %v2167_v13  ;;  %v203_v5 = vld [vmem:[%s2157_s14 + $0x10] sm:$0x3]  ;;  %vm1370_vm8 = vmand %vm1368_vm6, %vm1369_vm7 }
  0x13   : > { %1814 = vmatpush3.bf16.msra.mxu0 %v2005_v6  ;;  %v2229_v38 = vcombine.low %v2167_v13, %v2224_v37  ;;  %v2038_v6 = vld [vmem:[%s2467_s1 + $0x110] sm:$0xff]   ;;  %v2040_v11 = vld [vmem:[%s2467_s1 + $0x118] sm:$0xff]   ;;  %vm1421_vm13 = vmand %vm1419_vm9, %vm1420_vm10 }
  0x14   : > { %1834 = vmatpush3.bf16.msra.mxu1 %v2006_v7  ;;  %1815 = vmatprep.subr.bf16.mxu0 %v2007_v8  ;;  %v247_v19 = vshrl.u32 %v2173_v15, 16  ;;  %v249_v20 = vshll.u32 %v2173_v15, 16  ;;  %v254_v21 = vshll.u32 %v2177_v16, 16  ;;  %v258_v28 = vshrl.u32 %v2177_v16, 16  ;;  %v2041_v13 = vld [vmem:[%s2467_s1 + $0x158] sm:$0xff]   ;;  %vm1429_vm15 = vmand %vm1427_vm11, %vm1428_vm12 }
  0x15   : > { %1835 = vmatprep.subr.bf16.mxu1 %v2008_v9  ;;  %1843 = vmatprep.mubr.bf16.mxu1 %v2173_v15  ;;  %v475_v32 = vrot.slane %v2173_v15, 1  ;;  %v476_v33 = vrot.slane %v2177_v16, 1  ;;  %v600_v39 = vrot.slane %v2173_v15, 3  ;;  %v601_v43 = vrot.slane %v2229_v38, 3  ;;  %v2043_v15 = vld [vmem:[%s2467_s1 + $0x160] sm:$0xff]  }
  0x16   : > { %v251_v22 = vrot.slane %v249_v20, 1  ;;  %v256_v23 = vrot.slane %v254_v21, 1  ;;  %v726_v53 = vshrl.u32 %v2229_v38, 16  ;;  %v729_v54 = vshll.u32 %v2229_v38, 16  ;;  %v2054_v38 = vld [vmem:[%s2467_s1 + $0x188] sm:$0xff]  }
  0x17   : > { %1816 = vmatpush3.bf16.msra.mxu0 %v2007_v8  ;;  %v477_v36 = vsel %vm474_vm1, %v475_v32, %v476_v33  ;;  %v602_v44 = vsel %vm599_vm2, %v600_v39, %v601_v43  ;;  %v722_v56 = vrot.slane %v247_v19, 3  ;;  %v723_v58 = vrot.slane %v249_v20, 4  ;;  %v2055_v39 = vld [vmem:[%s2467_s1 + $0x1c8] sm:$0xff]  }
  0x18   : > { %1836 = vmatpush3.bf16.msra.mxu1 %v2008_v9  ;;  %1817 = vmatprep.subr.bf16.mxu0 %v2009_v10  ;;  %v252_v24 = vor.u32 %v251_v22, %v247_v19  ;;  %v260_v31 = vor.u32 %v258_v28, %v256_v23  ;;  %v728_v59 = vrot.slane %v726_v53, 3  ;;  %v731_v60 = vrot.slane %v729_v54, 4  ;;  %v2039_v9 = vld [vmem:[%s2467_s1 + $0x150] sm:$0xff]   ;;  %v2067_v53 = vld [vmem:[%s2467_s1 + $0x1f8] sm:$0xff]   ;;  %v1347_v54 = vld [vmem:[%s2469_s3] sm:$0xff] }
  0x19   : > { %1837 = vmatprep.subr.bf16.mxu1 %v2010_v14  ;;  %v724_v63 = vor.u32 %v723_v58, %v722_v56  ;;  %v1233_v7 = vrot.slane %v2293_v3, 3  ;;  %v2304_v8 = vcombine.low %v2224_v37, %v203_v5  ;;  %v2047_v19 = vld [vmem:[%s2467_s1 + $0x170] sm:$0xff]   ;;  %v1099_v20 = vshrl.u32 %v2293_v3, 16  ;;  %v2069_v56 = vld [vmem:[%s2467_s1 + $0x200] sm:$0xff]  }
  0x1a   : > { %v257_v27 = vsel %vm245_vm0, %v252_v24, %v256_v23  ;;  %v2283_v0 = vor.u32 %v731_v60, %v728_v59  ;;  %v1102_v21 = vshll.u32 %v2293_v3, 16  ;;  %v2048_v24 = vld [vmem:[%s2467_s1 + $0x138] sm:$0xff]   ;;  %v976_v32 = vrot.slane %v2293_v3, 2  ;;  %v2071_v58 = vld [vmem:[%s2467_s1 + $0x210] sm:$0xff]   ;;  %v2073_v60 = vld [vmem:[%s2467_s1 + $0x220] sm:$0xff]  }
  0x1b   : > { %1818 = vmatpush3.bf16.msra.mxu0 %v2009_v10  ;;  %1823 = vmatprep.mubr.bf16.mxu0 %v257_v27  ;;  %v1234_v10 = vrot.slane %v2304_v8, 3  ;;  %v1107_v22 = vshrl.u32 %v2304_v8, 16  ;;  %v1110_v23 = vshll.u32 %v2304_v8, 16  ;;  %v2072_v59 = vld [vmem:[%s2467_s1 + $0x218] sm:$0xff]   ;;  %vm1385_vm0 = vmor %vm1369_vm7, %vm1384_vm14  ;;  %vm1433_vm1 = vcmask 1043458  }
  0x1c   : > { %1838 = vmatpush3.bf16.msra.mxu1 %v2010_v14  ;;  %1819 = vmatprep.subr.bf16.mxu0 %v2011_v17  ;;  %v733_v4 = vsel %vm721_vm3, %v724_v63, %v2283_v0  ;;  %v2042_v14 = vld [vmem:[%s2467_s1 + $0x120] sm:$0xff]   ;;  %v1104_v27 = vrot.slane %v1102_v21, 3  ;;  %v2076_v63 = vld [vmem:[%s2467_s1 + $0x238] sm:$0xff]  }
  0x1d   : > { %1839 = vmatprep.subr.bf16.mxu1 %v2012_v18  ;;  %v2317_v12 = vsel %vm599_vm2, %v1233_v7, %v1234_v10  ;;  %v1109_v28 = vrot.slane %v1107_v22, 2  ;;  %vm1434_vm2 = vsmask.f32 7946 }
  0x1e   : > { %vm1435_vm3 = vmand %vm1433_vm1, %vm1434_vm2 }
  0x1f   : > { %1820 = vmatpush3.bf16.msra.mxu0 %v2011_v17  ;;  %v2045_v17 = vld [vmem:[%s2467_s1 + $0x168] sm:$0xff]  }
  0x20   : > { %1840 = vmatpush3.bf16.msra.mxu1 %v2012_v18  ;;  %1821 = vmatprep.subr.bf16.mxu0 %v2013_v25  ;;  %v2046_v18 = vld [vmem:[%s2467_s1 + $0x130] sm:$0xff]  }
  0x21   : > { %1841 = vmatprep.subr.bf16.mxu1 %v2014_v26 }
  0x23   : > { %1822 = vmatpush3.bf16.msra.mxu0 %v2013_v25  ;;  %v2049_v25 = vld [vmem:[%s2467_s1 + $0x178] sm:$0xff]  }
  0x24   : > { %1842 = vmatpush3.bf16.msra.mxu1 %v2014_v26  ;;  %1847 = vmatprep.subr.bf16.mxu0 %v2017_v29  ;;  %v1101_v26 = vrot.slane %v1099_v20, 2 }
  0x25   : > { %1867 = vmatprep.subr.bf16.mxu1 %v2018_v30 }
  0x26   : > { %1824 = vmatmul.mubr.bf16.vlgmr.msra.gmra.mrb[0].mxu0 %v260_v31  ;;  %v2053_v31 = vld [vmem:[%s2467_s1 + $0x1c0] sm:$0xff]  }
  0x27   : > { %1844 = vmatmul.mubr.bf16.vlgmr.msra.gmra.mrb[0].mxu1 %v2177_v16  ;;  %1848 = vmatpush3.bf16.msra.mxu0 %v2017_v29  ;;  %v2044_v16 = vld [vmem:[%s2467_s1 + $0x128] sm:$0xff]   ;;  %v1112_v29 = vrot.slane %v1110_v23, 3 }
  0x28   : > { %1868 = vmatpush3.bf16.msra.mxu1 %v2018_v30  ;;  %1849 = vmatprep.subr.bf16.mxu0 %v2019_v34  ;;  %v2050_v30 = vld [vmem:[%s2467_s1 + $0x180] sm:$0xff]  }
  0x29   : > { %1869 = vmatprep.subr.bf16.mxu1 %v2020_v35  ;;  %1863 = vmatprep.mubr.bf16.mxu0 %v477_v36  ;;  %v2360_v36 = vor.u32 %v1112_v29, %v1109_v28 }
  0x2a   : > { %1883 = vmatprep.mubr.bf16.mxu1 %v602_v44  ;;  %v2059_v44 = vld [vmem:[%s2467_s1 + $0x1d8] sm:$0xff]  }
  0x2b   : > { %1850 = vmatpush3.bf16.msra.mxu0 %v2019_v34  ;;  %v1626_v34 = vcombine.low %v2224_v37, %v2224_v37 }
  0x2c   : > { %1870 = vmatpush3.bf16.msra.mxu1 %v2020_v35  ;;  %1851 = vmatprep.subr.bf16.mxu0 %v2021_v41  ;;  %v1105_v35 = vor.u32 %v1104_v27, %v1101_v26 }
  0x2d   : > { %1871 = vmatprep.subr.bf16.mxu1 %v2022_v42 }
  0x2e   : > { %v1114_v40 = vsel %vm1097_vm5, %v1105_v35, %v2360_v36 }
  0x2f   : > { %1852 = vmatpush3.bf16.msra.mxu0 %v2021_v41  ;;  %v2056_v41 = vld [vmem:[%s2467_s1 + $0x190] sm:$0xff]  }
  0x30   : > { %1872 = vmatpush3.bf16.msra.mxu1 %v2022_v42  ;;  %1853 = vmatprep.subr.bf16.mxu0 %v2023_v45  ;;  %v2057_v42 = vld [vmem:[%s2467_s1 + $0x1d0] sm:$0xff]  }
  0x31   : > { %1873 = vmatprep.subr.bf16.mxu1 %v2024_v46 }
  0x33   : > { %1854 = vmatpush3.bf16.msra.mxu0 %v2023_v45  ;;  %v2060_v45 = vld [vmem:[%s2467_s1 + $0x1a0] sm:$0xff]  }
  0x34   : > { %1874 = vmatpush3.bf16.msra.mxu1 %v2024_v46  ;;  %1855 = vmatprep.subr.bf16.mxu0 %v2025_v47  ;;  %v2061_v46 = vld [vmem:[%s2467_s1 + $0x1e0] sm:$0xff]  }
  0x35   : > { %1875 = vmatprep.subr.bf16.mxu1 %v2026_v48 }
  0x37   : > { %1856 = vmatpush3.bf16.msra.mxu0 %v2025_v47  ;;  %v2062_v47 = vld [vmem:[%s2467_s1 + $0x1a8] sm:$0xff]  }
  0x38   : > { %1876 = vmatpush3.bf16.msra.mxu1 %v2026_v48  ;;  %1857 = vmatprep.subr.bf16.mxu0 %v2027_v49  ;;  %v2063_v48 = vld [vmem:[%s2467_s1 + $0x1e8] sm:$0xff]  }
  0x39   : > { %1877 = vmatprep.subr.bf16.mxu1 %v2028_v50 }
  0x3b   : > { %1858 = vmatpush3.bf16.msra.mxu0 %v2027_v49  ;;  %v2064_v49 = vld [vmem:[%s2467_s1 + $0x1b0] sm:$0xff]  }
  0x3c   : > { %1878 = vmatpush3.bf16.msra.mxu1 %v2028_v50  ;;  %1859 = vmatprep.subr.bf16.mxu0 %v2029_v51  ;;  %v2065_v50 = vld [vmem:[%s2467_s1 + $0x1f0] sm:$0xff]  }
  0x3d   : > { %1879 = vmatprep.subr.bf16.mxu1 %v2030_v52 }
  0x3f   : > { %1860 = vmatpush3.bf16.msra.mxu0 %v2029_v51  ;;  %v1349_v51 = vld [vmem:[%s2469_s3 + $0x10] sm:$0x3f] }
  0x40   : > { %1880 = vmatpush3.bf16.msra.mxu1 %v2030_v52  ;;  %1861 = vmatprep.subr.bf16.mxu0 %v2031_v55  ;;  %v2066_v52 = vld [vmem:[%s2467_s1 + $0x1b8] sm:$0xff]  }
  0x41   : > { %1881 = vmatprep.subr.bf16.mxu1 %v2032_v57  ;;  %1362 = vperm.xlu0 %1997, %v1349_v51  }
  0x43   : > { %1862 = vmatpush3.bf16.msra.mxu0 %v2031_v55  ;;  %v1348_v55 = vld [vmem:[%s2469_s3 + $0x8] sm:$0xff] }
  0x44   : > { %1882 = vmatpush3.bf16.msra.mxu1 %v2032_v57  ;;  %1887 = vmatprep.subr.bf16.mxu0 %v2033_v61  ;;  %v2070_v57 = vld [vmem:[%s2467_s1 + $0x208] sm:$0xff]  }
  0x45   : > { %1907 = vmatprep.subr.bf16.mxu1 %v2035_v62  ;;  %1352 = vperm.xlu0 %1997, %v1347_v54  }
  0x46   : > { %1864 = vmatmul.mubr.bf16.vlgmr.msra.gmra.mrb[4].mxu0 %v476_v33  ;;  %v977_v33 = vrot.slane %v2304_v8, 2  ;;  %1357 = vperm.xlu1 %1998, %v1348_v55  }
  0x47   : > { %1888 = vmatpush3.bf16.msra.mxu0 %v2033_v61  ;;  %1884 = vmatmul.mubr.bf16.vlgmr.msra.gmra.mrb[4].mxu1 %v601_v43  ;;  %v2058_v43 = vld [vmem:[%s2467_s1 + $0x198] sm:$0xff]   ;;  %v2074_v61 = vld [vmem:[%s2467_s1 + $0x228] sm:$0xff]  }
  0x48   : > { %1908 = vmatpush3.bf16.msra.mxu1 %v2035_v62  ;;  %1889 = vmatprep.subr.bf16.mxu0 %v2036_v1  ;;  %v978_v37 = vsel %vm975_vm4, %v976_v32, %v977_v33  ;;  %v2075_v62 = vld [vmem:[%s2467_s1 + $0x230] sm:$0xff]  }
  0x49   : > { %1909 = vmatprep.subr.bf16.mxu1 %v2037_v2  ;;  %1903 = vmatprep.mubr.bf16.mxu0 %v733_v4 }
  0x4a   : > { %1923 = vmatprep.mubr.bf16.mxu1 %v2293_v3 }
  0x4b   : > { %1890 = vmatpush3.bf16.msra.mxu0 %v2036_v1 }
  0x4c   : > { %1910 = vmatpush3.bf16.msra.mxu1 %v2037_v2  ;;  %1891 = vmatprep.subr.bf16.mxu0 %v2038_v6 }
  0x4d   : > { %1911 = vmatprep.subr.bf16.mxu1 %v2039_v9 }
  0x4f   : > { %1892 = vmatpush3.bf16.msra.mxu0 %v2038_v6 }
  0x50   : > { %1912 = vmatpush3.bf16.msra.mxu1 %v2039_v9  ;;  %1893 = vmatprep.subr.bf16.mxu0 %v2040_v11 }
  0x51   : > { %1913 = vmatprep.subr.bf16.mxu1 %v2041_v13 }
  0x53   : > { %1894 = vmatpush3.bf16.msra.mxu0 %v2040_v11 }
  0x54   : > { %1914 = vmatpush3.bf16.msra.mxu1 %v2041_v13  ;;  %1895 = vmatprep.subr.bf16.mxu0 %v2042_v14  ;;  %v1371_v13 = vld [vmem:[%s2219_s17] sm:$0xf] }
  0x55   : > { %1915 = vmatprep.subr.bf16.mxu1 %v2043_v15  ;;  %v1372_v8 = vsel %vm1370_vm8, 0, %v1371_v13 }
  0x56   : > { %1373 = vst [vmem:[%s2219_s17] sm:$0xf] %v1372_v8 }
  0x57   : > { %1896 = vmatpush3.bf16.msra.mxu0 %v2042_v14 }
  0x58   : > { %1916 = vmatpush3.bf16.msra.mxu1 %v2043_v15  ;;  %1897 = vmatprep.subr.bf16.mxu0 %v2044_v16 }
  0x59   : > { %1917 = vmatprep.subr.bf16.mxu1 %v2045_v17 }
  0x5b   : > { %1898 = vmatpush3.bf16.msra.mxu0 %v2044_v16 }
  0x5c   : > { %1918 = vmatpush3.bf16.msra.mxu1 %v2045_v17  ;;  %1899 = vmatprep.subr.bf16.mxu0 %v2046_v18 }
  0x5d   : > { %1919 = vmatprep.subr.bf16.mxu1 %v2047_v19 }
  0x5f   : > { %1900 = vmatpush3.bf16.msra.mxu0 %v2046_v18 }
  0x60   : > { %1920 = vmatpush3.bf16.msra.mxu1 %v2047_v19  ;;  %1901 = vmatprep.subr.bf16.mxu0 %v2048_v24 }
  0x61   : > { %1921 = vmatprep.subr.bf16.mxu1 %v2049_v25 }
  0x63   : > { %1902 = vmatpush3.bf16.msra.mxu0 %v2048_v24 }
  0x64   : > { %1922 = vmatpush3.bf16.msra.mxu1 %v2049_v25  ;;  %1927 = vmatprep.subr.bf16.mxu0 %v2050_v30 }
  0x65   : > { %1947 = vmatprep.subr.bf16.mxu1 %v2053_v31 }
  0x66   : > { %1904 = vmatmul.mubr.bf16.vlgmr.msra.gmra.mrb[8].mxu0 %v2283_v0 }
  0x67   : > { %1928 = vmatpush3.bf16.msra.mxu0 %v2050_v30  ;;  %1924 = vmatmul.mubr.bf16.vlgmr.msra.gmra.mrb[8].mxu1 %v1626_v34 }
  0x68   : > { %1948 = vmatpush3.bf16.msra.mxu1 %v2053_v31  ;;  %1929 = vmatprep.subr.bf16.mxu0 %v2054_v38 }
  0x69   : > { %1949 = vmatprep.subr.bf16.mxu1 %v2055_v39  ;;  %1943 = vmatprep.mubr.bf16.mxu0 %v978_v37 }
  0x6a   : > { %1963 = vmatprep.mubr.bf16.mxu1 %v1114_v40 }
  0x6b   : > { %1930 = vmatpush3.bf16.msra.mxu0 %v2054_v38 }
  0x6c   : > { %1950 = vmatpush3.bf16.msra.mxu1 %v2055_v39  ;;  %1931 = vmatprep.subr.bf16.mxu0 %v2056_v41 }
  0x6d   : > { %1951 = vmatprep.subr.bf16.mxu1 %v2057_v42 }
  0x6f   : > { %1932 = vmatpush3.bf16.msra.mxu0 %v2056_v41 }
  0x70   : > { %1952 = vmatpush3.bf16.msra.mxu1 %v2057_v42  ;;  %1933 = vmatprep.subr.bf16.mxu0 %v2058_v43 }
  0x71   : > { %1953 = vmatprep.subr.bf16.mxu1 %v2059_v44 }
  0x73   : > { %1934 = vmatpush3.bf16.msra.mxu0 %v2058_v43 }
  0x74   : > { %1954 = vmatpush3.bf16.msra.mxu1 %v2059_v44  ;;  %1935 = vmatprep.subr.bf16.mxu0 %v2060_v45 }
  0x75   : > { %1955 = vmatprep.subr.bf16.mxu1 %v2061_v46 }
  0x77   : > { %1936 = vmatpush3.bf16.msra.mxu0 %v2060_v45 }
  0x78   : > { %1956 = vmatpush3.bf16.msra.mxu1 %v2061_v46  ;;  %1937 = vmatprep.subr.bf16.mxu0 %v2062_v47 }
  0x79   : > { %1957 = vmatprep.subr.bf16.mxu1 %v2063_v48 }
  0x7b   : > { %1938 = vmatpush3.bf16.msra.mxu0 %v2062_v47 }
  0x7c   : > { %1958 = vmatpush3.bf16.msra.mxu1 %v2063_v48  ;;  %1939 = vmatprep.subr.bf16.mxu0 %v2064_v49 }
  0x7d   : > { %1959 = vmatprep.subr.bf16.mxu1 %v2065_v50 }
  0x7f   : > { %1940 = vmatpush3.bf16.msra.mxu0 %v2064_v49 }
  0x80   : > { %1960 = vmatpush3.bf16.msra.mxu1 %v2065_v50  ;;  %1941 = vmatprep.subr.bf16.mxu0 %v2066_v52 }
  0x81   : > { %1961 = vmatprep.subr.bf16.mxu1 %v2067_v53 }
  0x83   : > { %1942 = vmatpush3.bf16.msra.mxu0 %v2066_v52 }
  0x84   : > { %1962 = vmatpush3.bf16.msra.mxu1 %v2067_v53  ;;  %1967 = vmatprep.subr.bf16.mxu0 %v2069_v56 }
  0x86   : > { %1944 = vmatmul.mubr.bf16.vlgmr.msra.gmra.mrb[12].mxu0 %v977_v33 }
  0x87   : > { %1968 = vmatpush3.bf16.msra.mxu0 %v2069_v56  ;;  %1964 = vmatmul.mubr.bf16.vlgmr.msra.gmra.mrb[12].mxu1 %v2360_v36 }
  0x88   : > { %1969 = vmatprep.subr.bf16.mxu0 %v2070_v57  ;;  %1983 = vmatprep.mubr.bf16.mxu0 %v2317_v12 }
  0x8b   : > { %1970 = vmatpush3.bf16.msra.mxu0 %v2070_v57  ;;  %v1708_v57 = vld [vmem:[%s2468_s2] ss:$0 sm:$0xff] }
  0x8c   : > { %1971 = vmatprep.subr.bf16.mxu0 %v2071_v58 }
  0x8f   : > { %1972 = vmatpush3.bf16.msra.mxu0 %v2071_v58 }
  0x90   : > { %1973 = vmatprep.subr.bf16.mxu0 %v2072_v59 }
  0x93   : > { %1974 = vmatpush3.bf16.msra.mxu0 %v2072_v59 }
  0x94   : > { %1975 = vmatprep.subr.bf16.mxu0 %v2073_v60 }
  0x97   : > { %1976 = vmatpush3.bf16.msra.mxu0 %v2073_v60 }
  0x98   : > { %1977 = vmatprep.subr.bf16.mxu0 %v2074_v61 }
  0x9b   : > { %1978 = vmatpush3.bf16.msra.mxu0 %v2074_v61 }
  0x9c   : > { %1979 = vmatprep.subr.bf16.mxu0 %v2075_v62 }
  0x9f   : > { %1980 = vmatpush3.bf16.msra.mxu0 %v2075_v62 }
  0xa0   : > { %1981 = vmatprep.subr.bf16.mxu0 %v2076_v63 }
  0xa3   : > { %1982 = vmatpush3.bf16.msra.mxu0 %v2076_v63 }
  0xa6   : > { %1984 = vmatmul.mubr.bf16.vlgmr.msra.gmra.mrb[16].mxu0 %v1234_v10 }
  0xc0   : > { %v1363_v55 = vpop.permute.xlu0 %1362 }
  0xf9   : > { %v1825_v0 = vpop.f32.mrb[0].mxu0 }
  0xfa   : > { %v1845_v1 = vpop.f32.mrb[0].mxu1  ;;  %v345_v2 = vpop.f32.mrb[1].mxu0 }
  0xfb   : > { %v452_v3 = vadd.f32 %v1845_v1, %v1825_v0  ;;  %v443_v4 = vpop.f32.mrb[1].mxu1  ;;  %v1826_v5 = vpop.f32.mrb[2].mxu0 }
  0xfc   : > { %v444_v6 = vadd.f32 %v443_v4, %v345_v2  ;;  %v1846_v7 = vpop.f32.mrb[2].mxu1  ;;  %v348_v9 = vpop.f32.mrb[3].mxu0 }
  0xfd   : > { %v446_v11 = vpop.f32.mrb[3].mxu1  ;;  %v1353_v0 = vpop.permute.xlu0 %1352 }
  0xfe   : > { %v447_v12 = vadd.f32 %v446_v11, %v348_v9  ;;  %v1358_v4 = vpop.permute.xlu1 %1357 }
 0x119   : > { %v1865_v10 = vpop.f32.mrb[4].mxu0 }
 0x11a   : > { %v578_v14 = vadd.f32 %v1865_v10, %v452_v3  ;;  %v562_v15 = vpop.f32.mrb[5].mxu0  ;;  %v1885_v16 = vpop.f32.mrb[4].mxu1 }
 0x11b   : > { %v576_v17 = vadd.f32 %v562_v15, %v444_v6  ;;  %v1866_v18 = vpop.f32.mrb[6].mxu0  ;;  %v687_v19 = vpop.f32.mrb[5].mxu1 }
 0x11c   : > { %v703_v20 = vadd.f32 %v1885_v16, %v578_v14  ;;  %v565_v21 = vpop.f32.mrb[7].mxu0  ;;  %v1886_v22 = vpop.f32.mrb[6].mxu1  ;;  %v1422_v14 = vld [vmem:[%s2219_s17] sm:$0x8] }
 0x11d   : > { %v577_v23 = vadd.f32 %v565_v21, %v447_v12  ;;  %v701_v24 = vadd.f32 %v687_v19, %v576_v17  ;;  %v690_v25 = vpop.f32.mrb[7].mxu1 }
 0x11f   : > { %v702_v26 = vadd.f32 %v690_v25, %v577_v23  ;;  %v1430_v23 = vld [vmem:[%s2219_s17 + $0xc] sm:$0x7] }
 0x139   : > { %v1905_v27 = vpop.f32.mrb[8].mxu0 }
 0x13a   : > { %v834_v28 = vadd.f32 %v1905_v27, %v703_v20  ;;  %v818_v29 = vpop.f32.mrb[9].mxu0  ;;  %v1925_v30 = vpop.f32.mrb[8].mxu1 }
 0x13b   : > { %v832_v31 = vadd.f32 %v818_v29, %v701_v24  ;;  %v1906_v32 = vpop.f32.mrb[10].mxu0  ;;  %v938_v33 = vpop.f32.mrb[9].mxu1 }
 0x13c   : > { %v954_v34 = vadd.f32 %v1925_v30, %v834_v28  ;;  %v821_v35 = vpop.f32.mrb[11].mxu0  ;;  %v1926_v36 = vpop.f32.mrb[10].mxu1 }
 0x13d   : > { %v833_v38 = vadd.f32 %v821_v35, %v702_v26  ;;  %v952_v39 = vadd.f32 %v938_v33, %v832_v31  ;;  %v941_v37 = vpop.f32.mrb[11].mxu1 }
 0x13f   : > { %v953_v40 = vadd.f32 %v941_v37, %v833_v38 }
 0x159   : > { %v1945_v41 = vpop.f32.mrb[12].mxu0 }
 0x15a   : > { %v1079_v42 = vadd.f32 %v1945_v41, %v954_v34  ;;  %v1063_v43 = vpop.f32.mrb[13].mxu0  ;;  %v1965_v44 = vpop.f32.mrb[12].mxu1 }
 0x15b   : > { %v1077_v45 = vadd.f32 %v1063_v43, %v952_v39  ;;  %v1946_v46 = vpop.f32.mrb[14].mxu0  ;;  %v1199_v47 = vpop.f32.mrb[13].mxu1 }
 0x15c   : > { %v1215_v48 = vadd.f32 %v1965_v44, %v1079_v42  ;;  %v1066_v49 = vpop.f32.mrb[15].mxu0  ;;  %v1966_v50 = vpop.f32.mrb[14].mxu1 }
 0x15d   : > { %v1078_v51 = vadd.f32 %v1066_v49, %v953_v40  ;;  %v1213_v52 = vadd.f32 %v1199_v47, %v1077_v45  ;;  %v1202_v53 = vpop.f32.mrb[15].mxu1 }
 0x15f   : > { %v1214_v54 = vadd.f32 %v1202_v53, %v1078_v51 }
 0x179   : > { %v1985_v56 = vpop.f32.mrb[16].mxu0 }
 0x17a   : > { %v1336_v58 = vadd.f32 %v1985_v56, %v1215_v48  ;;  %v1320_v59 = vpop.f32.mrb[17].mxu0 }
 0x17b   : > { %v1334_v60 = vadd.f32 %v1320_v59, %v1213_v52  ;;  %v1986_v61 = vpop.f32.mrb[18].mxu0 }
 0x17c   : > { %v1346_v62 = vadd.f32 %v1708_v57, %v1336_v58  ;;  %v1323_v63 = vpop.f32.mrb[19].mxu0 }
 0x17d   : > { %v1335_v1 = vadd.f32 %v1323_v63, %v1214_v54  ;;  %v1344_v2 = vadd.f32 %v1708_v57, %v1334_v60 }
 0x17e   : > { %v1367_v3 = vmul.f32 %v1363_v55, %v1346_v62 }
 0x17f   : > { %v1365_v5 = vmul.f32 %v1353_v0, %v1344_v2  ;;  %v1345_v6 = vadd.f32 %v1708_v57, %v1335_v1 }
 0x180   : > { %v1716_v7 = vpack.c.bf16 %v1367_v3, %v1367_v3 }
 0x181   : > { %v1714_v9 = vpack.c.bf16 %v1365_v5, %v1365_v5  ;;  %v1366_v11 = vmul.f32 %v1358_v4, %v1345_v6 }
 0x182   : > { %v1406_v12 = vshll.u32 %v1716_v7, 16  ;;  %v1410_v13 = vshrl.u32 %v1716_v7, 16 }
 0x183   : > { %v1387_v8 = vshll.u32 %v1714_v9, 16  ;;  %v1390_v10 = vshrl.u32 %v1714_v9, 16  ;;  %v1715_v15 = vpack.c.bf16 %v1366_v11, %v1366_v11 }
 0x184   : > { %v1408_v16 = vrot.slane %v1406_v12, 5  ;;  %v1412_v17 = vrot.slane %v1410_v13, 4 }
 0x185   : > { %v1389_v18 = vrot.slane %v1387_v8, 5  ;;  %v1392_v19 = vrot.slane %v1390_v10, 4  ;;  %v1396_v20 = vshll.u32 %v1715_v15, 16  ;;  %v1400_v21 = vshrl.u32 %v1715_v15, 16 }
 0x186   : > { %v1413_v22 = vor.u32 %v1412_v17, %v1408_v16 }
 0x187   : > { %v1393_v24 = vor.u32 %v1392_v19, %v1389_v18  ;;  %v1423_v25 = vsel %vm1421_vm13, %v1389_v18, %v1422_v14  ;;  %v1398_v26 = vrot.slane %v1396_v20, 5  ;;  %v1402_v27 = vrot.slane %v1400_v21, 4 }
 0x188   : > { %v1414_v28 = vrot.slane %v1413_v22, 4  ;;  %1424 = vst [vmem:[%s2219_s17] sm:$0x8] %v1423_v25 }
 0x189   : > { %v1394_v29 = vrot.slane %v1393_v24, 4  ;;  %v1403_v30 = vor.u32 %v1402_v27, %v1398_v26 }
 0x18a   : > { %v1431_v31 = vsel %vm1429_vm15, %v1414_v28, %v1430_v23 }
 0x18b   : > { %1432 = vst [vmem:[%s2219_s17 + $0xc] sm:$0x7] %v1431_v31  ;;  %v1399_v32 = vsel %vm1385_vm0, %v1394_v29, %v1398_v26  ;;  %v1404_v33 = vrot.slane %v1403_v30, 4 }
 0x18c   : > { %1425 = vst [vmem:[%s2219_s17 + $0x4] sm:$0xf] %v1399_v32 }
 0x18d   : > { %v1409_v34 = vsel %vm1385_vm0, %v1404_v33, %v1408_v16 }
 0x18e   : > { %1426 = vst [vmem:[%s2219_s17 + $0x8] sm:$0xf] %v1409_v34 }
 0x192   : > { %v1436_v35 = vld [vmem:[%s2219_s17 + $0xc] sm:$0xc] }
 0x193   : > { %v1437_v36 = vsel %vm1435_vm3, 0, %v1436_v35 }
 0x194   : > { %1438 = vst [vmem:[%s2219_s17 + $0xc] sm:$0xc] %v1437_v36 }
 0x195 PF: > { %s14_s15 = sadd.s32 1, %s2083_s15  }
 0x196   : > { %p11_p4 = scmp.ge.s32.totalorder %s14_s15, 4  }
 0x198   :  { %13 = sbr.rel (!%p11_p4) target bundleno = 1 (0x1), region = 74 }

// kernel: encoder_forward.8
= control target key start
LH: loop header
LB: loop body
LE: loop exit
PB: predicated region body
PF: predicated region fallthrough
CT: control target
= control target key end

     0   :  { %s2312_s15 = smov 0   ;;  %s2681_s0 = inlined_call_operand.vmem [shape: bf16[2,36,128], index: 0, kind: input, shape index: {}]   ;;  %s2682_s1 = inlined_call_operand.vmem [shape: bf16[9,128,128], index: 1, kind: input, shape index: {}]   ;;  %s2683_s2 = inlined_call_operand.vmem [shape: bf16[128,128], index: 2, kind: input, shape index: {}]   ;;  %s2684_s3 = inlined_call_operand.vmem [shape: f32[22,1], index: 3, kind: input, shape index: {}]   ;;  %s2685_s4 = inlined_call_operand.vmem [shape: bf16[2,36,128], index: 4, kind: output, shape index: {}]  }
   0x1 LB: > { %s1626_s16 = sadd.s32 4294967295, %s2284_s15   ;;  %p1630_p0 = scmp.ge.s32.totalorder %s2284_s15, 1  ;;  %s2284_s15 = sphi %s2312_s15, %s14_s15  }
   0x2   : > { %p162_p1 = scmp.lt.s32.totalorder %s2284_s15, 3 }
   0x4   : > { %p163_p2 = pnand %p1630_p0, %p162_p1 }
   0x5   : > { %v2198_v0 = vld [vmem:[%s2682_s1 + $0x40] sm:$0xff] (!%p163_p2)   ;;  %p188_p3 = scmp.lt.s32.totalorder (!%p163_p2), %s1626_s16, 1  ;;  %v2200_v2 = vld [vmem:[%s2682_s1 + $0x48] sm:$0xff] (!%p163_p2)   ;;  %v2286_v3 = vmov (!%p163_p2), 0   ;;  %v2202_v5 = vld [vmem:[%s2682_s1 + $0x50] sm:$0xff] (!%p163_p2)   ;;  %vm604_vm2 = vcmask (!%p163_p2), 1044480  }
   0x6   : > { %166 = sbr.rel (%p163_p2) target bundleno = 626 (0x272), region = 36  ;;  %v2199_v1 = vld [vmem:[%s2682_s1 + $0x100] sm:$0xff] (!%p163_p2)   ;;  %1955 = vmatprep.subr.bf16.mxu1 (!%p163_p2), %v2198_v0  ;;  %2196 = vset.pattern.permute.xlu0 (!%p163_p2), %v2286_v3  ;;  %v2201_v4 = vld [vmem:[%s2682_s1 + $0x108] sm:$0xff] (!%p163_p2)   ;;  %v2203_v6 = vld [vmem:[%s2682_s1 + $0x110] sm:$0xff] (!%p163_p2)   ;;  %vm250_vm0 = vsmask.f32 (!%p163_p2), 7424 }
   0x7   : > { %2035 = vmatprep.subr.bf16.mxu0 (!%p163_p2), %v2199_v1  ;;  %1956 = vmatpush3.bf16.msra.mxu1 (!%p163_p2), %v2198_v0  ;;  %v2204_v7 = vld [vmem:[%s2682_s1 + $0x58] sm:$0xff] (!%p163_p2)   ;;  %v2206_v9 = vld [vmem:[%s2682_s1 + $0x60] sm:$0xff] (!%p163_p2)   ;;  %v2208_v11 = vld [vmem:[%s2682_s1 + $0x68] sm:$0xff] (!%p163_p2)   ;;  %vm726_vm1 = vsmask.f32 (!%p163_p2), 4352  ;;  %vm479_vm3 = vcmask (!%p163_p2), 1046528  }
   0x8   : > { %2036 = vmatpush3.bf16.msra.mxu0 (!%p163_p2), %v2199_v1  ;;  %1957 = vmatprep.subr.bf16.mxu1 (!%p163_p2), %v2200_v2  ;;  %v2205_v8 = vld [vmem:[%s2682_s1 + $0x118] sm:$0xff] (!%p163_p2)   ;;  %v2207_v10 = vld [vmem:[%s2682_s1 + $0x120] sm:$0xff] (!%p163_p2)   ;;  %v2209_v15 = vld [vmem:[%s2682_s1 + $0x128] sm:$0xff] (!%p163_p2)   ;;  %vm980_vm4 = vcmask (!%p163_p2), 1045504   ;;  %vm1102_vm5 = vsmask.f32 (!%p163_p2), 5376 }
   0x9   : > { %2037 = vmatprep.subr.bf16.mxu0 (!%p163_p2), %v2201_v4  ;;  %2197 = vset.pattern.permute.xlu1 (!%p163_p2), %v2286_v3  ;;  %v2210_v23 = vld [vmem:[%s2682_s1 + $0x70] sm:$0xff] (!%p163_p2)   ;;  %v2212_v29 = vld [vmem:[%s2682_s1 + $0x78] sm:$0xff] (!%p163_p2)   ;;  %v2214_v43 = vld [vmem:[%s2682_s1] sm:$0xff] (!%p163_p2)   ;;  %vm1499_vm6 = vcmask (!%p163_p2), 1043456   ;;  %vm1500_vm7 = vsmask.f32 (!%p163_p2), 3328 }
   0xa   : > { %v2211_v24 = vld [vmem:[%s2682_s1 + $0x130] sm:$0xff] (!%p163_p2)   ;;  %v2213_v30 = vld [vmem:[%s2682_s1 + $0x138] sm:$0xff] (!%p163_p2)   ;;  %v2215_v45 = vld [vmem:[%s2682_s1 + $0x140] sm:$0xff] (!%p163_p2)   ;;  %vm1419_vm9 = vcmask (!%p163_p2), 1040384   ;;  %vm1550_vm10 = vcmask (!%p163_p2), 1043459   ;;  %vm1558_vm12 = vcmask (!%p163_p2), 1042432  }
   0xb   : > { %1958 = vmatpush3.bf16.msra.mxu1 (!%p163_p2), %v2200_v2  ;;  %v2216_v49 = vld [vmem:[%s2682_s1 + $0x8] sm:$0xff] (!%p163_p2)   ;;  %v2218_v54 = vld [vmem:[%s2682_s1 + $0x10] sm:$0xff] (!%p163_p2)   ;;  %v2220_v56 = vld [vmem:[%s2682_s1 + $0x18] sm:$0xff] (!%p163_p2)   ;;  %vm1551_vm11 = vsmask.f32 (!%p163_p2), 7950 }
   0xc   : > { %2038 = vmatpush3.bf16.msra.mxu0 (!%p163_p2), %v2201_v4  ;;  %1959 = vmatprep.subr.bf16.mxu1 (!%p163_p2), %v2202_v5  ;;  %v2217_v51 = vld [vmem:[%s2682_s1 + $0x148] sm:$0xff] (!%p163_p2)   ;;  %v2219_v55 = vld [vmem:[%s2682_s1 + $0x150] sm:$0xff] (!%p163_p2)   ;;  %v2221_v57 = vld [vmem:[%s2682_s1 + $0x158] sm:$0xff] (!%p163_p2)   ;;  %vm1559_vm13 = vsmask.f32 (!%p163_p2), 2304 }
   0xd   : > { %s2687_s16 = smov (!%p188_p3, %s1626_s16), 1  ;;  %2039 = vmatprep.subr.bf16.mxu0 %v2203_v6  ;;  %v2222_v58 = vld [vmem:[%s2682_s1 + $0x20] sm:$0xff]   ;;  %v2224_v60 = vld [vmem:[%s2682_s1 + $0x28] sm:$0xff]   ;;  %v2226_v62 = vld [vmem:[%s2682_s1 + $0x30] sm:$0xff]   ;;  %vm1515_vm15 = vsmask.f32 7440 }
   0xe   : > { %s2186_s27 = smul.u32 20, %s2687_s16  ;;  %v2223_v59 = vld [vmem:[%s2682_s1 + $0x160] sm:$0xff]   ;;  %v2225_v61 = vld [vmem:[%s2682_s1 + $0x168] sm:$0xff]   ;;  %v2227_v0 = vld [vmem:[%s2682_s1 + $0x170] sm:$0xff]  }
   0xf   : > { %1960 = vmatpush3.bf16.msra.mxu1 %v2202_v5  ;;  %v2228_v2 = vld [vmem:[%s2682_s1 + $0x38] sm:$0xff]   ;;  %vm1501_vm8 = vmand %vm1499_vm6, %vm1500_vm7 }
  0x10   : > { %s2343_s6 = scalar_lea.vmem %s2685_s4, %s2186_s27  ;;  %2040 = vmatpush3.bf16.msra.mxu0 %v2203_v6  ;;  %1961 = vmatprep.subr.bf16.mxu1 %v2204_v7  ;;  %s2362_s18 = scalar_lea.vmem %s2681_s0, %s2186_s27  ;;  %v2229_v4 = vld [vmem:[%s2682_s1 + $0x178] sm:$0xff]   ;;  %v2231_v6 = vld [vmem:[%s2682_s1 + $0x180] sm:$0xff]   ;;  %vm1552_vm14 = vmand %vm1550_vm10, %vm1551_vm11 }
  0x11   : > { %1570 = vst [vmem:[%s2343_s6 + $0x10] sm:$0x3] %v2286_v3  ;;  %2041 = vmatprep.subr.bf16.mxu0 %v2205_v8  ;;  %v2368_v12 = vld [vmem:[%s2362_s18] sm:$0xf]  ;;  %v2371_v13 = vld [vmem:[%s2362_s18 + $0x4] sm:$0xf] }
  0x12   : > { %v2374_v14 = vld [vmem:[%s2362_s18 + $0x8] sm:$0xf]  ;;  %v204_v16 = vmax.bf16 %v2286_v3, %v2368_v12  ;;  %v205_v17 = vmax.bf16 %v2286_v3, %v2371_v13  ;;  %v2386_v19 = vld [vmem:[%s2362_s18 + $0xc] sm:$0xf]  ;;  %v203_v63 = vld [vmem:[%s2362_s18 + $0x10] sm:$0x3] }
  0x13   : > { %1962 = vmatpush3.bf16.msra.mxu1 %v2204_v7  ;;  %v206_v18 = vmax.bf16 %v2286_v3, %v2374_v14  ;;  %v2394_v22 = vmax.bf16 %v2286_v3, %v2386_v19  ;;  %v208_v1 = vmax.bf16 %v2286_v3, %v203_v63  ;;  %v2230_v3 = vld [vmem:[%s2682_s1 + $0x80] sm:$0xff]  }
  0x14   : > { %2042 = vmatpush3.bf16.msra.mxu0 %v2205_v8  ;;  %1963 = vmatprep.subr.bf16.mxu1 %v2206_v9  ;;  %v2388_v20 = vcombine.low %v204_v16, %v205_v17  ;;  %v2233_v16 = vld [vmem:[%s2682_s1 + $0x188] sm:$0xff]  }
  0x15   : > { %2043 = vmatprep.subr.bf16.mxu0 %v2207_v10  ;;  %v2390_v21 = vcombine.low %v206_v18, %v206_v18  ;;  %v2406_v28 = vcombine.low %v206_v18, %v2394_v22  ;;  %v2433_v52 = vcombine.low %v205_v17, %v206_v18  ;;  %v2481_v5 = vcombine.low %v2394_v22, %v208_v1  ;;  %v2263_v1 = vld [vmem:[%s2682_s1 + $0x208] sm:$0xff]  }
  0x16   : > { %v252_v25 = vshrl.u32 %v2388_v20, 16  ;;  %v254_v26 = vshll.u32 %v2388_v20, 16  ;;  %v605_v48 = vrot.slane %v2388_v20, 3  ;;  %v480_v7 = vrot.slane %v2388_v20, 1 }
  0x17   : > { %1964 = vmatpush3.bf16.msra.mxu1 %v2206_v9  ;;  %v259_v27 = vshll.u32 %v2390_v21, 16  ;;  %v731_v35 = vshrl.u32 %v2406_v28, 16  ;;  %v734_v36 = vshll.u32 %v2406_v28, 16  ;;  %v263_v41 = vshrl.u32 %v2390_v21, 16 }
  0x18   : > { %2044 = vmatpush3.bf16.msra.mxu0 %v2207_v10  ;;  %1965 = vmatprep.subr.bf16.mxu1 %v2208_v11  ;;  %v256_v31 = vrot.slane %v254_v26, 1  ;;  %v727_v33 = vrot.slane %v252_v25, 3  ;;  %v728_v34 = vrot.slane %v254_v26, 4  ;;  %v606_v50 = vrot.slane %v2406_v28, 3  ;;  %v2239_v26 = vld [vmem:[%s2682_s1 + $0x1a0] sm:$0xff]  }
  0x19   : > { %2045 = vmatprep.subr.bf16.mxu0 %v2209_v15  ;;  %v261_v32 = vrot.slane %v259_v27, 1  ;;  %v733_v39 = vrot.slane %v731_v35, 3  ;;  %v736_v40 = vrot.slane %v734_v36, 4  ;;  %v481_v8 = vrot.slane %v2390_v21, 1  ;;  %v2240_v27 = vld [vmem:[%s2682_s1 + $0xa8] sm:$0xff]   ;;  %v2244_v36 = vld [vmem:[%s2682_s1 + $0xb8] sm:$0xff]  }
  0x1a   : > { %v257_v37 = vor.u32 %v256_v31, %v252_v25  ;;  %v729_v38 = vor.u32 %v728_v34, %v727_v33  ;;  %v2438_v53 = vsel %vm604_vm2, %v605_v48, %v606_v50  ;;  %v1757_v9 = vcombine.low %v2394_v22, %v2394_v22  ;;  %v2235_v22 = vld [vmem:[%s2682_s1 + $0x190] sm:$0xff]   ;;  %v2238_v25 = vld [vmem:[%s2682_s1 + $0xa0] sm:$0xff]  }
  0x1b   : > { %1966 = vmatpush3.bf16.msra.mxu1 %v2208_v11  ;;  %v737_v44 = vor.u32 %v736_v40, %v733_v39  ;;  %v265_v47 = vor.u32 %v263_v41, %v261_v32  ;;  %v981_v10 = vrot.slane %v2433_v52, 2  ;;  %v982_v11 = vrot.slane %v2481_v5, 2  ;;  %v2243_v31 = vld [vmem:[%s2682_s1 + $0x1b0] sm:$0xff]   ;;  %v2266_v28 = vld [vmem:[%s2682_s1 + $0x220] sm:$0xff]  }
  0x1c   : > { %2046 = vmatpush3.bf16.msra.mxu0 %v2209_v15  ;;  %1967 = vmatprep.subr.bf16.mxu1 %v2210_v23  ;;  %v262_v42 = vsel %vm250_vm0, %v257_v37, %v261_v32  ;;  %v2232_v15 = vld [vmem:[%s2682_s1 + $0x88] sm:$0xff]   ;;  %v482_v17 = vsel %vm479_vm3, %v480_v7, %v481_v8  ;;  %v1104_v32 = vshrl.u32 %v2433_v52, 16  ;;  %v1107_v33 = vshll.u32 %v2433_v52, 16  ;;  %v2245_v37 = vld [vmem:[%s2682_s1 + $0x1b8] sm:$0xff]   ;;  %vm1560_vm0 = vmand %vm1558_vm12, %vm1559_vm13 }
  0x1d   : > { %2047 = vmatprep.subr.bf16.mxu0 %v2211_v24  ;;  %1971 = vmatprep.mubr.bf16.mxu1 %v262_v42  ;;  %v738_v46 = vsel %vm726_vm1, %v729_v38, %v737_v44  ;;  %v983_v18 = vsel %vm980_vm4, %v981_v10, %v982_v11  ;;  %v1112_v34 = vshrl.u32 %v2481_v5, 16  ;;  %v1115_v35 = vshll.u32 %v2481_v5, 16  ;;  %v2246_v42 = vld [vmem:[%s2682_s1 + $0xc0] sm:$0xff]   ;;  %v2271_v7 = vld [vmem:[%s2683_s2 + $0x8] sm:$0xff]   ;;  %vm1516_vm1 = vmor %vm1500_vm7, %vm1515_vm15 }
  0x1e   : > { %2051 = vmatprep.mubr.bf16.mxu0 %v738_v46  ;;  %v1106_v38 = vrot.slane %v1104_v32, 2  ;;  %v1109_v39 = vrot.slane %v1107_v33, 3  ;;  %v2248_v46 = vld [vmem:[%s2682_s1 + $0xc8] sm:$0xff]   ;;  %v1238_v63 = vrot.slane %v2433_v52, 3  ;;  %v2274_v10 = vld [vmem:[%s2683_s2 + $0x20] sm:$0xff]  }
  0x1f   : > { %1968 = vmatpush3.bf16.msra.mxu1 %v2210_v23  ;;  %v2236_v23 = vld [vmem:[%s2682_s1 + $0x98] sm:$0xff]   ;;  %v1114_v40 = vrot.slane %v1112_v34, 2  ;;  %v1117_v41 = vrot.slane %v1115_v35, 3  ;;  %vm1565_vm3 = vsmask.f32 7946 }
  0x20   : > { %2048 = vmatpush3.bf16.msra.mxu0 %v2211_v24  ;;  %1969 = vmatprep.subr.bf16.mxu1 %v2212_v29  ;;  %v2237_v24 = vld [vmem:[%s2682_s1 + $0x198] sm:$0xff]  }
  0x21   : > { %2049 = vmatprep.subr.bf16.mxu0 %v2213_v30 }
  0x23   : > { %1970 = vmatpush3.bf16.msra.mxu1 %v2212_v29  ;;  %v2241_v29 = vld [vmem:[%s2682_s1 + $0x1a8] sm:$0xff]  }
  0x24   : > { %2050 = vmatpush3.bf16.msra.mxu0 %v2213_v30  ;;  %1975 = vmatprep.subr.bf16.mxu1 %v2214_v43  ;;  %v2242_v30 = vld [vmem:[%s2682_s1 + $0xb0] sm:$0xff]  }
  0x25   : > { %2055 = vmatprep.subr.bf16.mxu0 %v2215_v45 }
  0x26   : > { %1972 = vmatmul.mubr.bf16.vlgmr.msra.gmra.mrb[0].mxu1 %v265_v47  ;;  %v2249_v47 = vld [vmem:[%s2682_s1 + $0x1c8] sm:$0xff]  }
  0x27   : > { %1976 = vmatpush3.bf16.msra.mxu1 %v2214_v43  ;;  %2052 = vmatmul.mubr.bf16.vlgmr.msra.gmra.mrb[0].mxu0 %v737_v44  ;;  %v2247_v43 = vld [vmem:[%s2682_s1 + $0x1c0] sm:$0xff]   ;;  %v1110_v44 = vor.u32 %v1109_v39, %v1106_v38 }
  0x28   : > { %2056 = vmatpush3.bf16.msra.mxu0 %v2215_v45  ;;  %1977 = vmatprep.subr.bf16.mxu1 %v2216_v49  ;;  %v1118_v45 = vor.u32 %v1117_v41, %v1114_v40  ;;  %v1502_v39 = vld [vmem:[%s2343_s6] sm:$0xf]  ;;  %v1365_v41 = vunpack.c.l.bf16 %v2374_v14 }
  0x29   : > { %2057 = vmatprep.subr.bf16.mxu0 %v2217_v51  ;;  %1991 = vmatprep.mubr.bf16.mxu1 %v2388_v20  ;;  %v2234_v20 = vld [vmem:[%s2682_s1 + $0x90] sm:$0xff]   ;;  %v1503_v40 = vsel %vm1501_vm8, 0, %v1502_v39 }
  0x2a   : > { %2071 = vmatprep.mubr.bf16.mxu0 %v2433_v52  ;;  %v1119_v48 = vsel %vm1102_vm5, %v1110_v44, %v1118_v45  ;;  %v2264_v52 = vld [vmem:[%s2682_s1 + $0x210] sm:$0xff]   ;;  %1504 = vst [vmem:[%s2343_s6] sm:$0xf] %v1503_v40  ;;  %v1364_v44 = vunpack.c.l.bf16 %v2371_v13 }
  0x2b   : > { %1978 = vmatpush3.bf16.msra.mxu1 %v2216_v49  ;;  %v2250_v49 = vld [vmem:[%s2682_s1 + $0xd0] sm:$0xff]  }
  0x2c   : > { %2058 = vmatpush3.bf16.msra.mxu0 %v2217_v51  ;;  %1979 = vmatprep.subr.bf16.mxu1 %v2218_v54  ;;  %v2251_v51 = vld [vmem:[%s2682_s1 + $0x1d0] sm:$0xff]  }
  0x2d   : > { %2059 = vmatprep.subr.bf16.mxu0 %v2219_v55 }
  0x2f   : > { %1980 = vmatpush3.bf16.msra.mxu1 %v2218_v54  ;;  %v2253_v54 = vld [vmem:[%s2682_s1 + $0x1d8] sm:$0xff]  }
  0x30   : > { %2060 = vmatpush3.bf16.msra.mxu0 %v2219_v55  ;;  %1981 = vmatprep.subr.bf16.mxu1 %v2220_v56  ;;  %v2255_v55 = vld [vmem:[%s2682_s1 + $0x1e0] sm:$0xff]  }
  0x31   : > { %2061 = vmatprep.subr.bf16.mxu0 %v2221_v57 }
  0x33   : > { %1982 = vmatpush3.bf16.msra.mxu1 %v2220_v56  ;;  %v2256_v56 = vld [vmem:[%s2682_s1 + $0xe8] sm:$0xff]  }
  0x34   : > { %2062 = vmatpush3.bf16.msra.mxu0 %v2221_v57  ;;  %1983 = vmatprep.subr.bf16.mxu1 %v2222_v58  ;;  %v2257_v57 = vld [vmem:[%s2682_s1 + $0x1e8] sm:$0xff]  }
  0x35   : > { %2063 = vmatprep.subr.bf16.mxu0 %v2223_v59 }
  0x37   : > { %1984 = vmatpush3.bf16.msra.mxu1 %v2222_v58  ;;  %v2258_v58 = vld [vmem:[%s2682_s1 + $0xf0] sm:$0xff]  }
  0x38   : > { %2064 = vmatpush3.bf16.msra.mxu0 %v2223_v59  ;;  %1985 = vmatprep.subr.bf16.mxu1 %v2224_v60  ;;  %v2259_v59 = vld [vmem:[%s2682_s1 + $0x1f0] sm:$0xff]  }
  0x39   : > { %2065 = vmatprep.subr.bf16.mxu0 %v2225_v61 }
  0x3b   : > { %1986 = vmatpush3.bf16.msra.mxu1 %v2224_v60  ;;  %v2260_v60 = vld [vmem:[%s2682_s1 + $0xf8] sm:$0xff]  }
  0x3c   : > { %2066 = vmatpush3.bf16.msra.mxu0 %v2225_v61  ;;  %1987 = vmatprep.subr.bf16.mxu1 %v2226_v62  ;;  %v2261_v61 = vld [vmem:[%s2682_s1 + $0x1f8] sm:$0xff]  }
  0x3d   : > { %2067 = vmatprep.subr.bf16.mxu0 %v2227_v0 }
  0x3f   : > { %1988 = vmatpush3.bf16.msra.mxu1 %v2226_v62  ;;  %v2262_v62 = vld [vmem:[%s2682_s1 + $0x200] sm:$0xff]  }
  0x40   : > { %2068 = vmatpush3.bf16.msra.mxu0 %v2227_v0  ;;  %1989 = vmatprep.subr.bf16.mxu1 %v2228_v2  ;;  %v1239_v0 = vrot.slane %v2481_v5, 3  ;;  %v2268_v5 = vld [vmem:[%s2682_s1 + $0x230] sm:$0xff]  }
  0x41   : > { %2069 = vmatprep.subr.bf16.mxu0 %v2229_v4 }
  0x43   : > { %1990 = vmatpush3.bf16.msra.mxu1 %v2228_v2  ;;  %v1240_v2 = vsel %vm604_vm2, %v1238_v63, %v1239_v0  ;;  %vm1564_vm2 = vcmask 1043458  }
  0x44   : > { %2070 = vmatpush3.bf16.msra.mxu0 %v2229_v4  ;;  %1995 = vmatprep.subr.bf16.mxu1 %v2230_v3  ;;  %v2265_v4 = vld [vmem:[%s2682_s1 + $0x218] sm:$0xff]   ;;  %vm1566_vm4 = vmand %vm1564_vm2, %vm1565_vm3 }
  0x45   : > { %2075 = vmatprep.subr.bf16.mxu0 %v2231_v6 }
  0x46   : > { %1992 = vmatmul.mubr.bf16.vlgmr.msra.gmra.mrb[0].mxu1 %v2390_v21  ;;  %v2252_v21 = vld [vmem:[%s2682_s1 + $0xd8] sm:$0xff]  }
  0x47   : > { %1996 = vmatpush3.bf16.msra.mxu1 %v2230_v3  ;;  %2072 = vmatmul.mubr.bf16.vlgmr.msra.gmra.mrb[0].mxu0 %v1757_v9  ;;  %v2269_v3 = vld [vmem:[%s2682_s1 + $0x238] sm:$0xff]  }
  0x48   : > { %2076 = vmatpush3.bf16.msra.mxu0 %v2231_v6  ;;  %1997 = vmatprep.subr.bf16.mxu1 %v2232_v15  ;;  %v2270_v6 = vld [vmem:[%s2683_s2] sm:$0xff]   ;;  %v2273_v9 = vld [vmem:[%s2683_s2 + $0x18] sm:$0xff]  }
  0x49   : > { %2077 = vmatprep.subr.bf16.mxu0 %v2233_v16  ;;  %2011 = vmatprep.mubr.bf16.mxu1 %v482_v17  ;;  %v1480_v17 = vld [vmem:[%s2684_s3 + $0x10] sm:$0x3f] }
  0x4a   : > { %2091 = vmatprep.mubr.bf16.mxu0 %v983_v18  ;;  %v1479_v18 = vld [vmem:[%s2684_s3 + $0x8] sm:$0xff]  ;;  %1493 = vperm.xlu0 %2196, %v1480_v17  }
  0x4b   : > { %1998 = vmatpush3.bf16.msra.mxu1 %v2232_v15  ;;  %v2276_v15 = vld [vmem:[%s2683_s2 + $0x30] sm:$0xff]   ;;  %1488 = vperm.xlu1 %2197, %v1479_v18  }
  0x4c   : > { %2078 = vmatpush3.bf16.msra.mxu0 %v2233_v16  ;;  %1999 = vmatprep.subr.bf16.mxu1 %v2234_v20  ;;  %v2277_v16 = vld [vmem:[%s2683_s2 + $0x38] sm:$0xff]  }
  0x4d   : > { %2079 = vmatprep.subr.bf16.mxu0 %v2235_v22 }
  0x4f   : > { %2000 = vmatpush3.bf16.msra.mxu1 %v2234_v20  ;;  %v1478_v20 = vld [vmem:[%s2684_s3] sm:$0xff] }
  0x50   : > { %2080 = vmatpush3.bf16.msra.mxu0 %v2235_v22  ;;  %2001 = vmatprep.subr.bf16.mxu1 %v2236_v23 }
  0x51   : > { %2081 = vmatprep.subr.bf16.mxu0 %v2237_v24  ;;  %1483 = vperm.xlu0 %2196, %v1478_v20  }
  0x53   : > { %2002 = vmatpush3.bf16.msra.mxu1 %v2236_v23 }
  0x54   : > { %2082 = vmatpush3.bf16.msra.mxu0 %v2237_v24  ;;  %2003 = vmatprep.subr.bf16.mxu1 %v2238_v25 }
  0x55   : > { %2083 = vmatprep.subr.bf16.mxu0 %v2239_v26 }
  0x57   : > { %2004 = vmatpush3.bf16.msra.mxu1 %v2238_v25 }
  0x58   : > { %2084 = vmatpush3.bf16.msra.mxu0 %v2239_v26  ;;  %2005 = vmatprep.subr.bf16.mxu1 %v2240_v27 }
  0x59   : > { %2085 = vmatprep.subr.bf16.mxu0 %v2241_v29 }
  0x5b   : > { %2006 = vmatpush3.bf16.msra.mxu1 %v2240_v27 }
  0x5c   : > { %2086 = vmatpush3.bf16.msra.mxu0 %v2241_v29  ;;  %2007 = vmatprep.subr.bf16.mxu1 %v2242_v30 }
  0x5d   : > { %2087 = vmatprep.subr.bf16.mxu0 %v2243_v31 }
  0x5f   : > { %2008 = vmatpush3.bf16.msra.mxu1 %v2242_v30 }
  0x60   : > { %2088 = vmatpush3.bf16.msra.mxu0 %v2243_v31  ;;  %2009 = vmatprep.subr.bf16.mxu1 %v2244_v36 }
  0x61   : > { %2089 = vmatprep.subr.bf16.mxu0 %v2245_v37 }
  0x63   : > { %2010 = vmatpush3.bf16.msra.mxu1 %v2244_v36 }
  0x64   : > { %2090 = vmatpush3.bf16.msra.mxu0 %v2245_v37  ;;  %2015 = vmatprep.subr.bf16.mxu1 %v2246_v42 }
  0x65   : > { %2095 = vmatprep.subr.bf16.mxu0 %v2247_v43 }
  0x66   : > { %2012 = vmatmul.mubr.bf16.vlgmr.msra.gmra.mrb[0].mxu1 %v481_v8  ;;  %v2272_v8 = vld [vmem:[%s2683_s2 + $0x10] sm:$0xff]  }
  0x67   : > { %2016 = vmatpush3.bf16.msra.mxu1 %v2246_v42  ;;  %2092 = vmatmul.mubr.bf16.vlgmr.msra.gmra.mrb[0].mxu0 %v982_v11  ;;  %v2275_v11 = vld [vmem:[%s2683_s2 + $0x28] sm:$0xff]   ;;  %v1366_v42 = vunpack.c.l.bf16 %v2386_v19 }
  0x68   : > { %2096 = vmatpush3.bf16.msra.mxu0 %v2247_v43  ;;  %2017 = vmatprep.subr.bf16.mxu1 %v2248_v46  ;;  %v1363_v43 = vunpack.c.l.bf16 %v2368_v12 }
  0x69   : > { %2097 = vmatprep.subr.bf16.mxu0 %v2249_v47  ;;  %2031 = vmatprep.mubr.bf16.mxu1 %v2438_v53  ;;  %v2254_v53 = vld [vmem:[%s2682_s1 + $0xe0] sm:$0xff]  }
  0x6a   : > { %2111 = vmatprep.mubr.bf16.mxu0 %v1119_v48  ;;  %v1420_v48 = vrot.slane %v1363_v43, 7 }
  0x6b   : > { %2018 = vmatpush3.bf16.msra.mxu1 %v2248_v46  ;;  %v1425_v46 = vrot.slane %v1366_v42, 7 }
  0x6c   : > { %2098 = vmatpush3.bf16.msra.mxu0 %v2249_v47  ;;  %2019 = vmatprep.subr.bf16.mxu1 %v2250_v49 }
  0x6d   : > { %2099 = vmatprep.subr.bf16.mxu0 %v2251_v51 }
  0x6f   : > { %2020 = vmatpush3.bf16.msra.mxu1 %v2250_v49  ;;  %v1421_v49 = vrot.slane %v1364_v44, 7 }
  0x70   : > { %2100 = vmatpush3.bf16.msra.mxu0 %v2251_v51  ;;  %2021 = vmatprep.subr.bf16.mxu1 %v2252_v21 }
  0x71   : > { %2101 = vmatprep.subr.bf16.mxu0 %v2253_v54 }
  0x73   : > { %2022 = vmatpush3.bf16.msra.mxu1 %v2252_v21  ;;  %v1422_v21 = vsel %vm1419_vm9, %v1420_v48, %v1421_v49 }
  0x74   : > { %2102 = vmatpush3.bf16.msra.mxu0 %v2253_v54  ;;  %2023 = vmatprep.subr.bf16.mxu1 %v2254_v53 }
  0x75   : > { %2103 = vmatprep.subr.bf16.mxu0 %v2255_v55 }
  0x77   : > { %2024 = vmatpush3.bf16.msra.mxu1 %v2254_v53 }
  0x78   : > { %2104 = vmatpush3.bf16.msra.mxu0 %v2255_v55  ;;  %2025 = vmatprep.subr.bf16.mxu1 %v2256_v56 }
  0x79   : > { %2105 = vmatprep.subr.bf16.mxu0 %v2257_v57 }
  0x7b   : > { %2026 = vmatpush3.bf16.msra.mxu1 %v2256_v56 }
  0x7c   : > { %2106 = vmatpush3.bf16.msra.mxu0 %v2257_v57  ;;  %2027 = vmatprep.subr.bf16.mxu1 %v2258_v58 }
  0x7d   : > { %2107 = vmatprep.subr.bf16.mxu0 %v2259_v59 }
  0x7f   : > { %2028 = vmatpush3.bf16.msra.mxu1 %v2258_v58 }
  0x80   : > { %2108 = vmatpush3.bf16.msra.mxu0 %v2259_v59  ;;  %2029 = vmatprep.subr.bf16.mxu1 %v2260_v60 }
  0x81   : > { %2109 = vmatprep.subr.bf16.mxu0 %v2261_v61 }
  0x83   : > { %2030 = vmatpush3.bf16.msra.mxu1 %v2260_v60 }
  0x84   : > { %2110 = vmatpush3.bf16.msra.mxu0 %v2261_v61  ;;  %2135 = vmatprep.subr.bf16.mxu1 %v2270_v6 }
  0x85   : > { %2115 = vmatprep.subr.bf16.mxu0 %v2262_v62 }
  0x86   : > { %2032 = vmatmul.mubr.bf16.vlgmr.msra.gmra.mrb[0].mxu1 %v606_v50  ;;  %v2267_v50 = vld [vmem:[%s2682_s1 + $0x228] sm:$0xff]  }
  0x87   : > { %2112 = vmatmul.mubr.bf16.vlgmr.msra.gmra.mrb[0].mxu0 %v1118_v45  ;;  %2136 = vmatpush3.bf16.msra.mxu1 %v2270_v6  ;;  %v1423_v45 = vrot.slane %v1365_v41, 7 }
  0x88   : > { %2116 = vmatpush3.bf16.msra.mxu0 %v2262_v62  ;;  %2131 = vmatprep.mubr.bf16.mxu0 %v1240_v2 }
  0x89   : > { %2117 = vmatprep.subr.bf16.mxu0 %v2263_v1  ;;  %2137 = vmatprep.subr.bf16.mxu1 %v2271_v7  ;;  %v1426_v51 = vsel %vm1419_vm9, %v1423_v45, %v1425_v46  ;;  %v1424_v57 = vsel %vm1419_vm9, %v1421_v49, %v1423_v45 }
  0x8b   : > { %2138 = vmatpush3.bf16.msra.mxu1 %v2271_v7 }
  0x8c   : > { %2118 = vmatpush3.bf16.msra.mxu0 %v2263_v1  ;;  %2139 = vmatprep.subr.bf16.mxu1 %v2272_v8 }
  0x8d   : > { %2119 = vmatprep.subr.bf16.mxu0 %v2264_v52 }
  0x8f   : > { %2140 = vmatpush3.bf16.msra.mxu1 %v2272_v8 }
  0x90   : > { %2120 = vmatpush3.bf16.msra.mxu0 %v2264_v52  ;;  %2141 = vmatprep.subr.bf16.mxu1 %v2273_v9 }
  0x91   : > { %2121 = vmatprep.subr.bf16.mxu0 %v2265_v4 }
  0x93   : > { %2142 = vmatpush3.bf16.msra.mxu1 %v2273_v9 }
  0x94   : > { %2122 = vmatpush3.bf16.msra.mxu0 %v2265_v4  ;;  %2143 = vmatprep.subr.bf16.mxu1 %v2274_v10  ;;  %v1553_v4 = vld [vmem:[%s2343_s6] sm:$0x8] }
  0x95   : > { %2123 = vmatprep.subr.bf16.mxu0 %v2266_v28 }
  0x97   : > { %2144 = vmatpush3.bf16.msra.mxu1 %v2274_v10  ;;  %v1561_v10 = vld [vmem:[%s2343_s6 + $0xc] sm:$0x7] }
  0x98   : > { %2124 = vmatpush3.bf16.msra.mxu0 %v2266_v28  ;;  %2145 = vmatprep.subr.bf16.mxu1 %v2275_v11 }
  0x99   : > { %2125 = vmatprep.subr.bf16.mxu0 %v2267_v50 }
  0x9b   : > { %2146 = vmatpush3.bf16.msra.mxu1 %v2275_v11 }
  0x9c   : > { %2126 = vmatpush3.bf16.msra.mxu0 %v2267_v50  ;;  %2147 = vmatprep.subr.bf16.mxu1 %v2276_v15 }
  0x9d   : > { %2127 = vmatprep.subr.bf16.mxu0 %v2268_v5 }
  0x9f   : > { %2148 = vmatpush3.bf16.msra.mxu1 %v2276_v15 }
  0xa0   : > { %2128 = vmatpush3.bf16.msra.mxu0 %v2268_v5  ;;  %2149 = vmatprep.subr.bf16.mxu1 %v2277_v16 }
  0xa1   : > { %2129 = vmatprep.subr.bf16.mxu0 %v2269_v3 }
  0xa3   : > { %2150 = vmatpush3.bf16.msra.mxu1 %v2277_v16 }
  0xa4   : > { %2130 = vmatpush3.bf16.msra.mxu0 %v2269_v3 }
  0xa7   : > { %2132 = vmatmul.mubr.bf16.vlgmr.msra.gmra.mrb[0].mxu0 %v1239_v0 }
  0xc9   : > { %v1494_v47 = vpop.permute.xlu0 %1493 }
  0xca   : > { %v1489_v59 = vpop.permute.xlu1 %1488 }
  0xd0   : > { %v1484_v56 = vpop.permute.xlu0 %1483 }
 0x159   : > { %v2033_v22 = vpop.f32.mrb[0].mxu1 }
 0x15a   : > { %v692_v23 = vpop.f32.mrb[1].mxu1 }
 0x15b   : > { %v2034_v24 = vpop.f32.mrb[2].mxu1 }
 0x15c   : > { %v695_v25 = vpop.f32.mrb[3].mxu1 }
 0x17a   : > { %v2133_v26 = vpop.f32.mrb[0].mxu0 }
 0x17b   : > { %v2155_v27 = vadd.f32 %v2133_v26, %v2033_v22  ;;  %v1325_v29 = vpop.f32.mrb[1].mxu0 }
 0x17c   : > { %v2156_v30 = vadd.f32 %v1325_v29, %v692_v23  ;;  %v2134_v31 = vpop.f32.mrb[2].mxu0 }
 0x17d   : > { %v1328_v32 = vpop.f32.mrb[3].mxu0  ;;  %v1344_v34 = vmax.f32 %v2155_v27, 0.0 }
 0x17e   : > { %v2157_v33 = vadd.f32 %v1328_v32, %v695_v25  ;;  %v1342_v35 = vmax.f32 %v2156_v30, 0.0 }
 0x17f   : > { %v1346_v38 = vpack.c.bf16 %v1344_v34, %v1344_v34 }
 0x180   : > { %v1343_v36 = vmax.f32 %v2157_v33, 0.0 }
 0x182   : > { %v1345_v37 = vpack.c.bf16 %v1343_v36, %v1342_v35 }
 0x184   : > { %2151 = vmatprep.mubr.bf16.mxu1 %v1345_v37 }
 0x185   : > { %2152 = vmatmul.mubr.bf16.vlgmr.msra.gmra.mrb[4].mxu1 %v1346_v38 }
 0x258   : > { %v2153_v54 = vpop.f32.mrb[4].mxu1 }
 0x259   : > { %v1473_v53 = vadd.f32 %v2153_v54, %v1426_v51  ;;  %v1464_v55 = vpop.f32.mrb[5].mxu1 }
 0x25a   : > { %v1465_v14 = vadd.f32 %v1464_v55, %v1422_v21  ;;  %v2154_v58 = vpop.f32.mrb[6].mxu1 }
 0x25b   : > { %v1498_v19 = vmul.f32 %v1494_v47, %v1473_v53  ;;  %v1467_v12 = vpop.f32.mrb[7].mxu1 }
 0x25c   : > { %v1496_v13 = vmul.f32 %v1484_v56, %v1465_v14  ;;  %v1468_v60 = vadd.f32 %v1467_v12, %v1424_v57 }
 0x25d   : > { %v1854_v61 = vpack.c.bf16 %v1498_v19, %v1498_v19 }
 0x25e   : > { %v1852_v62 = vpack.c.bf16 %v1496_v13, %v1496_v13  ;;  %v1497_v63 = vmul.f32 %v1489_v59, %v1468_v60 }
 0x25f   : > { %v1537_v0 = vshll.u32 %v1854_v61, 16  ;;  %v1541_v1 = vshrl.u32 %v1854_v61, 16 }
 0x260   : > { %v1518_v2 = vshll.u32 %v1852_v62, 16  ;;  %v1521_v52 = vshrl.u32 %v1852_v62, 16  ;;  %v1853_v28 = vpack.c.bf16 %v1497_v63, %v1497_v63 }
 0x261   : > { %v1539_v50 = vrot.slane %v1537_v0, 5  ;;  %v1543_v5 = vrot.slane %v1541_v1, 4 }
 0x262   : > { %v1520_v3 = vrot.slane %v1518_v2, 5  ;;  %v1523_v6 = vrot.slane %v1521_v52, 4  ;;  %v1527_v7 = vshll.u32 %v1853_v28, 16  ;;  %v1531_v8 = vshrl.u32 %v1853_v28, 16 }
 0x263   : > { %v1544_v9 = vor.u32 %v1543_v5, %v1539_v50 }
 0x264   : > { %v1524_v11 = vor.u32 %v1523_v6, %v1520_v3  ;;  %v1554_v15 = vsel %vm1552_vm14, %v1520_v3, %v1553_v4  ;;  %v1529_v16 = vrot.slane %v1527_v7, 5  ;;  %v1533_v17 = vrot.slane %v1531_v8, 4 }
 0x265   : > { %v1545_v18 = vrot.slane %v1544_v9, 4  ;;  %1555 = vst [vmem:[%s2343_s6] sm:$0x8] %v1554_v15 }
 0x266   : > { %v1525_v20 = vrot.slane %v1524_v11, 4  ;;  %v1534_v22 = vor.u32 %v1533_v17, %v1529_v16 }
 0x267   : > { %v1562_v23 = vsel %vm1560_vm0, %v1545_v18, %v1561_v10 }
 0x268   : > { %1563 = vst [vmem:[%s2343_s6 + $0xc] sm:$0x7] %v1562_v23  ;;  %v1530_v24 = vsel %vm1516_vm1, %v1525_v20, %v1529_v16  ;;  %v1535_v25 = vrot.slane %v1534_v22, 4 }
 0x269   : > { %1556 = vst [vmem:[%s2343_s6 + $0x4] sm:$0xf] %v1530_v24 }
 0x26a   : > { %v1540_v26 = vsel %vm1516_vm1, %v1535_v25, %v1539_v50 }
 0x26b   : > { %1557 = vst [vmem:[%s2343_s6 + $0x8] sm:$0xf] %v1540_v26 }
 0x26f   : > { %v1567_v27 = vld [vmem:[%s2343_s6 + $0xc] sm:$0xc] }
 0x270   : > { %v1568_v29 = vsel %vm1566_vm4, 0, %v1567_v27 }
 0x271   : > { %1569 = vst [vmem:[%s2343_s6 + $0xc] sm:$0xc] %v1568_v29 }
 0x272 PF: > { %s14_s15 = sadd.s32 1, %s2284_s15  }
 0x273   : > { %p11_p4 = scmp.ge.s32.totalorder %s14_s15, 4  }
 0x275   :  { %13 = sbr.rel (!%p11_p4) target bundleno = 1 (0x1), region = 74 }

// kernel: encoder_forward.9
= control target key start
LH: loop header
LB: loop body
LE: loop exit
PB: predicated region body
PF: predicated region fallthrough
CT: control target
= control target key end

     0   :  { %s2315_s15 = smov 0   ;;  %s2684_s0 = inlined_call_operand.vmem [shape: bf16[2,36,128], index: 0, kind: input, shape index: {}]   ;;  %s2685_s1 = inlined_call_operand.vmem [shape: bf16[9,128,128], index: 1, kind: input, shape index: {}]   ;;  %s2686_s2 = inlined_call_operand.vmem [shape: bf16[128,128], index: 2, kind: input, shape index: {}]   ;;  %s2687_s3 = inlined_call_operand.vmem [shape: f32[22,1], index: 3, kind: input, shape index: {}]   ;;  %s2688_s4 = inlined_call_operand.vmem [shape: bf16[2,36,128], index: 4, kind: output, shape index: {}]  }
   0x1 LB: > { %s1629_s16 = sadd.s32 4294967295, %s2287_s15   ;;  %p1633_p0 = scmp.ge.s32.totalorder %s2287_s15, 1  ;;  %s2287_s15 = sphi %s2315_s15, %s14_s15  }
   0x2   : > { %p162_p1 = scmp.lt.s32.totalorder %s2287_s15, 3 }
   0x4   : > { %p163_p2 = pnand %p1633_p0, %p162_p1 }
   0x5   : > { %v2201_v0 = vld [vmem:[%s2685_s1 + $0x40] sm:$0xff] (!%p163_p2)   ;;  %p188_p3 = scmp.lt.s32.totalorder (!%p163_p2), %s1629_s16, 1  ;;  %v2203_v2 = vld [vmem:[%s2685_s1 + $0x48] sm:$0xff] (!%p163_p2)   ;;  %v2289_v3 = vmov (!%p163_p2), 0   ;;  %v2205_v5 = vld [vmem:[%s2685_s1 + $0x50] sm:$0xff] (!%p163_p2)   ;;  %vm604_vm2 = vcmask (!%p163_p2), 1044480  }
   0x6   : > { %166 = sbr.rel (%p163_p2) target bundleno = 628 (0x274), region = 36  ;;  %v2202_v1 = vld [vmem:[%s2685_s1 + $0x100] sm:$0xff] (!%p163_p2)   ;;  %1958 = vmatprep.subr.bf16.mxu1 (!%p163_p2), %v2201_v0  ;;  %2199 = vset.pattern.permute.xlu0 (!%p163_p2), %v2289_v3  ;;  %v2204_v4 = vld [vmem:[%s2685_s1 + $0x108] sm:$0xff] (!%p163_p2)   ;;  %v2206_v6 = vld [vmem:[%s2685_s1 + $0x110] sm:$0xff] (!%p163_p2)   ;;  %vm250_vm0 = vsmask.f32 (!%p163_p2), 7424 }
   0x7   : > { %2038 = vmatprep.subr.bf16.mxu0 (!%p163_p2), %v2202_v1  ;;  %1959 = vmatpush3.bf16.msra.mxu1 (!%p163_p2), %v2201_v0  ;;  %v2207_v7 = vld [vmem:[%s2685_s1 + $0x58] sm:$0xff] (!%p163_p2)   ;;  %v2209_v9 = vld [vmem:[%s2685_s1 + $0x60] sm:$0xff] (!%p163_p2)   ;;  %v2211_v11 = vld [vmem:[%s2685_s1 + $0x68] sm:$0xff] (!%p163_p2)   ;;  %vm726_vm1 = vsmask.f32 (!%p163_p2), 4352  ;;  %vm479_vm3 = vcmask (!%p163_p2), 1046528  }
   0x8   : > { %2039 = vmatpush3.bf16.msra.mxu0 (!%p163_p2), %v2202_v1  ;;  %1960 = vmatprep.subr.bf16.mxu1 (!%p163_p2), %v2203_v2  ;;  %v2208_v8 = vld [vmem:[%s2685_s1 + $0x118] sm:$0xff] (!%p163_p2)   ;;  %v2210_v10 = vld [vmem:[%s2685_s1 + $0x120] sm:$0xff] (!%p163_p2)   ;;  %v2212_v15 = vld [vmem:[%s2685_s1 + $0x128] sm:$0xff] (!%p163_p2)   ;;  %vm980_vm4 = vcmask (!%p163_p2), 1045504   ;;  %vm1102_vm5 = vsmask.f32 (!%p163_p2), 5376 }
   0x9   : > { %2040 = vmatprep.subr.bf16.mxu0 (!%p163_p2), %v2204_v4  ;;  %2200 = vset.pattern.permute.xlu1 (!%p163_p2), %v2289_v3  ;;  %v2213_v23 = vld [vmem:[%s2685_s1 + $0x70] sm:$0xff] (!%p163_p2)   ;;  %v2215_v29 = vld [vmem:[%s2685_s1 + $0x78] sm:$0xff] (!%p163_p2)   ;;  %v2217_v43 = vld [vmem:[%s2685_s1] sm:$0xff] (!%p163_p2)   ;;  %vm1502_vm6 = vcmask (!%p163_p2), 1043456   ;;  %vm1503_vm7 = vsmask.f32 (!%p163_p2), 3328 }
   0xa   : > { %v2214_v24 = vld [vmem:[%s2685_s1 + $0x130] sm:$0xff] (!%p163_p2)   ;;  %v2216_v30 = vld [vmem:[%s2685_s1 + $0x138] sm:$0xff] (!%p163_p2)   ;;  %v2218_v45 = vld [vmem:[%s2685_s1 + $0x140] sm:$0xff] (!%p163_p2)   ;;  %vm1419_vm9 = vcmask (!%p163_p2), 1040384   ;;  %vm1553_vm10 = vcmask (!%p163_p2), 1043459   ;;  %vm1561_vm12 = vcmask (!%p163_p2), 1042432  }
   0xb   : > { %1961 = vmatpush3.bf16.msra.mxu1 (!%p163_p2), %v2203_v2  ;;  %v2219_v49 = vld [vmem:[%s2685_s1 + $0x8] sm:$0xff] (!%p163_p2)   ;;  %v2221_v54 = vld [vmem:[%s2685_s1 + $0x10] sm:$0xff] (!%p163_p2)   ;;  %v2223_v56 = vld [vmem:[%s2685_s1 + $0x18] sm:$0xff] (!%p163_p2)   ;;  %vm1554_vm11 = vsmask.f32 (!%p163_p2), 7950 }
   0xc   : > { %2041 = vmatpush3.bf16.msra.mxu0 (!%p163_p2), %v2204_v4  ;;  %1962 = vmatprep.subr.bf16.mxu1 (!%p163_p2), %v2205_v5  ;;  %v2220_v51 = vld [vmem:[%s2685_s1 + $0x148] sm:$0xff] (!%p163_p2)   ;;  %v2222_v55 = vld [vmem:[%s2685_s1 + $0x150] sm:$0xff] (!%p163_p2)   ;;  %v2224_v57 = vld [vmem:[%s2685_s1 + $0x158] sm:$0xff] (!%p163_p2)   ;;  %vm1562_vm13 = vsmask.f32 (!%p163_p2), 2304 }
   0xd   : > { %s2690_s16 = smov (!%p188_p3, %s1629_s16), 1  ;;  %2042 = vmatprep.subr.bf16.mxu0 %v2206_v6  ;;  %v2225_v58 = vld [vmem:[%s2685_s1 + $0x20] sm:$0xff]   ;;  %v2227_v60 = vld [vmem:[%s2685_s1 + $0x28] sm:$0xff]   ;;  %v2229_v62 = vld [vmem:[%s2685_s1 + $0x30] sm:$0xff]   ;;  %vm1518_vm15 = vsmask.f32 7440 }
   0xe   : > { %s2189_s27 = smul.u32 20, %s2690_s16  ;;  %v2226_v59 = vld [vmem:[%s2685_s1 + $0x160] sm:$0xff]   ;;  %v2228_v61 = vld [vmem:[%s2685_s1 + $0x168] sm:$0xff]   ;;  %v2230_v0 = vld [vmem:[%s2685_s1 + $0x170] sm:$0xff]  }
   0xf   : > { %1963 = vmatpush3.bf16.msra.mxu1 %v2205_v5  ;;  %v2231_v2 = vld [vmem:[%s2685_s1 + $0x38] sm:$0xff]   ;;  %vm1504_vm8 = vmand %vm1502_vm6, %vm1503_vm7 }
  0x10   : > { %s2346_s6 = scalar_lea.vmem %s2688_s4, %s2189_s27  ;;  %2043 = vmatpush3.bf16.msra.mxu0 %v2206_v6  ;;  %1964 = vmatprep.subr.bf16.mxu1 %v2207_v7  ;;  %s2365_s18 = scalar_lea.vmem %s2684_s0, %s2189_s27  ;;  %v2232_v4 = vld [vmem:[%s2685_s1 + $0x178] sm:$0xff]   ;;  %v2234_v6 = vld [vmem:[%s2685_s1 + $0x180] sm:$0xff]   ;;  %vm1555_vm14 = vmand %vm1553_vm10, %vm1554_vm11 }
  0x11   : > { %1573 = vst [vmem:[%s2346_s6 + $0x10] sm:$0x3] %v2289_v3  ;;  %2044 = vmatprep.subr.bf16.mxu0 %v2208_v8  ;;  %v2371_v12 = vld [vmem:[%s2365_s18] sm:$0xf]  ;;  %v2374_v13 = vld [vmem:[%s2365_s18 + $0x4] sm:$0xf] }
  0x12   : > { %v2377_v14 = vld [vmem:[%s2365_s18 + $0x8] sm:$0xf]  ;;  %v204_v16 = vmax.bf16 %v2289_v3, %v2371_v12  ;;  %v205_v17 = vmax.bf16 %v2289_v3, %v2374_v13  ;;  %v2389_v19 = vld [vmem:[%s2365_s18 + $0xc] sm:$0xf]  ;;  %v203_v63 = vld [vmem:[%s2365_s18 + $0x10] sm:$0x3] }
  0x13   : > { %1965 = vmatpush3.bf16.msra.mxu1 %v2207_v7  ;;  %v206_v18 = vmax.bf16 %v2289_v3, %v2377_v14  ;;  %v2397_v22 = vmax.bf16 %v2289_v3, %v2389_v19  ;;  %v208_v1 = vmax.bf16 %v2289_v3, %v203_v63  ;;  %v2233_v3 = vld [vmem:[%s2685_s1 + $0x80] sm:$0xff]  }
  0x14   : > { %2045 = vmatpush3.bf16.msra.mxu0 %v2208_v8  ;;  %1966 = vmatprep.subr.bf16.mxu1 %v2209_v9  ;;  %v2391_v20 = vcombine.low %v204_v16, %v205_v17  ;;  %v2236_v16 = vld [vmem:[%s2685_s1 + $0x188] sm:$0xff]  }
  0x15   : > { %2046 = vmatprep.subr.bf16.mxu0 %v2210_v10  ;;  %v2393_v21 = vcombine.low %v206_v18, %v206_v18  ;;  %v2409_v28 = vcombine.low %v206_v18, %v2397_v22  ;;  %v2436_v52 = vcombine.low %v205_v17, %v206_v18  ;;  %v2484_v5 = vcombine.low %v2397_v22, %v208_v1  ;;  %v2266_v1 = vld [vmem:[%s2685_s1 + $0x208] sm:$0xff]  }
  0x16   : > { %v252_v25 = vshrl.u32 %v2391_v20, 16  ;;  %v254_v26 = vshll.u32 %v2391_v20, 16  ;;  %v605_v48 = vrot.slane %v2391_v20, 3  ;;  %v480_v7 = vrot.slane %v2391_v20, 1 }
  0x17   : > { %1967 = vmatpush3.bf16.msra.mxu1 %v2209_v9  ;;  %v259_v27 = vshll.u32 %v2393_v21, 16  ;;  %v731_v35 = vshrl.u32 %v2409_v28, 16  ;;  %v734_v36 = vshll.u32 %v2409_v28, 16  ;;  %v263_v41 = vshrl.u32 %v2393_v21, 16 }
  0x18   : > { %2047 = vmatpush3.bf16.msra.mxu0 %v2210_v10  ;;  %1968 = vmatprep.subr.bf16.mxu1 %v2211_v11  ;;  %v256_v31 = vrot.slane %v254_v26, 1  ;;  %v727_v33 = vrot.slane %v252_v25, 3  ;;  %v728_v34 = vrot.slane %v254_v26, 4  ;;  %v606_v50 = vrot.slane %v2409_v28, 3  ;;  %v2242_v26 = vld [vmem:[%s2685_s1 + $0x1a0] sm:$0xff]  }
  0x19   : > { %2048 = vmatprep.subr.bf16.mxu0 %v2212_v15  ;;  %v261_v32 = vrot.slane %v259_v27, 1  ;;  %v733_v39 = vrot.slane %v731_v35, 3  ;;  %v736_v40 = vrot.slane %v734_v36, 4  ;;  %v481_v8 = vrot.slane %v2393_v21, 1  ;;  %v2243_v27 = vld [vmem:[%s2685_s1 + $0xa8] sm:$0xff]   ;;  %v2247_v36 = vld [vmem:[%s2685_s1 + $0xb8] sm:$0xff]  }
  0x1a   : > { %v257_v37 = vor.u32 %v256_v31, %v252_v25  ;;  %v729_v38 = vor.u32 %v728_v34, %v727_v33  ;;  %v2441_v53 = vsel %vm604_vm2, %v605_v48, %v606_v50  ;;  %v1760_v9 = vcombine.low %v2397_v22, %v2397_v22  ;;  %v2238_v22 = vld [vmem:[%s2685_s1 + $0x190] sm:$0xff]   ;;  %v2241_v25 = vld [vmem:[%s2685_s1 + $0xa0] sm:$0xff]  }
  0x1b   : > { %1969 = vmatpush3.bf16.msra.mxu1 %v2211_v11  ;;  %v737_v44 = vor.u32 %v736_v40, %v733_v39  ;;  %v265_v47 = vor.u32 %v263_v41, %v261_v32  ;;  %v981_v10 = vrot.slane %v2436_v52, 2  ;;  %v982_v11 = vrot.slane %v2484_v5, 2  ;;  %v2246_v31 = vld [vmem:[%s2685_s1 + $0x1b0] sm:$0xff]   ;;  %v2269_v28 = vld [vmem:[%s2685_s1 + $0x220] sm:$0xff]  }
  0x1c   : > { %2049 = vmatpush3.bf16.msra.mxu0 %v2212_v15  ;;  %1970 = vmatprep.subr.bf16.mxu1 %v2213_v23  ;;  %v262_v42 = vsel %vm250_vm0, %v257_v37, %v261_v32  ;;  %v2235_v15 = vld [vmem:[%s2685_s1 + $0x88] sm:$0xff]   ;;  %v482_v17 = vsel %vm479_vm3, %v480_v7, %v481_v8  ;;  %v1104_v32 = vshrl.u32 %v2436_v52, 16  ;;  %v1107_v33 = vshll.u32 %v2436_v52, 16  ;;  %v2248_v37 = vld [vmem:[%s2685_s1 + $0x1b8] sm:$0xff]   ;;  %vm1563_vm0 = vmand %vm1561_vm12, %vm1562_vm13 }
  0x1d   : > { %2050 = vmatprep.subr.bf16.mxu0 %v2214_v24  ;;  %1974 = vmatprep.mubr.bf16.mxu1 %v262_v42  ;;  %v738_v46 = vsel %vm726_vm1, %v729_v38, %v737_v44  ;;  %v983_v18 = vsel %vm980_vm4, %v981_v10, %v982_v11  ;;  %v1112_v34 = vshrl.u32 %v2484_v5, 16  ;;  %v1115_v35 = vshll.u32 %v2484_v5, 16  ;;  %v2249_v42 = vld [vmem:[%s2685_s1 + $0xc0] sm:$0xff]   ;;  %v2274_v7 = vld [vmem:[%s2686_s2 + $0x8] sm:$0xff]   ;;  %vm1519_vm1 = vmor %vm1503_vm7, %vm1518_vm15 }
  0x1e   : > { %2054 = vmatprep.mubr.bf16.mxu0 %v738_v46  ;;  %v1106_v38 = vrot.slane %v1104_v32, 2  ;;  %v1109_v39 = vrot.slane %v1107_v33, 3  ;;  %v2251_v46 = vld [vmem:[%s2685_s1 + $0xc8] sm:$0xff]   ;;  %v1238_v63 = vrot.slane %v2436_v52, 3  ;;  %v2277_v10 = vld [vmem:[%s2686_s2 + $0x20] sm:$0xff]  }
  0x1f   : > { %1971 = vmatpush3.bf16.msra.mxu1 %v2213_v23  ;;  %v2239_v23 = vld [vmem:[%s2685_s1 + $0x98] sm:$0xff]   ;;  %v1114_v40 = vrot.slane %v1112_v34, 2  ;;  %v1117_v41 = vrot.slane %v1115_v35, 3  ;;  %vm1568_vm3 = vsmask.f32 7946 }
  0x20   : > { %2051 = vmatpush3.bf16.msra.mxu0 %v2214_v24  ;;  %1972 = vmatprep.subr.bf16.mxu1 %v2215_v29  ;;  %v2240_v24 = vld [vmem:[%s2685_s1 + $0x198] sm:$0xff]  }
  0x21   : > { %2052 = vmatprep.subr.bf16.mxu0 %v2216_v30 }
  0x23   : > { %1973 = vmatpush3.bf16.msra.mxu1 %v2215_v29  ;;  %v2244_v29 = vld [vmem:[%s2685_s1 + $0x1a8] sm:$0xff]  }
  0x24   : > { %2053 = vmatpush3.bf16.msra.mxu0 %v2216_v30  ;;  %1978 = vmatprep.subr.bf16.mxu1 %v2217_v43  ;;  %v2245_v30 = vld [vmem:[%s2685_s1 + $0xb0] sm:$0xff]  }
  0x25   : > { %2058 = vmatprep.subr.bf16.mxu0 %v2218_v45 }
  0x26   : > { %1975 = vmatmul.mubr.bf16.vlgmr.msra.gmra.mrb[0].mxu1 %v265_v47  ;;  %v2252_v47 = vld [vmem:[%s2685_s1 + $0x1c8] sm:$0xff]  }
  0x27   : > { %1979 = vmatpush3.bf16.msra.mxu1 %v2217_v43  ;;  %2055 = vmatmul.mubr.bf16.vlgmr.msra.gmra.mrb[0].mxu0 %v737_v44  ;;  %v2250_v43 = vld [vmem:[%s2685_s1 + $0x1c0] sm:$0xff]   ;;  %v1110_v44 = vor.u32 %v1109_v39, %v1106_v38 }
  0x28   : > { %2059 = vmatpush3.bf16.msra.mxu0 %v2218_v45  ;;  %1980 = vmatprep.subr.bf16.mxu1 %v2219_v49  ;;  %v1118_v45 = vor.u32 %v1117_v41, %v1114_v40  ;;  %v1505_v39 = vld [vmem:[%s2346_s6] sm:$0xf]  ;;  %v1365_v41 = vunpack.c.l.bf16 %v2377_v14 }
  0x29   : > { %2060 = vmatprep.subr.bf16.mxu0 %v2220_v51  ;;  %1994 = vmatprep.mubr.bf16.mxu1 %v2391_v20  ;;  %v2237_v20 = vld [vmem:[%s2685_s1 + $0x90] sm:$0xff]   ;;  %v1506_v40 = vsel %vm1504_vm8, 0, %v1505_v39 }
  0x2a   : > { %2074 = vmatprep.mubr.bf16.mxu0 %v2436_v52  ;;  %v1119_v48 = vsel %vm1102_vm5, %v1110_v44, %v1118_v45  ;;  %v2267_v52 = vld [vmem:[%s2685_s1 + $0x210] sm:$0xff]   ;;  %1507 = vst [vmem:[%s2346_s6] sm:$0xf] %v1506_v40  ;;  %v1364_v44 = vunpack.c.l.bf16 %v2374_v13 }
  0x2b   : > { %1981 = vmatpush3.bf16.msra.mxu1 %v2219_v49  ;;  %v2253_v49 = vld [vmem:[%s2685_s1 + $0xd0] sm:$0xff]  }
  0x2c   : > { %2061 = vmatpush3.bf16.msra.mxu0 %v2220_v51  ;;  %1982 = vmatprep.subr.bf16.mxu1 %v2221_v54  ;;  %v2254_v51 = vld [vmem:[%s2685_s1 + $0x1d0] sm:$0xff]  }
  0x2d   : > { %2062 = vmatprep.subr.bf16.mxu0 %v2222_v55 }
  0x2f   : > { %1983 = vmatpush3.bf16.msra.mxu1 %v2221_v54  ;;  %v2256_v54 = vld [vmem:[%s2685_s1 + $0x1d8] sm:$0xff]  }
  0x30   : > { %2063 = vmatpush3.bf16.msra.mxu0 %v2222_v55  ;;  %1984 = vmatprep.subr.bf16.mxu1 %v2223_v56  ;;  %v2258_v55 = vld [vmem:[%s2685_s1 + $0x1e0] sm:$0xff]  }
  0x31   : > { %2064 = vmatprep.subr.bf16.mxu0 %v2224_v57 }
  0x33   : > { %1985 = vmatpush3.bf16.msra.mxu1 %v2223_v56  ;;  %v2259_v56 = vld [vmem:[%s2685_s1 + $0xe8] sm:$0xff]  }
  0x34   : > { %2065 = vmatpush3.bf16.msra.mxu0 %v2224_v57  ;;  %1986 = vmatprep.subr.bf16.mxu1 %v2225_v58  ;;  %v2260_v57 = vld [vmem:[%s2685_s1 + $0x1e8] sm:$0xff]  }
  0x35   : > { %2066 = vmatprep.subr.bf16.mxu0 %v2226_v59 }
  0x37   : > { %1987 = vmatpush3.bf16.msra.mxu1 %v2225_v58  ;;  %v2261_v58 = vld [vmem:[%s2685_s1 + $0xf0] sm:$0xff]  }
  0x38   : > { %2067 = vmatpush3.bf16.msra.mxu0 %v2226_v59  ;;  %1988 = vmatprep.subr.bf16.mxu1 %v2227_v60  ;;  %v2262_v59 = vld [vmem:[%s2685_s1 + $0x1f0] sm:$0xff]  }
  0x39   : > { %2068 = vmatprep.subr.bf16.mxu0 %v2228_v61 }
  0x3b   : > { %1989 = vmatpush3.bf16.msra.mxu1 %v2227_v60  ;;  %v2263_v60 = vld [vmem:[%s2685_s1 + $0xf8] sm:$0xff]  }
  0x3c   : > { %2069 = vmatpush3.bf16.msra.mxu0 %v2228_v61  ;;  %1990 = vmatprep.subr.bf16.mxu1 %v2229_v62  ;;  %v2264_v61 = vld [vmem:[%s2685_s1 + $0x1f8] sm:$0xff]  }
  0x3d   : > { %2070 = vmatprep.subr.bf16.mxu0 %v2230_v0 }
  0x3f   : > { %1991 = vmatpush3.bf16.msra.mxu1 %v2229_v62  ;;  %v2265_v62 = vld [vmem:[%s2685_s1 + $0x200] sm:$0xff]  }
  0x40   : > { %2071 = vmatpush3.bf16.msra.mxu0 %v2230_v0  ;;  %1992 = vmatprep.subr.bf16.mxu1 %v2231_v2  ;;  %v1239_v0 = vrot.slane %v2484_v5, 3  ;;  %v2271_v5 = vld [vmem:[%s2685_s1 + $0x230] sm:$0xff]  }
  0x41   : > { %2072 = vmatprep.subr.bf16.mxu0 %v2232_v4 }
  0x43   : > { %1993 = vmatpush3.bf16.msra.mxu1 %v2231_v2  ;;  %v1240_v2 = vsel %vm604_vm2, %v1238_v63, %v1239_v0  ;;  %vm1567_vm2 = vcmask 1043458  }
  0x44   : > { %2073 = vmatpush3.bf16.msra.mxu0 %v2232_v4  ;;  %1998 = vmatprep.subr.bf16.mxu1 %v2233_v3  ;;  %v2268_v4 = vld [vmem:[%s2685_s1 + $0x218] sm:$0xff]   ;;  %vm1569_vm4 = vmand %vm1567_vm2, %vm1568_vm3 }
  0x45   : > { %2078 = vmatprep.subr.bf16.mxu0 %v2234_v6 }
  0x46   : > { %1995 = vmatmul.mubr.bf16.vlgmr.msra.gmra.mrb[0].mxu1 %v2393_v21  ;;  %v2255_v21 = vld [vmem:[%s2685_s1 + $0xd8] sm:$0xff]  }
  0x47   : > { %1999 = vmatpush3.bf16.msra.mxu1 %v2233_v3  ;;  %2075 = vmatmul.mubr.bf16.vlgmr.msra.gmra.mrb[0].mxu0 %v1760_v9  ;;  %v2272_v3 = vld [vmem:[%s2685_s1 + $0x238] sm:$0xff]  }
  0x48   : > { %2079 = vmatpush3.bf16.msra.mxu0 %v2234_v6  ;;  %2000 = vmatprep.subr.bf16.mxu1 %v2235_v15  ;;  %v2273_v6 = vld [vmem:[%s2686_s2] sm:$0xff]   ;;  %v2276_v9 = vld [vmem:[%s2686_s2 + $0x18] sm:$0xff]  }
  0x49   : > { %2080 = vmatprep.subr.bf16.mxu0 %v2236_v16  ;;  %2014 = vmatprep.mubr.bf16.mxu1 %v482_v17  ;;  %v1483_v17 = vld [vmem:[%s2687_s3 + $0x10] sm:$0x3f] }
  0x4a   : > { %2094 = vmatprep.mubr.bf16.mxu0 %v983_v18  ;;  %v1482_v18 = vld [vmem:[%s2687_s3 + $0x8] sm:$0xff]  ;;  %1496 = vperm.xlu0 %2199, %v1483_v17  }
  0x4b   : > { %2001 = vmatpush3.bf16.msra.mxu1 %v2235_v15  ;;  %v2279_v15 = vld [vmem:[%s2686_s2 + $0x30] sm:$0xff]   ;;  %1491 = vperm.xlu1 %2200, %v1482_v18  }
  0x4c   : > { %2081 = vmatpush3.bf16.msra.mxu0 %v2236_v16  ;;  %2002 = vmatprep.subr.bf16.mxu1 %v2237_v20  ;;  %v2280_v16 = vld [vmem:[%s2686_s2 + $0x38] sm:$0xff]  }
  0x4d   : > { %2082 = vmatprep.subr.bf16.mxu0 %v2238_v22 }
  0x4f   : > { %2003 = vmatpush3.bf16.msra.mxu1 %v2237_v20  ;;  %v1481_v20 = vld [vmem:[%s2687_s3] sm:$0xff] }
  0x50   : > { %2083 = vmatpush3.bf16.msra.mxu0 %v2238_v22  ;;  %2004 = vmatprep.subr.bf16.mxu1 %v2239_v23 }
  0x51   : > { %2084 = vmatprep.subr.bf16.mxu0 %v2240_v24  ;;  %1486 = vperm.xlu0 %2199, %v1481_v20  }
  0x53   : > { %2005 = vmatpush3.bf16.msra.mxu1 %v2239_v23 }
  0x54   : > { %2085 = vmatpush3.bf16.msra.mxu0 %v2240_v24  ;;  %2006 = vmatprep.subr.bf16.mxu1 %v2241_v25 }
  0x55   : > { %2086 = vmatprep.subr.bf16.mxu0 %v2242_v26 }
  0x57   : > { %2007 = vmatpush3.bf16.msra.mxu1 %v2241_v25 }
  0x58   : > { %2087 = vmatpush3.bf16.msra.mxu0 %v2242_v26  ;;  %2008 = vmatprep.subr.bf16.mxu1 %v2243_v27 }
  0x59   : > { %2088 = vmatprep.subr.bf16.mxu0 %v2244_v29 }
  0x5b   : > { %2009 = vmatpush3.bf16.msra.mxu1 %v2243_v27 }
  0x5c   : > { %2089 = vmatpush3.bf16.msra.mxu0 %v2244_v29  ;;  %2010 = vmatprep.subr.bf16.mxu1 %v2245_v30 }
  0x5d   : > { %2090 = vmatprep.subr.bf16.mxu0 %v2246_v31 }
  0x5f   : > { %2011 = vmatpush3.bf16.msra.mxu1 %v2245_v30 }
  0x60   : > { %2091 = vmatpush3.bf16.msra.mxu0 %v2246_v31  ;;  %2012 = vmatprep.subr.bf16.mxu1 %v2247_v36 }
  0x61   : > { %2092 = vmatprep.subr.bf16.mxu0 %v2248_v37 }
  0x63   : > { %2013 = vmatpush3.bf16.msra.mxu1 %v2247_v36 }
  0x64   : > { %2093 = vmatpush3.bf16.msra.mxu0 %v2248_v37  ;;  %2018 = vmatprep.subr.bf16.mxu1 %v2249_v42 }
  0x65   : > { %2098 = vmatprep.subr.bf16.mxu0 %v2250_v43 }
  0x66   : > { %2015 = vmatmul.mubr.bf16.vlgmr.msra.gmra.mrb[0].mxu1 %v481_v8  ;;  %v2275_v8 = vld [vmem:[%s2686_s2 + $0x10] sm:$0xff]  }
  0x67   : > { %2019 = vmatpush3.bf16.msra.mxu1 %v2249_v42  ;;  %2095 = vmatmul.mubr.bf16.vlgmr.msra.gmra.mrb[0].mxu0 %v982_v11  ;;  %v2278_v11 = vld [vmem:[%s2686_s2 + $0x28] sm:$0xff]   ;;  %v1366_v42 = vunpack.c.l.bf16 %v2389_v19 }
  0x68   : > { %2099 = vmatpush3.bf16.msra.mxu0 %v2250_v43  ;;  %2020 = vmatprep.subr.bf16.mxu1 %v2251_v46  ;;  %v1363_v43 = vunpack.c.l.bf16 %v2371_v12 }
  0x69   : > { %2100 = vmatprep.subr.bf16.mxu0 %v2252_v47  ;;  %2034 = vmatprep.mubr.bf16.mxu1 %v2441_v53  ;;  %v2257_v53 = vld [vmem:[%s2685_s1 + $0xe0] sm:$0xff]  }
  0x6a   : > { %2114 = vmatprep.mubr.bf16.mxu0 %v1119_v48  ;;  %v1421_v48 = vrot.slane %v1364_v44, 7 }
  0x6b   : > { %2021 = vmatpush3.bf16.msra.mxu1 %v2251_v46  ;;  %v1425_v46 = vrot.slane %v1366_v42, 7 }
  0x6c   : > { %2101 = vmatpush3.bf16.msra.mxu0 %v2252_v47  ;;  %2022 = vmatprep.subr.bf16.mxu1 %v2253_v49  ;;  %v1420_v47 = vrot.slane %v1363_v43, 7 }
  0x6d   : > { %2102 = vmatprep.subr.bf16.mxu0 %v2254_v51 }
  0x6f   : > { %2023 = vmatpush3.bf16.msra.mxu1 %v2253_v49 }
  0x70   : > { %2103 = vmatpush3.bf16.msra.mxu0 %v2254_v51  ;;  %2024 = vmatprep.subr.bf16.mxu1 %v2255_v21 }
  0x71   : > { %2104 = vmatprep.subr.bf16.mxu0 %v2256_v54 }
  0x73   : > { %2025 = vmatpush3.bf16.msra.mxu1 %v2255_v21  ;;  %v1422_v21 = vsel %vm1419_vm9, %v1420_v47, %v1421_v48 }
  0x74   : > { %2105 = vmatpush3.bf16.msra.mxu0 %v2256_v54  ;;  %2026 = vmatprep.subr.bf16.mxu1 %v2257_v53 }
  0x75   : > { %2106 = vmatprep.subr.bf16.mxu0 %v2258_v55 }
  0x77   : > { %2027 = vmatpush3.bf16.msra.mxu1 %v2257_v53 }
  0x78   : > { %2107 = vmatpush3.bf16.msra.mxu0 %v2258_v55  ;;  %2028 = vmatprep.subr.bf16.mxu1 %v2259_v56 }
  0x79   : > { %2108 = vmatprep.subr.bf16.mxu0 %v2260_v57 }
  0x7b   : > { %2029 = vmatpush3.bf16.msra.mxu1 %v2259_v56 }
  0x7c   : > { %2109 = vmatpush3.bf16.msra.mxu0 %v2260_v57  ;;  %2030 = vmatprep.subr.bf16.mxu1 %v2261_v58 }
  0x7d   : > { %2110 = vmatprep.subr.bf16.mxu0 %v2262_v59 }
  0x7f   : > { %2031 = vmatpush3.bf16.msra.mxu1 %v2261_v58 }
  0x80   : > { %2111 = vmatpush3.bf16.msra.mxu0 %v2262_v59  ;;  %2032 = vmatprep.subr.bf16.mxu1 %v2263_v60 }
  0x81   : > { %2112 = vmatprep.subr.bf16.mxu0 %v2264_v61 }
  0x83   : > { %2033 = vmatpush3.bf16.msra.mxu1 %v2263_v60 }
  0x84   : > { %2113 = vmatpush3.bf16.msra.mxu0 %v2264_v61  ;;  %2138 = vmatprep.subr.bf16.mxu1 %v2273_v6 }
  0x85   : > { %2118 = vmatprep.subr.bf16.mxu0 %v2265_v62 }
  0x86   : > { %2035 = vmatmul.mubr.bf16.vlgmr.msra.gmra.mrb[0].mxu1 %v606_v50  ;;  %v2270_v50 = vld [vmem:[%s2685_s1 + $0x228] sm:$0xff]  }
  0x87   : > { %2115 = vmatmul.mubr.bf16.vlgmr.msra.gmra.mrb[0].mxu0 %v1118_v45  ;;  %2139 = vmatpush3.bf16.msra.mxu1 %v2273_v6  ;;  %v1423_v45 = vrot.slane %v1365_v41, 7 }
  0x88   : > { %2119 = vmatpush3.bf16.msra.mxu0 %v2265_v62  ;;  %2134 = vmatprep.mubr.bf16.mxu0 %v1240_v2 }
  0x89   : > { %2120 = vmatprep.subr.bf16.mxu0 %v2266_v1  ;;  %2140 = vmatprep.subr.bf16.mxu1 %v2274_v7  ;;  %v1426_v51 = vsel %vm1419_vm9, %v1423_v45, %v1425_v46  ;;  %v1424_v56 = vsel %vm1419_vm9, %v1421_v48, %v1423_v45 }
  0x8b   : > { %2141 = vmatpush3.bf16.msra.mxu1 %v2274_v7 }
  0x8c   : > { %2121 = vmatpush3.bf16.msra.mxu0 %v2266_v1  ;;  %2142 = vmatprep.subr.bf16.mxu1 %v2275_v8 }
  0x8d   : > { %2122 = vmatprep.subr.bf16.mxu0 %v2267_v52 }
  0x8f   : > { %2143 = vmatpush3.bf16.msra.mxu1 %v2275_v8 }
  0x90   : > { %2123 = vmatpush3.bf16.msra.mxu0 %v2267_v52  ;;  %2144 = vmatprep.subr.bf16.mxu1 %v2276_v9 }
  0x91   : > { %2124 = vmatprep.subr.bf16.mxu0 %v2268_v4 }
  0x93   : > { %2145 = vmatpush3.bf16.msra.mxu1 %v2276_v9 }
  0x94   : > { %2125 = vmatpush3.bf16.msra.mxu0 %v2268_v4  ;;  %2146 = vmatprep.subr.bf16.mxu1 %v2277_v10 }
  0x95   : > { %2126 = vmatprep.subr.bf16.mxu0 %v2269_v28 }
  0x97   : > { %2147 = vmatpush3.bf16.msra.mxu1 %v2277_v10 }
  0x98   : > { %2127 = vmatpush3.bf16.msra.mxu0 %v2269_v28  ;;  %2148 = vmatprep.subr.bf16.mxu1 %v2278_v11 }
  0x99   : > { %2128 = vmatprep.subr.bf16.mxu0 %v2270_v50 }
  0x9b   : > { %2149 = vmatpush3.bf16.msra.mxu1 %v2278_v11 }
  0x9c   : > { %2129 = vmatpush3.bf16.msra.mxu0 %v2270_v50  ;;  %2150 = vmatprep.subr.bf16.mxu1 %v2279_v15 }
  0x9d   : > { %2130 = vmatprep.subr.bf16.mxu0 %v2271_v5 }
  0x9f   : > { %2151 = vmatpush3.bf16.msra.mxu1 %v2279_v15 }
  0xa0   : > { %2131 = vmatpush3.bf16.msra.mxu0 %v2271_v5  ;;  %2152 = vmatprep.subr.bf16.mxu1 %v2280_v16  ;;  %v1556_v5 = vld [vmem:[%s2346_s6] sm:$0x8] }
  0xa1   : > { %2132 = vmatprep.subr.bf16.mxu0 %v2272_v3 }
  0xa3   : > { %2153 = vmatpush3.bf16.msra.mxu1 %v2280_v16  ;;  %v1564_v16 = vld [vmem:[%s2346_s6 + $0xc] sm:$0x7] }
  0xa4   : > { %2133 = vmatpush3.bf16.msra.mxu0 %v2272_v3 }
  0xa7   : > { %2135 = vmatmul.mubr.bf16.vlgmr.msra.gmra.mrb[0].mxu0 %v1239_v0 }
  0xc9   : > { %v1497_v49 = vpop.permute.xlu0 %1496 }
  0xca   : > { %v1492_v61 = vpop.permute.xlu1 %1491 }
  0xd0   : > { %v1487_v59 = vpop.permute.xlu0 %1486 }
 0x159   : > { %v2036_v22 = vpop.f32.mrb[0].mxu1 }
 0x15a   : > { %v692_v23 = vpop.f32.mrb[1].mxu1 }
 0x15b   : > { %v2037_v24 = vpop.f32.mrb[2].mxu1 }
 0x15c   : > { %v695_v25 = vpop.f32.mrb[3].mxu1 }
 0x17a   : > { %v2136_v26 = vpop.f32.mrb[0].mxu0 }
 0x17b   : > { %v2158_v27 = vadd.f32 %v2136_v26, %v2036_v22  ;;  %v1325_v29 = vpop.f32.mrb[1].mxu0 }
 0x17c   : > { %v2159_v30 = vadd.f32 %v1325_v29, %v692_v23  ;;  %v2137_v31 = vpop.f32.mrb[2].mxu0 }
 0x17d   : > { %v1328_v32 = vpop.f32.mrb[3].mxu0  ;;  %v1344_v34 = vmax.f32 %v2158_v27, 0.0 }
 0x17e   : > { %v2160_v33 = vadd.f32 %v1328_v32, %v695_v25  ;;  %v1342_v35 = vmax.f32 %v2159_v30, 0.0 }
 0x17f   : > { %v1346_v38 = vpack.c.bf16 %v1344_v34, %v1344_v34 }
 0x180   : > { %v1343_v36 = vmax.f32 %v2160_v33, 0.0 }
 0x182   : > { %v1345_v37 = vpack.c.bf16 %v1343_v36, %v1342_v35 }
 0x184   : > { %2154 = vmatprep.mubr.bf16.mxu1 %v1345_v37 }
 0x185   : > { %2155 = vmatmul.mubr.bf16.vlgmr.msra.gmra.mrb[4].mxu1 %v1346_v38 }
 0x258   : > { %v2156_v54 = vpop.f32.mrb[4].mxu1 }
 0x259   : > { %v1473_v53 = vadd.f32 %v2156_v54, %v1426_v51  ;;  %v1464_v55 = vpop.f32.mrb[5].mxu1 }
 0x25a   : > { %v1465_v57 = vadd.f32 %v1464_v55, %v1422_v21  ;;  %v2157_v14 = vpop.f32.mrb[6].mxu1 }
 0x25b   : > { %v1480_v58 = vmax.f32 %v1473_v53, 0.0  ;;  %v1467_v19 = vpop.f32.mrb[7].mxu1 }
 0x25c   : > { %v1478_v12 = vmax.f32 %v1465_v57, 0.0  ;;  %v1468_v13 = vadd.f32 %v1467_v19, %v1424_v56 }
 0x25d   : > { %v1501_v60 = vmul.f32 %v1497_v49, %v1480_v58 }
 0x25e   : > { %v1479_v62 = vmax.f32 %v1468_v13, 0.0  ;;  %v1499_v63 = vmul.f32 %v1487_v59, %v1478_v12 }
 0x25f   : > { %v1857_v0 = vpack.c.bf16 %v1501_v60, %v1501_v60 }
 0x260   : > { %v1855_v1 = vpack.c.bf16 %v1499_v63, %v1499_v63  ;;  %v1500_v2 = vmul.f32 %v1492_v61, %v1479_v62 }
 0x261   : > { %v1540_v52 = vshll.u32 %v1857_v0, 16  ;;  %v1544_v4 = vshrl.u32 %v1857_v0, 16 }
 0x262   : > { %v1521_v28 = vshll.u32 %v1855_v1, 16  ;;  %v1524_v50 = vshrl.u32 %v1855_v1, 16  ;;  %v1856_v3 = vpack.c.bf16 %v1500_v2, %v1500_v2 }
 0x263   : > { %v1542_v6 = vrot.slane %v1540_v52, 5  ;;  %v1546_v7 = vrot.slane %v1544_v4, 4 }
 0x264   : > { %v1523_v8 = vrot.slane %v1521_v28, 5  ;;  %v1526_v9 = vrot.slane %v1524_v50, 4  ;;  %v1530_v10 = vshll.u32 %v1856_v3, 16  ;;  %v1534_v11 = vshrl.u32 %v1856_v3, 16 }
 0x265   : > { %v1547_v15 = vor.u32 %v1546_v7, %v1542_v6 }
 0x266   : > { %v1527_v17 = vor.u32 %v1526_v9, %v1523_v8  ;;  %v1557_v18 = vsel %vm1555_vm14, %v1523_v8, %v1556_v5  ;;  %v1532_v20 = vrot.slane %v1530_v10, 5  ;;  %v1536_v22 = vrot.slane %v1534_v11, 4 }
 0x267   : > { %v1548_v23 = vrot.slane %v1547_v15, 4  ;;  %1558 = vst [vmem:[%s2346_s6] sm:$0x8] %v1557_v18 }
 0x268   : > { %v1528_v24 = vrot.slane %v1527_v17, 4  ;;  %v1537_v25 = vor.u32 %v1536_v22, %v1532_v20 }
 0x269   : > { %v1565_v26 = vsel %vm1563_vm0, %v1548_v23, %v1564_v16 }
 0x26a   : > { %1566 = vst [vmem:[%s2346_s6 + $0xc] sm:$0x7] %v1565_v26  ;;  %v1533_v27 = vsel %vm1519_vm1, %v1528_v24, %v1532_v20  ;;  %v1538_v29 = vrot.slane %v1537_v25, 4 }
 0x26b   : > { %1559 = vst [vmem:[%s2346_s6 + $0x4] sm:$0xf] %v1533_v27 }
 0x26c   : > { %v1543_v30 = vsel %vm1519_vm1, %v1538_v29, %v1542_v6 }
 0x26d   : > { %1560 = vst [vmem:[%s2346_s6 + $0x8] sm:$0xf] %v1543_v30 }
 0x271   : > { %v1570_v31 = vld [vmem:[%s2346_s6 + $0xc] sm:$0xc] }
 0x272   : > { %v1571_v32 = vsel %vm1569_vm4, 0, %v1570_v31 }
 0x273   : > { %1572 = vst [vmem:[%s2346_s6 + $0xc] sm:$0xc] %v1571_v32 }
 0x274 PF: > { %s14_s15 = sadd.s32 1, %s2287_s15  }
 0x275   : > { %p11_p4 = scmp.ge.s32.totalorder %s14_s15, 4  }
 0x277   :  { %13 = sbr.rel (!%p11_p4) target bundleno = 1 (0x1), region = 74 }

// kernel: encoder_forward.6
= control target key start
LH: loop header
LB: loop body
LE: loop exit
PB: predicated region body
PF: predicated region fallthrough
CT: control target
= control target key end

     0   :  { %s2699_s1 = inlined_call_operand.vmem [shape: bf16[2048,128], index: 1, kind: input, shape index: {}]   ;;  %s2700_s0 = inlined_call_operand.vmem [shape: bf16[32,2048], index: 0, kind: input, shape index: {}]   ;;  %s2701_s2 = inlined_call_operand.vmem [shape: f32[1,128], index: 2, kind: input, shape index: {}]   ;;  %s2702_s3 = inlined_call_operand.vmem [shape: bf16[32,128], index: 3, kind: output, shape index: {}]  }
   0x1   :  { %v2062_v0 = vld [vmem:[%s2699_s1 + $0x40] sm:$0xff]   ;;  %v2066_v4 = vld [vmem:[%s2699_s1 + $0x48] sm:$0xff]   ;;  %v2070_v8 = vld [vmem:[%s2699_s1 + $0x50] sm:$0xff]  }
   0x2   :  { %v2063_v1 = vld [vmem:[%s2699_s1 + $0xc0] sm:$0xff]   ;;  %1838 = vmatprep.subr.bf16.mxu0 %v2062_v0  ;;  %v2067_v5 = vld [vmem:[%s2699_s1 + $0xc8] sm:$0xff]   ;;  %v2071_v9 = vld [vmem:[%s2699_s1 + $0xd0] sm:$0xff]  }
   0x3   :  { %v2064_v2 = vld [vmem:[%s2699_s1] sm:$0xff]   ;;  %1866 = vmatprep.subr.bf16.mxu1 %v2063_v1  ;;  %v2068_v6 = vld [vmem:[%s2699_s1 + $0x8] sm:$0xff]   ;;  %v2072_v10 = vld [vmem:[%s2699_s1 + $0x10] sm:$0xff]  }
   0x4   :  { %v2065_v3 = vld [vmem:[%s2699_s1 + $0x80] sm:$0xff]   ;;  %1839 = vmatpush3.bf16.msra.mxu0 %v2064_v2  ;;  %v2069_v7 = vld [vmem:[%s2699_s1 + $0x88] sm:$0xff]   ;;  %v2073_v11 = vld [vmem:[%s2699_s1 + $0x90] sm:$0xff]  }
   0x5   :  { %1867 = vmatpush3.bf16.msra.mxu1 %v2065_v3  ;;  %1840 = vmatprep.subr.bf16.mxu0 %v2066_v4  ;;  %v2074_v12 = vld [vmem:[%s2699_s1 + $0x58] sm:$0xff]   ;;  %v2078_v16 = vld [vmem:[%s2699_s1 + $0x60] sm:$0xff]   ;;  %v2082_v20 = vld [vmem:[%s2699_s1 + $0x68] sm:$0xff]  }
   0x6   :  { %1868 = vmatprep.subr.bf16.mxu1 %v2067_v5  ;;  %v2075_v13 = vld [vmem:[%s2699_s1 + $0xd8] sm:$0xff]   ;;  %v2079_v17 = vld [vmem:[%s2699_s1 + $0xe0] sm:$0xff]   ;;  %v2083_v21 = vld [vmem:[%s2699_s1 + $0xe8] sm:$0xff]  }
   0x7   :  { %v2076_v14 = vld [vmem:[%s2699_s1 + $0x18] sm:$0xff]   ;;  %v2080_v18 = vld [vmem:[%s2699_s1 + $0x20] sm:$0xff]   ;;  %v2084_v22 = vld [vmem:[%s2699_s1 + $0x28] sm:$0xff]  }
   0x8   :  { %1841 = vmatpush3.bf16.msra.mxu0 %v2068_v6  ;;  %v2077_v15 = vld [vmem:[%s2699_s1 + $0x98] sm:$0xff]   ;;  %v2081_v19 = vld [vmem:[%s2699_s1 + $0xa0] sm:$0xff]   ;;  %v2085_v23 = vld [vmem:[%s2699_s1 + $0xa8] sm:$0xff]  }
   0x9   :  { %1869 = vmatpush3.bf16.msra.mxu1 %v2069_v7  ;;  %1842 = vmatprep.subr.bf16.mxu0 %v2070_v8  ;;  %v2086_v24 = vld [vmem:[%s2699_s1 + $0x70] sm:$0xff]   ;;  %v2090_v28 = vld [vmem:[%s2699_s1 + $0x78] sm:$0xff]   ;;  %v15_v32 = vld [vmem:[%s2700_s0] sm:$0xff] }
   0xa   :  { %1870 = vmatprep.subr.bf16.mxu1 %v2071_v9  ;;  %v2087_v25 = vld [vmem:[%s2699_s1 + $0xf0] sm:$0xff]   ;;  %v2091_v29 = vld [vmem:[%s2699_s1 + $0xf8] sm:$0xff]   ;;  %v23_v33 = vld [vmem:[%s2700_s0 + $0x40] sm:$0xff] }
   0xb   :  { %v2088_v26 = vld [vmem:[%s2699_s1 + $0x30] sm:$0xff]   ;;  %v2092_v30 = vld [vmem:[%s2699_s1 + $0x38] sm:$0xff]   ;;  %v16_v34 = vld [vmem:[%s2700_s0 + $0x8] sm:$0xff]  ;;  %v1659_v35 = vcombine.low %v15_v32, %v23_v33  ;;  %v1660_v36 = vcombine.high %v15_v32, %v23_v33 }
   0xc   :  { %1843 = vmatpush3.bf16.msra.mxu0 %v2072_v10  ;;  %v2089_v27 = vld [vmem:[%s2699_s1 + $0xb0] sm:$0xff]   ;;  %v2093_v31 = vld [vmem:[%s2699_s1 + $0xb8] sm:$0xff]   ;;  %v24_v37 = vld [vmem:[%s2700_s0 + $0x48] sm:$0xff] }
   0xd   :  { %1871 = vmatpush3.bf16.msra.mxu1 %v2073_v11  ;;  %1844 = vmatprep.subr.bf16.mxu0 %v2074_v12  ;;  %v1661_v38 = vcombine.low %v16_v34, %v24_v37  ;;  %v1662_v39 = vcombine.high %v16_v34, %v24_v37  ;;  %v2094_v40 = vld [vmem:[%s2699_s1 + $0x140] sm:$0xff]   ;;  %v2098_v44 = vld [vmem:[%s2699_s1 + $0x148] sm:$0xff]   ;;  %v2102_v48 = vld [vmem:[%s2699_s1 + $0x150] sm:$0xff]  }
   0xe   :  { %1872 = vmatprep.subr.bf16.mxu1 %v2075_v13  ;;  %1270 = vmatprep.mubr.bf16.mxu0 %v1660_v36  ;;  %v2095_v41 = vld [vmem:[%s2699_s1 + $0x1c0] sm:$0xff]   ;;  %v2099_v45 = vld [vmem:[%s2699_s1 + $0x1c8] sm:$0xff]   ;;  %v2103_v49 = vld [vmem:[%s2699_s1 + $0x1d0] sm:$0xff]  }
   0xf   :  { %1319 = vmatprep.mubr.bf16.mxu1 %v1662_v39  ;;  %v2096_v42 = vld [vmem:[%s2699_s1 + $0x100] sm:$0xff]   ;;  %v2100_v46 = vld [vmem:[%s2699_s1 + $0x108] sm:$0xff]   ;;  %v2104_v50 = vld [vmem:[%s2699_s1 + $0x110] sm:$0xff]  }
  0x10   :  { %1845 = vmatpush3.bf16.msra.mxu0 %v2076_v14  ;;  %v2097_v43 = vld [vmem:[%s2699_s1 + $0x180] sm:$0xff]   ;;  %v2101_v47 = vld [vmem:[%s2699_s1 + $0x188] sm:$0xff]   ;;  %v2105_v51 = vld [vmem:[%s2699_s1 + $0x190] sm:$0xff]  }
  0x11   :  { %1873 = vmatpush3.bf16.msra.mxu1 %v2077_v15  ;;  %1846 = vmatprep.subr.bf16.mxu0 %v2078_v16  ;;  %v2106_v52 = vld [vmem:[%s2699_s1 + $0x158] sm:$0xff]   ;;  %v2110_v56 = vld [vmem:[%s2699_s1 + $0x160] sm:$0xff]   ;;  %v2114_v60 = vld [vmem:[%s2699_s1 + $0x168] sm:$0xff]  }
  0x12   :  { %1874 = vmatprep.subr.bf16.mxu1 %v2079_v17  ;;  %v2107_v53 = vld [vmem:[%s2699_s1 + $0x1d8] sm:$0xff]   ;;  %v2111_v57 = vld [vmem:[%s2699_s1 + $0x1e0] sm:$0xff]   ;;  %v2115_v61 = vld [vmem:[%s2699_s1 + $0x1e8] sm:$0xff]  }
  0x13   :  { %v2108_v54 = vld [vmem:[%s2699_s1 + $0x118] sm:$0xff]   ;;  %v2112_v58 = vld [vmem:[%s2699_s1 + $0x120] sm:$0xff]   ;;  %v2116_v1 = vld [vmem:[%s2699_s1 + $0x128] sm:$0xff]  }
  0x14   :  { %1847 = vmatpush3.bf16.msra.mxu0 %v2080_v18  ;;  %v2109_v55 = vld [vmem:[%s2699_s1 + $0x198] sm:$0xff]   ;;  %v2113_v59 = vld [vmem:[%s2699_s1 + $0x1a0] sm:$0xff]   ;;  %v2117_v3 = vld [vmem:[%s2699_s1 + $0x1a8] sm:$0xff]  }
  0x15   :  { %1875 = vmatpush3.bf16.msra.mxu1 %v2081_v19  ;;  %1848 = vmatprep.subr.bf16.mxu0 %v2082_v20  ;;  %v31_v62 = vld [vmem:[%s2700_s0 + $0x80] sm:$0xff]  ;;  %v32_v4 = vld [vmem:[%s2700_s0 + $0x88] sm:$0xff]  ;;  %v2118_v8 = vld [vmem:[%s2699_s1 + $0x170] sm:$0xff]  }
  0x16   :  { %1876 = vmatprep.subr.bf16.mxu1 %v2083_v21  ;;  %v39_v63 = vld [vmem:[%s2700_s0 + $0xc0] sm:$0xff]  ;;  %v40_v5 = vld [vmem:[%s2700_s0 + $0xc8] sm:$0xff]  ;;  %v2119_v9 = vld [vmem:[%s2699_s1 + $0x1f0] sm:$0xff]  }
  0x17   :  { %v1676_v0 = vcombine.high %v31_v62, %v39_v63  ;;  %v1675_v2 = vcombine.low %v31_v62, %v39_v63  ;;  %v1678_v6 = vcombine.high %v32_v4, %v40_v5  ;;  %v1677_v7 = vcombine.low %v32_v4, %v40_v5  ;;  %v2120_v10 = vld [vmem:[%s2699_s1 + $0x130] sm:$0xff]   ;;  %v2122_v12 = vld [vmem:[%s2699_s1 + $0x178] sm:$0xff]   ;;  %v20_v4 = vld [vmem:[%s2700_s0 + $0x28] sm:$0xff] }
  0x18   :  { %1849 = vmatpush3.bf16.msra.mxu0 %v2084_v22  ;;  %v2121_v11 = vld [vmem:[%s2699_s1 + $0x1b0] sm:$0xff]   ;;  %v2123_v13 = vld [vmem:[%s2699_s1 + $0x1f8] sm:$0xff]   ;;  %v28_v5 = vld [vmem:[%s2700_s0 + $0x68] sm:$0xff] }
  0x19   :  { %1877 = vmatpush3.bf16.msra.mxu1 %v2085_v23  ;;  %1850 = vmatprep.subr.bf16.mxu0 %v2086_v24  ;;  %v2124_v14 = vld [vmem:[%s2699_s1 + $0x138] sm:$0xff]   ;;  %v17_v16 = vld [vmem:[%s2700_s0 + $0x10] sm:$0xff]  ;;  %v2126_v24 = vld [vmem:[%s2699_s1 + $0x240] sm:$0xff]  }
  0x1a   :  { %1878 = vmatprep.subr.bf16.mxu1 %v2087_v25  ;;  %v2125_v15 = vld [vmem:[%s2699_s1 + $0x1b8] sm:$0xff]   ;;  %v25_v17 = vld [vmem:[%s2700_s0 + $0x50] sm:$0xff]  ;;  %v2127_v25 = vld [vmem:[%s2699_s1 + $0x2c0] sm:$0xff]  }
  0x1b   :  { %v18_v18 = vld [vmem:[%s2700_s0 + $0x18] sm:$0xff]  ;;  %v1663_v20 = vcombine.low %v17_v16, %v25_v17  ;;  %v1664_v21 = vcombine.high %v17_v16, %v25_v17  ;;  %v33_v32 = vld [vmem:[%s2700_s0 + $0x90] sm:$0xff]  ;;  %v35_v16 = vld [vmem:[%s2700_s0 + $0xa0] sm:$0xff] }
  0x1c   :  { %1851 = vmatpush3.bf16.msra.mxu0 %v2088_v26  ;;  %v26_v19 = vld [vmem:[%s2700_s0 + $0x58] sm:$0xff]  ;;  %v2128_v26 = vld [vmem:[%s2699_s1 + $0x200] sm:$0xff]   ;;  %v41_v33 = vld [vmem:[%s2700_s0 + $0xd0] sm:$0xff] }
  0x1d   :  { %1879 = vmatpush3.bf16.msra.mxu1 %v2089_v27  ;;  %1852 = vmatprep.subr.bf16.mxu0 %v2090_v28  ;;  %v1665_v22 = vcombine.low %v18_v18, %v26_v19  ;;  %v1666_v23 = vcombine.high %v18_v18, %v26_v19  ;;  %v2129_v27 = vld [vmem:[%s2699_s1 + $0x280] sm:$0xff]   ;;  %v2130_v28 = vld [vmem:[%s2699_s1 + $0x248] sm:$0xff]   ;;  %v1680_v34 = vcombine.high %v33_v32, %v41_v33  ;;  %v2134_v36 = vld [vmem:[%s2699_s1 + $0x250] sm:$0xff]  }
  0x1e   :  { %1880 = vmatprep.subr.bf16.mxu1 %v2091_v29  ;;  %v2131_v29 = vld [vmem:[%s2699_s1 + $0x2c8] sm:$0xff]   ;;  %v2135_v37 = vld [vmem:[%s2699_s1 + $0x2d0] sm:$0xff]   ;;  %v42_v39 = vld [vmem:[%s2700_s0 + $0xd8] sm:$0xff] }
  0x1f   :  { %v2156_v62 = vld [vmem:[%s2699_s1 + $0x238] sm:$0xff]   ;;  %v43_v17 = vld [vmem:[%s2700_s0 + $0xe0] sm:$0xff] }
  0x20   :  { %1853 = vmatpush3.bf16.msra.mxu0 %v2092_v30  ;;  %v2132_v30 = vld [vmem:[%s2699_s1 + $0x208] sm:$0xff]   ;;  %v2157_v63 = vld [vmem:[%s2699_s1 + $0x2b8] sm:$0xff]   ;;  %v1684_v18 = vcombine.high %v35_v16, %v43_v17  ;;  %v1683_v19 = vcombine.low %v35_v16, %v43_v17 }
  0x21   :  { %1881 = vmatpush3.bf16.msra.mxu1 %v2093_v31  ;;  %1894 = vmatprep.subr.bf16.mxu0 %v2094_v40  ;;  %v2133_v31 = vld [vmem:[%s2699_s1 + $0x288] sm:$0xff]  }
  0x22   :  { %1922 = vmatprep.subr.bf16.mxu1 %v2095_v41  ;;  %v2136_v41 = vld [vmem:[%s2699_s1 + $0x210] sm:$0xff]  }
  0x23   :  { %1271 = vmatmul.mubr.bf16.vlgmr.msra.gmra.mrb[0].mxu0 %v1659_v35  ;;  %v1679_v35 = vcombine.low %v33_v32, %v41_v33  ;;  %v2174_v32 = vld [vmem:[%s2699_s1 + $0x360] sm:$0xff]  }
  0x24   :  { %1320 = vmatmul.mubr.bf16.vlgmr.msra.gmra.mrb[0].mxu1 %v1661_v38  ;;  %1895 = vmatpush3.bf16.msra.mxu0 %v2096_v42  ;;  %v34_v38 = vld [vmem:[%s2700_s0 + $0x98] sm:$0xff]  ;;  %v2175_v33 = vld [vmem:[%s2699_s1 + $0x3e0] sm:$0xff]  }
  0x25   :  { %1923 = vmatpush3.bf16.msra.mxu1 %v2097_v43  ;;  %1896 = vmatprep.subr.bf16.mxu0 %v2098_v44  ;;  %v1682_v40 = vcombine.high %v34_v38, %v42_v39  ;;  %v1681_v42 = vcombine.low %v34_v38, %v42_v39  ;;  %v2137_v43 = vld [vmem:[%s2699_s1 + $0x290] sm:$0xff]   ;;  %v2138_v44 = vld [vmem:[%s2699_s1 + $0x258] sm:$0xff]   ;;  %v2180_v38 = vld [vmem:[%s2699_s1 + $0x328] sm:$0xff]  }
  0x26   :  { %1924 = vmatprep.subr.bf16.mxu1 %v2099_v45  ;;  %1278 = vmatprep.mubr.bf16.mxu0 %v1676_v0  ;;  %v2139_v45 = vld [vmem:[%s2699_s1 + $0x2d8] sm:$0xff]   ;;  %v19_v0 = vld [vmem:[%s2700_s0 + $0x20] sm:$0xff]  ;;  %v2181_v39 = vld [vmem:[%s2699_s1 + $0x3a8] sm:$0xff]  }
  0x27   :  { %1327 = vmatprep.mubr.bf16.mxu1 %v1678_v6  ;;  %v1669_v6 = vcombine.low %v20_v4, %v28_v5 }
  0x28   :  { %1897 = vmatpush3.bf16.msra.mxu0 %v2100_v46  ;;  %v2140_v46 = vld [vmem:[%s2699_s1 + $0x218] sm:$0xff]  }
  0x29   :  { %1925 = vmatpush3.bf16.msra.mxu1 %v2101_v47  ;;  %1898 = vmatprep.subr.bf16.mxu0 %v2102_v48  ;;  %v2141_v47 = vld [vmem:[%s2699_s1 + $0x298] sm:$0xff]   ;;  %v2142_v48 = vld [vmem:[%s2699_s1 + $0x260] sm:$0xff]  }
  0x2a   :  { %1926 = vmatprep.subr.bf16.mxu1 %v2103_v49  ;;  %v2143_v49 = vld [vmem:[%s2699_s1 + $0x2e0] sm:$0xff]  }
  0x2b   :  { %1279 = vmatmul.mubr.bf16.gmra.mrb[4].mxu0 %v1675_v2 }
  0x2c   :  { %1899 = vmatpush3.bf16.msra.mxu0 %v2104_v50  ;;  %1328 = vmatmul.mubr.bf16.gmra.mrb[4].mxu1 %v1677_v7  ;;  %v2144_v50 = vld [vmem:[%s2699_s1 + $0x220] sm:$0xff]   ;;  %v1670_v7 = vcombine.high %v20_v4, %v28_v5 }
  0x2d   :  { %1927 = vmatpush3.bf16.msra.mxu1 %v2105_v51  ;;  %1900 = vmatprep.subr.bf16.mxu0 %v2106_v52  ;;  %v2145_v51 = vld [vmem:[%s2699_s1 + $0x2a0] sm:$0xff]   ;;  %v2146_v52 = vld [vmem:[%s2699_s1 + $0x268] sm:$0xff]  }
  0x2e   :  { %1928 = vmatprep.subr.bf16.mxu1 %v2107_v53  ;;  %1368 = vmatprep.mubr.bf16.mxu0 %v1664_v21  ;;  %v2147_v53 = vld [vmem:[%s2699_s1 + $0x2e8] sm:$0xff]   ;;  %v2167_v21 = vld [vmem:[%s2699_s1 + $0x3d0] sm:$0xff]  }
  0x2f   :  { %1417 = vmatprep.mubr.bf16.mxu1 %v1666_v23  ;;  %v44_v23 = vld [vmem:[%s2700_s0 + $0xe8] sm:$0xff] }
  0x30   :  { %1901 = vmatpush3.bf16.msra.mxu0 %v2108_v54  ;;  %v2148_v54 = vld [vmem:[%s2699_s1 + $0x228] sm:$0xff]  }
  0x31   :  { %1929 = vmatpush3.bf16.msra.mxu1 %v2109_v55  ;;  %1902 = vmatprep.subr.bf16.mxu0 %v2110_v56  ;;  %v2149_v55 = vld [vmem:[%s2699_s1 + $0x2a8] sm:$0xff]   ;;  %v2150_v56 = vld [vmem:[%s2699_s1 + $0x270] sm:$0xff]  }
  0x32   :  { %1930 = vmatprep.subr.bf16.mxu1 %v2111_v57  ;;  %v2151_v57 = vld [vmem:[%s2699_s1 + $0x2f0] sm:$0xff]  }
  0x34   :  { %1903 = vmatpush3.bf16.msra.mxu0 %v2112_v58  ;;  %v2152_v58 = vld [vmem:[%s2699_s1 + $0x230] sm:$0xff]  }
  0x35   :  { %1931 = vmatpush3.bf16.msra.mxu1 %v2113_v59  ;;  %1904 = vmatprep.subr.bf16.mxu0 %v2114_v60  ;;  %v2153_v59 = vld [vmem:[%s2699_s1 + $0x2b0] sm:$0xff]   ;;  %v2154_v60 = vld [vmem:[%s2699_s1 + $0x278] sm:$0xff]  }
  0x36   :  { %1932 = vmatprep.subr.bf16.mxu1 %v2115_v61  ;;  %v2155_v61 = vld [vmem:[%s2699_s1 + $0x2f8] sm:$0xff]  }
  0x38   :  { %1905 = vmatpush3.bf16.msra.mxu0 %v2116_v1  ;;  %v27_v1 = vld [vmem:[%s2700_s0 + $0x60] sm:$0xff] }
  0x39   :  { %1933 = vmatpush3.bf16.msra.mxu1 %v2117_v3  ;;  %1906 = vmatprep.subr.bf16.mxu0 %v2118_v8  ;;  %v1667_v2 = vcombine.low %v19_v0, %v27_v1  ;;  %v1668_v3 = vcombine.high %v19_v0, %v27_v1  ;;  %v2158_v8 = vld [vmem:[%s2699_s1 + $0x340] sm:$0xff]  }
  0x3a   :  { %1934 = vmatprep.subr.bf16.mxu1 %v2119_v9  ;;  %v2159_v9 = vld [vmem:[%s2699_s1 + $0x3c0] sm:$0xff]  }
  0x3c   :  { %1907 = vmatpush3.bf16.msra.mxu0 %v2120_v10  ;;  %v2160_v10 = vld [vmem:[%s2699_s1 + $0x300] sm:$0xff]  }
  0x3d   :  { %1935 = vmatpush3.bf16.msra.mxu1 %v2121_v11  ;;  %1908 = vmatprep.subr.bf16.mxu0 %v2122_v12  ;;  %v2161_v11 = vld [vmem:[%s2699_s1 + $0x380] sm:$0xff]   ;;  %v2162_v12 = vld [vmem:[%s2699_s1 + $0x348] sm:$0xff]  }
  0x3e   :  { %1936 = vmatprep.subr.bf16.mxu1 %v2123_v13  ;;  %v2163_v13 = vld [vmem:[%s2699_s1 + $0x3c8] sm:$0xff]  }
  0x40   :  { %1909 = vmatpush3.bf16.msra.mxu0 %v2124_v14  ;;  %v2164_v14 = vld [vmem:[%s2699_s1 + $0x308] sm:$0xff]  }
  0x41   :  { %1937 = vmatpush3.bf16.msra.mxu1 %v2125_v15  ;;  %1950 = vmatprep.subr.bf16.mxu0 %v2126_v24  ;;  %v2165_v15 = vld [vmem:[%s2699_s1 + $0x388] sm:$0xff]  }
  0x42   :  { %1978 = vmatprep.subr.bf16.mxu1 %v2127_v25  ;;  %v2168_v25 = vld [vmem:[%s2699_s1 + $0x310] sm:$0xff]  }
  0x43   :  { %1369 = vmatmul.mubr.bf16.vlgmr.msra.gmra.mrb[8].mxu0 %v1663_v20  ;;  %v2166_v20 = vld [vmem:[%s2699_s1 + $0x350] sm:$0xff]  }
  0x44   :  { %1418 = vmatmul.mubr.bf16.vlgmr.msra.gmra.mrb[8].mxu1 %v1665_v22  ;;  %1951 = vmatpush3.bf16.msra.mxu0 %v2128_v26  ;;  %v36_v22 = vld [vmem:[%s2700_s0 + $0xa8] sm:$0xff] }
  0x45   :  { %1979 = vmatpush3.bf16.msra.mxu1 %v2129_v27  ;;  %1952 = vmatprep.subr.bf16.mxu0 %v2130_v28  ;;  %v1686_v24 = vcombine.high %v36_v22, %v44_v23  ;;  %v1685_v26 = vcombine.low %v36_v22, %v44_v23  ;;  %v2169_v27 = vld [vmem:[%s2699_s1 + $0x390] sm:$0xff]   ;;  %v2170_v28 = vld [vmem:[%s2699_s1 + $0x358] sm:$0xff]  }
  0x46   :  { %1980 = vmatprep.subr.bf16.mxu1 %v2131_v29  ;;  %1376 = vmatprep.mubr.bf16.mxu0 %v1680_v34  ;;  %v2171_v29 = vld [vmem:[%s2699_s1 + $0x3d8] sm:$0xff]   ;;  %v2176_v34 = vld [vmem:[%s2699_s1 + $0x320] sm:$0xff]  }
  0x47   :  { %1425 = vmatprep.mubr.bf16.mxu1 %v1682_v40  ;;  %v2182_v40 = vld [vmem:[%s2699_s1 + $0x370] sm:$0xff]  }
  0x48   :  { %1953 = vmatpush3.bf16.msra.mxu0 %v2132_v30  ;;  %v2172_v30 = vld [vmem:[%s2699_s1 + $0x318] sm:$0xff]  }
  0x49   :  { %1981 = vmatpush3.bf16.msra.mxu1 %v2133_v31  ;;  %1954 = vmatprep.subr.bf16.mxu0 %v2134_v36  ;;  %v2173_v31 = vld [vmem:[%s2699_s1 + $0x398] sm:$0xff]   ;;  %v2178_v36 = vld [vmem:[%s2699_s1 + $0x368] sm:$0xff]  }
  0x4a   :  { %1982 = vmatprep.subr.bf16.mxu1 %v2135_v37  ;;  %v2179_v37 = vld [vmem:[%s2699_s1 + $0x3e8] sm:$0xff]  }
  0x4b   :  { %1377 = vmatmul.mubr.bf16.gmra.mrb[12].mxu0 %v1679_v35  ;;  %v2177_v35 = vld [vmem:[%s2699_s1 + $0x3a0] sm:$0xff]  }
  0x4c   :  { %1955 = vmatpush3.bf16.msra.mxu0 %v2136_v41  ;;  %1426 = vmatmul.mubr.bf16.gmra.mrb[12].mxu1 %v1681_v42  ;;  %v2183_v41 = vld [vmem:[%s2699_s1 + $0x3f0] sm:$0xff]  }
  0x4d   :  { %1983 = vmatpush3.bf16.msra.mxu1 %v2137_v43  ;;  %1956 = vmatprep.subr.bf16.mxu0 %v2138_v44  ;;  %v2184_v42 = vld [vmem:[%s2699_s1 + $0x330] sm:$0xff]   ;;  %v2186_v44 = vld [vmem:[%s2699_s1 + $0x378] sm:$0xff]  }
  0x4e   :  { %1984 = vmatprep.subr.bf16.mxu1 %v2139_v45  ;;  %1466 = vmatprep.mubr.bf16.mxu0 %v1668_v3  ;;  %v2185_v43 = vld [vmem:[%s2699_s1 + $0x3b0] sm:$0xff]   ;;  %v2187_v45 = vld [vmem:[%s2699_s1 + $0x3f8] sm:$0xff]  }
  0x4f   :  { %1515 = vmatprep.mubr.bf16.mxu1 %v1670_v7 }
  0x50   :  { %1957 = vmatpush3.bf16.msra.mxu0 %v2140_v46  ;;  %v2188_v46 = vld [vmem:[%s2699_s1 + $0x338] sm:$0xff]  }
  0x51   :  { %1985 = vmatpush3.bf16.msra.mxu1 %v2141_v47  ;;  %1958 = vmatprep.subr.bf16.mxu0 %v2142_v48  ;;  %v2189_v47 = vld [vmem:[%s2699_s1 + $0x3b8] sm:$0xff]   ;;  %v21_v48 = vld [vmem:[%s2700_s0 + $0x30] sm:$0xff] }
  0x52   :  { %1986 = vmatprep.subr.bf16.mxu1 %v2143_v49  ;;  %v29_v49 = vld [vmem:[%s2700_s0 + $0x70] sm:$0xff] }
  0x54   :  { %1959 = vmatpush3.bf16.msra.mxu0 %v2144_v50  ;;  %v22_v50 = vld [vmem:[%s2700_s0 + $0x38] sm:$0xff] }
  0x55   :  { %1987 = vmatpush3.bf16.msra.mxu1 %v2145_v51  ;;  %1960 = vmatprep.subr.bf16.mxu0 %v2146_v52  ;;  %v1671_v51 = vcombine.low %v21_v48, %v29_v49  ;;  %v1672_v52 = vcombine.high %v21_v48, %v29_v49 }
  0x56   :  { %1988 = vmatprep.subr.bf16.mxu1 %v2147_v53  ;;  %v30_v53 = vld [vmem:[%s2700_s0 + $0x78] sm:$0xff] }
  0x58   :  { %1961 = vmatpush3.bf16.msra.mxu0 %v2148_v54  ;;  %v37_v54 = vld [vmem:[%s2700_s0 + $0xb0] sm:$0xff] }
  0x59   :  { %1989 = vmatpush3.bf16.msra.mxu1 %v2149_v55  ;;  %1962 = vmatprep.subr.bf16.mxu0 %v2150_v56  ;;  %v45_v55 = vld [vmem:[%s2700_s0 + $0xf0] sm:$0xff]  ;;  %v1673_v56 = vcombine.low %v22_v50, %v30_v53 }
  0x5a   :  { %1990 = vmatprep.subr.bf16.mxu1 %v2151_v57  ;;  %v1674_v57 = vcombine.high %v22_v50, %v30_v53 }
  0x5c   :  { %1963 = vmatpush3.bf16.msra.mxu0 %v2152_v58  ;;  %v1688_v58 = vcombine.high %v37_v54, %v45_v55 }
  0x5d   :  { %1991 = vmatpush3.bf16.msra.mxu1 %v2153_v59  ;;  %1964 = vmatprep.subr.bf16.mxu0 %v2154_v60  ;;  %v38_v59 = vld [vmem:[%s2700_s0 + $0xb8] sm:$0xff] }
  0x5e   :  { %1992 = vmatprep.subr.bf16.mxu1 %v2155_v61  ;;  %v46_v60 = vld [vmem:[%s2700_s0 + $0xf8] sm:$0xff] }
  0x5f   :  { %v1690_v61 = vcombine.high %v38_v59, %v46_v60 }
  0x60   :  { %1965 = vmatpush3.bf16.msra.mxu0 %v2156_v62  ;;  %v1687_v62 = vcombine.low %v37_v54, %v45_v55 }
  0x61   :  { %1993 = vmatpush3.bf16.msra.mxu1 %v2157_v63  ;;  %2006 = vmatprep.subr.bf16.mxu0 %v2158_v8  ;;  %v1689_v63 = vcombine.low %v38_v59, %v46_v60 }
  0x62   :  { %2034 = vmatprep.subr.bf16.mxu1 %v2159_v9 }
  0x63   :  { %1467 = vmatmul.mubr.bf16.vlgmr.msra.gmra.mrb[16].mxu0 %v1667_v2  ;;  %v1658_v2 = vld [vmem:[%s2701_s2] ss:$0 sm:$0xff] }
  0x64   :  { %1516 = vmatmul.mubr.bf16.vlgmr.msra.gmra.mrb[16].mxu1 %v1669_v6  ;;  %2007 = vmatpush3.bf16.msra.mxu0 %v2160_v10 }
  0x65   :  { %2035 = vmatpush3.bf16.msra.mxu1 %v2161_v11  ;;  %2008 = vmatprep.subr.bf16.mxu0 %v2162_v12 }
  0x66   :  { %2036 = vmatprep.subr.bf16.mxu1 %v2163_v13  ;;  %1474 = vmatprep.mubr.bf16.mxu0 %v1684_v18 }
  0x67   :  { %1523 = vmatprep.mubr.bf16.mxu1 %v1686_v24 }
  0x68   :  { %2009 = vmatpush3.bf16.msra.mxu0 %v2164_v14 }
  0x69   :  { %2037 = vmatpush3.bf16.msra.mxu1 %v2165_v15  ;;  %2010 = vmatprep.subr.bf16.mxu0 %v2166_v20 }
  0x6a   :  { %2038 = vmatprep.subr.bf16.mxu1 %v2167_v21 }
  0x6b   :  { %1475 = vmatmul.mubr.bf16.gmra.mrb[20].mxu0 %v1683_v19 }
  0x6c   :  { %2011 = vmatpush3.bf16.msra.mxu0 %v2168_v25  ;;  %1524 = vmatmul.mubr.bf16.gmra.mrb[20].mxu1 %v1685_v26 }
  0x6d   :  { %2039 = vmatpush3.bf16.msra.mxu1 %v2169_v27  ;;  %2012 = vmatprep.subr.bf16.mxu0 %v2170_v28 }
  0x6e   :  { %2040 = vmatprep.subr.bf16.mxu1 %v2171_v29  ;;  %1564 = vmatprep.mubr.bf16.mxu0 %v1672_v52 }
  0x6f   :  { %1613 = vmatprep.mubr.bf16.mxu1 %v1674_v57 }
  0x70   :  { %2013 = vmatpush3.bf16.msra.mxu0 %v2172_v30 }
  0x71   :  { %2041 = vmatpush3.bf16.msra.mxu1 %v2173_v31  ;;  %2014 = vmatprep.subr.bf16.mxu0 %v2174_v32 }
  0x72   :  { %2042 = vmatprep.subr.bf16.mxu1 %v2175_v33 }
  0x74   :  { %2015 = vmatpush3.bf16.msra.mxu0 %v2176_v34 }
  0x75   :  { %2043 = vmatpush3.bf16.msra.mxu1 %v2177_v35  ;;  %2016 = vmatprep.subr.bf16.mxu0 %v2178_v36 }
  0x76   :  { %2044 = vmatprep.subr.bf16.mxu1 %v2179_v37 }
  0x78   :  { %2017 = vmatpush3.bf16.msra.mxu0 %v2180_v38 }
  0x79   :  { %2045 = vmatpush3.bf16.msra.mxu1 %v2181_v39  ;;  %2018 = vmatprep.subr.bf16.mxu0 %v2182_v40 }
  0x7a   :  { %2046 = vmatprep.subr.bf16.mxu1 %v2183_v41 }
  0x7c   :  { %2019 = vmatpush3.bf16.msra.mxu0 %v2184_v42 }
  0x7d   :  { %2047 = vmatpush3.bf16.msra.mxu1 %v2185_v43  ;;  %2020 = vmatprep.subr.bf16.mxu0 %v2186_v44 }
  0x7e   :  { %2048 = vmatprep.subr.bf16.mxu1 %v2187_v45 }
  0x80   :  { %2021 = vmatpush3.bf16.msra.mxu0 %v2188_v46 }
  0x81   :  { %2049 = vmatpush3.bf16.msra.mxu1 %v2189_v47 }
  0x83   :  { %1565 = vmatmul.mubr.bf16.vlgmr.msra.gmra.mrb[24].mxu0 %v1671_v51 }
  0x84   :  { %1614 = vmatmul.mubr.bf16.vlgmr.msra.gmra.mrb[24].mxu1 %v1673_v56  ;;  %1572 = vmatprep.mubr.bf16.mxu0 %v1688_v58 }
  0x85   :  { %1621 = vmatprep.mubr.bf16.mxu1 %v1690_v61 }
  0x8b   :  { %1573 = vmatmul.mubr.bf16.gmra.mrb[28].mxu0 %v1687_v62 }
  0x8c   :  { %1622 = vmatmul.mubr.bf16.gmra.mrb[28].mxu1 %v1689_v63 }
  0xf6   :  { %v1854_v0 = vpop.f32.mrb[0].mxu0 }
  0xf7   :  { %v1882_v1 = vpop.f32.mrb[0].mxu1  ;;  %v1855_v3 = vpop.f32.mrb[1].mxu0 }
  0xf8   :  { %v1856_v4 = vadd.f32 %v1855_v3, %v1854_v0  ;;  %v1883_v5 = vpop.f32.mrb[1].mxu1  ;;  %v1857_v6 = vpop.f32.mrb[2].mxu0 }
  0xf9   :  { %v1884_v7 = vadd.f32 %v1883_v5, %v1882_v1  ;;  %v1885_v8 = vpop.f32.mrb[2].mxu1  ;;  %v1858_v9 = vpop.f32.mrb[3].mxu0 }
  0xfa   :  { %v1273_v10 = vadd.f32 %v1856_v4, %v1658_v2  ;;  %v1859_v11 = vadd.f32 %v1858_v9, %v1857_v6  ;;  %v1886_v12 = vpop.f32.mrb[3].mxu1 }
  0xfb   :  { %v1887_v13 = vadd.f32 %v1886_v12, %v1885_v8 }
  0xfc   :  { %v1322_v14 = vadd.f32 %v1884_v7, %v1273_v10  ;;  %v1276_v15 = vadd.f32 %v1859_v11, %v1658_v2 }
  0xfe   :  { %v1325_v16 = vadd.f32 %v1887_v13, %v1276_v15  ;;  %v1860_v17 = vpop.f32.mrb[4].mxu0 }
  0xff   :  { %v1861_v18 = vpop.f32.mrb[5].mxu0  ;;  %v1888_v21 = vpop.f32.mrb[4].mxu1 }
 0x100   :  { %v1862_v19 = vadd.f32 %v1861_v18, %v1860_v17  ;;  %v1863_v20 = vpop.f32.mrb[6].mxu0  ;;  %v1889_v25 = vpop.f32.mrb[5].mxu1 }
 0x101   :  { %v1864_v22 = vpop.f32.mrb[7].mxu0  ;;  %v1890_v26 = vadd.f32 %v1889_v25, %v1888_v21  ;;  %v1891_v27 = vpop.f32.mrb[6].mxu1 }
 0x102   :  { %v1281_v23 = vadd.f32 %v1862_v19, %v1658_v2  ;;  %v1865_v24 = vadd.f32 %v1864_v22, %v1863_v20  ;;  %v1892_v29 = vpop.f32.mrb[7].mxu1 }
 0x103   :  { %v1893_v31 = vadd.f32 %v1892_v29, %v1891_v27 }
 0x104   :  { %v1284_v28 = vadd.f32 %v1865_v24, %v1658_v2  ;;  %v1330_v30 = vadd.f32 %v1890_v26, %v1281_v23 }
 0x106   :  { %v1333_v32 = vadd.f32 %v1893_v31, %v1284_v28 }
 0x116   :  { %v1910_v33 = vpop.f32.mrb[8].mxu0 }
 0x117   :  { %v1938_v34 = vpop.f32.mrb[8].mxu1  ;;  %v1911_v35 = vpop.f32.mrb[9].mxu0 }
 0x118   :  { %v1939_v36 = vpop.f32.mrb[9].mxu1  ;;  %v1912_v37 = vadd.f32 %v1911_v35, %v1910_v33  ;;  %v1913_v39 = vpop.f32.mrb[10].mxu0 }
 0x119   :  { %v1940_v38 = vadd.f32 %v1939_v36, %v1938_v34  ;;  %v1941_v40 = vpop.f32.mrb[10].mxu1  ;;  %v1914_v41 = vpop.f32.mrb[11].mxu0 }
 0x11a   :  { %v1942_v42 = vpop.f32.mrb[11].mxu1  ;;  %v1371_v43 = vadd.f32 %v1912_v37, %v1322_v14  ;;  %v1915_v44 = vadd.f32 %v1914_v41, %v1913_v39 }
 0x11b   :  { %v1943_v45 = vadd.f32 %v1942_v42, %v1941_v40 }
 0x11c   :  { %v1420_v46 = vadd.f32 %v1940_v38, %v1371_v43  ;;  %v1374_v47 = vadd.f32 %v1915_v44, %v1325_v16 }
 0x11e   :  { %v1423_v48 = vadd.f32 %v1943_v45, %v1374_v47  ;;  %v1916_v49 = vpop.f32.mrb[12].mxu0 }
 0x11f   :  { %v1917_v50 = vpop.f32.mrb[13].mxu0  ;;  %v1944_v55 = vpop.f32.mrb[12].mxu1 }
 0x120   :  { %v1918_v51 = vadd.f32 %v1917_v50, %v1916_v49  ;;  %v1919_v52 = vpop.f32.mrb[14].mxu0  ;;  %v1945_v57 = vpop.f32.mrb[13].mxu1 }
 0x121   :  { %v1920_v53 = vpop.f32.mrb[15].mxu0  ;;  %v1946_v59 = vadd.f32 %v1945_v57, %v1944_v55  ;;  %v1947_v60 = vpop.f32.mrb[14].mxu1 }
 0x122   :  { %v1379_v54 = vadd.f32 %v1918_v51, %v1330_v30  ;;  %v1921_v56 = vadd.f32 %v1920_v53, %v1919_v52  ;;  %v1948_v61 = vpop.f32.mrb[15].mxu1 }
 0x123   :  { %v1949_v63 = vadd.f32 %v1948_v61, %v1947_v60 }
 0x124   :  { %v1382_v58 = vadd.f32 %v1921_v56, %v1333_v32  ;;  %v1428_v62 = vadd.f32 %v1946_v59, %v1379_v54 }
 0x126   :  { %v1431_v0 = vadd.f32 %v1949_v63, %v1382_v58 }
 0x136   :  { %v1966_v1 = vpop.f32.mrb[16].mxu0 }
 0x137   :  { %v1994_v2 = vpop.f32.mrb[16].mxu1  ;;  %v1967_v3 = vpop.f32.mrb[17].mxu0 }
 0x138   :  { %v1968_v4 = vadd.f32 %v1967_v3, %v1966_v1  ;;  %v1995_v5 = vpop.f32.mrb[17].mxu1  ;;  %v1969_v6 = vpop.f32.mrb[18].mxu0 }
 0x139   :  { %v1996_v7 = vadd.f32 %v1995_v5, %v1994_v2  ;;  %v1997_v8 = vpop.f32.mrb[18].mxu1  ;;  %v1970_v9 = vpop.f32.mrb[19].mxu0 }
 0x13a   :  { %v1469_v10 = vadd.f32 %v1968_v4, %v1420_v46  ;;  %v1971_v11 = vadd.f32 %v1970_v9, %v1969_v6  ;;  %v1998_v12 = vpop.f32.mrb[19].mxu1 }
 0x13b   :  { %v1999_v13 = vadd.f32 %v1998_v12, %v1997_v8 }
 0x13c   :  { %v1518_v14 = vadd.f32 %v1996_v7, %v1469_v10  ;;  %v1472_v15 = vadd.f32 %v1971_v11, %v1423_v48 }
 0x13e   :  { %v1521_v16 = vadd.f32 %v1999_v13, %v1472_v15  ;;  %v1972_v17 = vpop.f32.mrb[20].mxu0 }
 0x13f   :  { %v1973_v18 = vpop.f32.mrb[21].mxu0  ;;  %v2000_v21 = vpop.f32.mrb[20].mxu1 }
 0x140   :  { %v1974_v19 = vadd.f32 %v1973_v18, %v1972_v17  ;;  %v1975_v20 = vpop.f32.mrb[22].mxu0  ;;  %v2001_v25 = vpop.f32.mrb[21].mxu1 }
 0x141   :  { %v1976_v22 = vpop.f32.mrb[23].mxu0  ;;  %v2002_v26 = vadd.f32 %v2001_v25, %v2000_v21  ;;  %v2003_v27 = vpop.f32.mrb[22].mxu1 }
 0x142   :  { %v1477_v23 = vadd.f32 %v1974_v19, %v1428_v62  ;;  %v1977_v24 = vadd.f32 %v1976_v22, %v1975_v20  ;;  %v2004_v29 = vpop.f32.mrb[23].mxu1 }
 0x143   :  { %v2005_v31 = vadd.f32 %v2004_v29, %v2003_v27 }
 0x144   :  { %v1480_v28 = vadd.f32 %v1977_v24, %v1431_v0  ;;  %v1526_v30 = vadd.f32 %v2002_v26, %v1477_v23 }
 0x146   :  { %v1529_v32 = vadd.f32 %v2005_v31, %v1480_v28 }
 0x156   :  { %v2022_v33 = vpop.f32.mrb[24].mxu0 }
 0x157   :  { %v2050_v34 = vpop.f32.mrb[24].mxu1  ;;  %v2023_v35 = vpop.f32.mrb[25].mxu0 }
 0x158   :  { %v2024_v36 = vadd.f32 %v2023_v35, %v2022_v33  ;;  %v2051_v37 = vpop.f32.mrb[25].mxu1  ;;  %v2025_v38 = vpop.f32.mrb[26].mxu0 }
 0x159   :  { %v2052_v39 = vadd.f32 %v2051_v37, %v2050_v34  ;;  %v2053_v40 = vpop.f32.mrb[26].mxu1  ;;  %v2026_v41 = vpop.f32.mrb[27].mxu0 }
 0x15a   :  { %v1567_v42 = vadd.f32 %v2024_v36, %v1518_v14  ;;  %v2027_v43 = vadd.f32 %v2026_v41, %v2025_v38  ;;  %v2054_v44 = vpop.f32.mrb[27].mxu1 }
 0x15b   :  { %v2055_v45 = vadd.f32 %v2054_v44, %v2053_v40 }
 0x15c   :  { %v1616_v46 = vadd.f32 %v2052_v39, %v1567_v42  ;;  %v1570_v47 = vadd.f32 %v2027_v43, %v1521_v16 }
 0x15e   :  { %v1619_v48 = vadd.f32 %v2055_v45, %v1570_v47  ;;  %v2028_v49 = vpop.f32.mrb[28].mxu0  ;;  %v1630_v52 = vmax.f32 %v1616_v46, 0.0 }
 0x15f   :  { %v2056_v50 = vpop.f32.mrb[28].mxu1  ;;  %v2029_v51 = vpop.f32.mrb[29].mxu0 }
 0x160   :  { %v1631_v53 = vmax.f32 %v1619_v48, 0.0  ;;  %v2030_v54 = vadd.f32 %v2029_v51, %v2028_v49  ;;  %v2057_v55 = vpop.f32.mrb[29].mxu1  ;;  %v2031_v56 = vpop.f32.mrb[30].mxu0 }
 0x161   :  { %v2058_v57 = vadd.f32 %v2057_v55, %v2056_v50  ;;  %v2059_v58 = vpop.f32.mrb[30].mxu1  ;;  %v2032_v59 = vpop.f32.mrb[31].mxu0 }
 0x162   :  { %v1830_v60 = vpack.c.bf16 %v1631_v53, %v1630_v52  ;;  %v1575_v61 = vadd.f32 %v2030_v54, %v1526_v30  ;;  %v2033_v62 = vadd.f32 %v2032_v59, %v2031_v56  ;;  %v2060_v63 = vpop.f32.mrb[31].mxu1 }
 0x163   :  { %v2061_v0 = vadd.f32 %v2060_v63, %v2059_v58 }
 0x164   :  { %1831 = vst [vmem:[%s2702_s3] sm:$0xff] %v1830_v60   ;;  %v1624_v1 = vadd.f32 %v2058_v57, %v1575_v61  ;;  %v1578_v2 = vadd.f32 %v2033_v62, %v1529_v32 }
 0x166   :  { %v1627_v3 = vadd.f32 %v2061_v0, %v1578_v2  ;;  %v1632_v4 = vmax.f32 %v1624_v1, 0.0 }
 0x168   :  { %v1633_v5 = vmax.f32 %v1627_v3, 0.0 }
 0x16a   :  { %v1835_v6 = vpack.c.bf16 %v1633_v5, %v1632_v4 }
 0x16c   :  { %1837 = vst [vmem:[%s2702_s3 + $0x8] sm:$0xff] %v1835_v6  }

</bundles_post_ra>
